<compile_context>
chip_gen: v7x
topology: tpu7x:2x2x1
jax: 0.10.0
libtpu: 0.0.40
codegen_flags: <defaults>
</compile_context>

<pallas_src>
import functools
import math

import jax
import jax.numpy as jnp
from jax.experimental import pallas as pl
from jax.experimental.pallas import tpu as pltpu

SPIKE_ROWS = 400          # hard-coded 400 inside Filter_xp / lat_int1 / lat_int2
DEC_PAD = 512             # 400 padded up to 4*128 lanes (lane-dense decoder matmul)
LAT_PAD = 128             # latent_dim padded up to one full vreg lane width


def _elu(x):
    """F.elu (alpha=1), written with exp() only (guaranteed Mosaic lowering)."""
    return jnp.where(x > 0, x, jnp.exp(jnp.minimum(x, 0.0)) - 1.0)


def _gelu_tanh(x):
    """GELU, tanh approximation (EUP tanh)."""
    c = 0.7978845608028654  # sqrt(2/pi)
    return 0.5 * x * (1.0 + jnp.tanh(c * (x + 0.044715 * (x * x * x))))


def _mxu_dot(a, b):
    """bf16 MXU operands, f32 accumulation."""
    return jnp.dot(a.astype(jnp.bfloat16), b.astype(jnp.bfloat16),
                   preferred_element_type=jnp.float32)


def _spike_vae_kernel(inv_winlen,
                      x_ref, eps_ref, filt_ref,
                      whead_ref, bhead_ref,
                      w01_ref, b01_ref,
                      wdec_ref, bdec_ref,
                      coms_ref, pred_ref, mu_ref, logsig_ref):
    ld = mu_ref.shape[-1]          # true latent_dim
    rows = coms_ref.shape[-1]      # 400

    # (1) Filter_xp bank: filtered[b, f] = sum_ij X[b,i,j] * filt_f[i,j] / winlen
    #     one MXU pass with K = 400*winlen; filter matrix resident across the grid.
    #     x arrives f32 and is cast to bf16 in-register (VPU, free at mem-bound).
    filtered = _mxu_dot(x_ref[...], filt_ref[...]) * inv_winlen        # (TB, NF) f32

    # (2) fused int0_mu | int0_sig heads (each padded to 128 lanes), ELU.
    head = _elu(_mxu_dot(filtered, whead_ref[...]) + bhead_ref[...])   # (TB, 256)
    mu = head[:, :LAT_PAD]                                             # lane-aligned split
    log_sig = head[:, LAT_PAD:]

    # (3) reparameterize: z = mu + eps * exp(log_sig)   (padding lanes stay 0)
    latent = mu + eps_ref[...] * jnp.exp(log_sig)                      # (TB, 128)

    # (4) int01 (latent_dim -> latent_dim, zero-padded to 128x128), GELU.
    com = _gelu_tanh(_mxu_dot(latent, w01_ref[...]) + b01_ref[...])    # (TB, 128)

    # (5) fused lat_int1 | lat_int2 decoder (400 padded to 512 lanes each), GELU.
    dec = _gelu_tanh(_mxu_dot(com, wdec_ref[...]) + bdec_ref[...])     # (TB, 1024)

    # exact-width stores (no post-kernel slicing in the wrapper)
    coms_ref[...] = dec[:, :rows]
    pred_ref[...] = dec[:, DEC_PAD:DEC_PAD + rows]
    mu_ref[...] = mu[:, :ld]
    logsig_ref[...] = log_sig[:, :ld]


@functools.partial(jax.jit, static_argnames=("block_b",))
def spike_vae_forward(x, eps, params, *, block_b=16):
    """x: (B, 400, winlen) spike raster; eps: (B, latent_dim) reparam noise."""
    assert block_b % 8 == 0, "batch tile must be a multiple of 8 (f32 sublanes)"
    (fmat, wmu, bmu, wsig, bsig, w01, b01, w1, b1, w2, b2) = params

    B, rows, winlen = x.shape
    k_flat = rows * winlen
    nf = fmat.shape[1]
    ld = wmu.shape[1]
    bf16 = jnp.bfloat16

    # --- activations: x stays f32 (reshape is a free bitcast, cast happens in-kernel)
    x_flat = x.reshape(B, k_flat).astype(jnp.float32)
    eps_p = jnp.zeros((B, LAT_PAD), jnp.float32).at[:, :ld].set(eps.astype(jnp.float32))

    # --- fused + lane-padded resident weights (bf16), biases f32 -------------
    fmat_bf = fmat.astype(bf16)                                          # (K, NF)
    whead = (jnp.zeros((nf, 2 * LAT_PAD), bf16)
             .at[:, :ld].set(wmu.astype(bf16))
             .at[:, LAT_PAD:LAT_PAD + ld].set(wsig.astype(bf16)))
    bhead = (jnp.zeros((1, 2 * LAT_PAD), jnp.float32)
             .at[:, :ld].set(bmu).at[:, LAT_PAD:LAT_PAD + ld].set(bsig))
    w01p = jnp.zeros((LAT_PAD, LAT_PAD), bf16).at[:ld, :ld].set(w01.astype(bf16))
    b01p = jnp.zeros((1, LAT_PAD), jnp.float32).at[:, :ld].set(b01)
    wdec = (jnp.zeros((LAT_PAD, 2 * DEC_PAD), bf16)
            .at[:ld, :SPIKE_ROWS].set(w1.astype(bf16))
            .at[:ld, DEC_PAD:DEC_PAD + SPIKE_ROWS].set(w2.astype(bf16)))
    bdec = (jnp.zeros((1, 2 * DEC_PAD), jnp.float32)
            .at[:, :SPIKE_ROWS].set(b1).at[:, DEC_PAD:DEC_PAD + SPIKE_ROWS].set(b2))

    # --- pad the batch to a multiple of the batch tile (no-op when divisible) --
    tb = block_b
    b_pad = ((B + tb - 1) // tb) * tb
    if b_pad != B:
        x_flat = jnp.pad(x_flat, ((0, b_pad - B), (0, 0)))
        eps_p = jnp.pad(eps_p, ((0, b_pad - B), (0, 0)))
    grid = (b_pad // tb,)

    def tile_spec(cols):                       # batch-tiled operands / outputs
        return pl.BlockSpec((tb, cols), lambda i: (i, 0))

    def resident_spec(arr):                    # weights: DMA'd once, stay in VMEM
        return pl.BlockSpec(arr.shape, lambda i: (0, 0))

    in_specs = [
        tile_spec(k_flat),                     # x (f32)
        tile_spec(LAT_PAD),                    # eps (padded)
        resident_spec(fmat_bf),
        resident_spec(whead), resident_spec(bhead),
        resident_spec(w01p), resident_spec(b01p),
        resident_spec(wdec), resident_spec(bdec),
    ]
    out_shapes = (
        jax.ShapeDtypeStruct((b_pad, SPIKE_ROWS), jnp.float32),   # coms
        jax.ShapeDtypeStruct((b_pad, SPIKE_ROWS), jnp.float32),   # pred_num_spikes
        jax.ShapeDtypeStruct((b_pad, ld), jnp.float32),           # mu
        jax.ShapeDtypeStruct((b_pad, ld), jnp.float32),           # log_sig
    )
    out_specs = (tile_spec(SPIKE_ROWS), tile_spec(SPIKE_ROWS),
                 tile_spec(ld), tile_spec(ld))

    flops = 2 * b_pad * (k_flat * nf + nf * 2 * LAT_PAD
                         + LAT_PAD * LAT_PAD + LAT_PAD * 2 * DEC_PAD)
    transcendentals = b_pad * (2 * LAT_PAD + LAT_PAD + LAT_PAD + 2 * DEC_PAD)
    bytes_accessed = (4 * b_pad * k_flat + 4 * b_pad * LAT_PAD
                      + 2 * (k_flat * nf + nf * 2 * LAT_PAD
                             + LAT_PAD * LAT_PAD + LAT_PAD * 2 * DEC_PAD)
                      + 4 * (3 * LAT_PAD + 2 * DEC_PAD)
                      + 4 * b_pad * (2 * SPIKE_ROWS + 2 * ld))

    coms, pred, mu, log_sig = pl.pallas_call(
        functools.partial(_spike_vae_kernel, 1.0 / winlen),
        out_shape=out_shapes,
        grid=grid,
        in_specs=in_specs,
        out_specs=out_specs,
        compiler_params=pltpu.CompilerParams(
            dimension_semantics=("parallel",),          # v7x: shard batch across 2 TCs
            vmem_limit_bytes=48 * 1024 * 1024),
        cost_estimate=pl.CostEstimate(flops=flops,
                                      transcendentals=transcendentals,
                                      bytes_accessed=bytes_accessed),
    )(x_flat, eps_p, fmat_bf, whead, bhead, w01p, b01p, wdec, bdec)

    if b_pad != B:
        coms, pred, mu, log_sig = coms[:B], pred[:B], mu[:B], log_sig[:B]
    return coms, pred, mu, log_sig


def init_params(key, winlen, num_filters, latent_dim):
    """Mirror SpikeVAE.__init__: Filter_xp banks + PyTorch-default Linear init."""
    k_filt, k_mu, k_sig, k_01, k_l1, k_l2 = jax.random.split(key, 6)

    # Filter_xp: filt = exp(-(x - mu)^2 / (2*sigma^2)) * amp, precomputed per bank
    # and flattened into one (400*winlen, num_filters) matrix.
    x_values = jnp.linspace(0.0, winlen, winlen)                      # (W,)
    sigma = 16.0
    fk = jax.random.split(k_filt, num_filters)
    banks = []
    for i in range(num_filters):
        km, ka = jax.random.split(fk[i])
        mus = jax.random.randint(km, (SPIKE_ROWS,), 0, winlen).astype(jnp.float32)
        amps = jax.random.uniform(ka, (SPIKE_ROWS,), jnp.float32)
        filt = jnp.exp(-(x_values[None, :] - mus[:, None]) ** 2
                       / (2.0 * sigma ** 2)) * amps[:, None]          # (400, W)
        banks.append(filt.reshape(-1))
    fmat = jnp.stack(banks, axis=1)                                   # (400*W, NF)

    def linear(k, d_in, d_out):               # PyTorch nn.Linear default init
        kw, kb = jax.random.split(k)
        bound = 1.0 / math.sqrt(d_in)
        w = jax.random.uniform(kw, (d_in, d_out), jnp.float32, -bound, bound)
        b = jax.random.uniform(kb, (1, d_out), jnp.float32, -bound, bound)
        return w, b

    wmu, bmu = linear(k_mu, num_filters, latent_dim)      # int0_mu
    wsig, bsig = linear(k_sig, num_filters, latent_dim)   # int0_sig
    w01, b01 = linear(k_01, latent_dim, latent_dim)       # int01
    w1, b1 = linear(k_l1, latent_dim, SPIKE_ROWS)         # lat_int1
    w2, b2 = linear(k_l2, latent_dim, SPIKE_ROWS)         # lat_int2
    return (fmat, wmu, bmu, wsig, bsig, w01, b01, w1, b1, w2, b2)


def _reference(x, eps, params):
    """Plain-JAX reference with the same bf16-operand / f32-accumulate math."""
    (fmat, wmu, bmu, wsig, bsig, w01, b01, w1, b1, w2, b2) = params
    B, rows, winlen = x.shape
    xf = x.reshape(B, rows * winlen)
    filtered = _mxu_dot(xf, fmat) * (1.0 / winlen)
    mu = _elu(_mxu_dot(filtered, wmu) + bmu)
    log_sig = _elu(_mxu_dot(filtered, wsig) + bsig)
    latent = mu + eps * jnp.exp(log_sig)
    com = _gelu_tanh(_mxu_dot(latent, w01) + b01)
    coms = _gelu_tanh(_mxu_dot(com, w1) + b1)
    pred = _gelu_tanh(_mxu_dot(com, w2) + b2)
    return coms, pred, mu, log_sig


if __name__ == "__main__":
    WINLEN, NUM_FILTERS, LATENT_DIM, BATCH = 32, 8, 4, 32

    key = jax.random.PRNGKey(0)
    k_param, k_x, k_eps = jax.random.split(key, 3)

    params = init_params(k_param, WINLEN, NUM_FILTERS, LATENT_DIM)

    # sparse spike raster (batch, 400, winlen) and reparameterization noise
    x = jax.random.bernoulli(k_x, 0.02, (BATCH, SPIKE_ROWS, WINLEN)).astype(jnp.float32)
    eps = jax.random.normal(k_eps, (BATCH, LATENT_DIM), jnp.float32)

    coms, pred, mu, log_sig = spike_vae_forward(x, eps, params, block_b=16)
    jax.block_until_ready((coms, pred, mu, log_sig))

    ref = _reference(x, eps, params)
    names = ("coms", "pred_num_spikes", "mu", "log_sig")
    for got, want, name in zip((coms, pred, mu, log_sig), ref, names):
        assert got.shape == want.shape, f"{name}: shape {got.shape} != {want.shape}"
        assert bool(jnp.allclose(got, want, rtol=2e-2, atol=2e-2)), f"{name} mismatch"

    assert coms.shape == (BATCH, SPIKE_ROWS) and pred.shape == (BATCH, SPIKE_ROWS)
    assert mu.shape == (BATCH, LATENT_DIM) and log_sig.shape == (BATCH, LATENT_DIM)
    print("KERNEL_OK")
</pallas_src>

<mosaic_0001>
module attributes {stable_mosaic.version = 11 : i64} {
  func.func @_spike_vae_kernel(%arg0: i32, %arg1: memref<16x12800xf32, #tpu.memory_space<vmem>>, %arg2: memref<16x128xf32, #tpu.memory_space<vmem>>, %arg3: memref<12800x8xbf16, #tpu.memory_space<vmem>>, %arg4: memref<8x256xbf16, #tpu.memory_space<vmem>>, %arg5: memref<1x256xf32, #tpu.memory_space<vmem>>, %arg6: memref<128x128xbf16, #tpu.memory_space<vmem>>, %arg7: memref<1x128xf32, #tpu.memory_space<vmem>>, %arg8: memref<128x1024xbf16, #tpu.memory_space<vmem>>, %arg9: memref<1x1024xf32, #tpu.memory_space<vmem>>, %arg10: memref<16x400xf32, #tpu.memory_space<vmem>>, %arg11: memref<16x400xf32, #tpu.memory_space<vmem>>, %arg12: memref<16x4xf32, #tpu.memory_space<vmem>>, %arg13: memref<16x4xf32, #tpu.memory_space<vmem>>) attributes {dimension_semantics = [#tpu.dimension_semantics<parallel>], iteration_bounds = array<i64: 2>, scalar_prefetch = 0 : i64, scratch_operands = 0 : i64, tpu.core_type = #tpu.core_type<tc>, window_params = [{transform_indices = @transform_0, window_bounds = array<i64: 16, 12800>}, {transform_indices = @transform_1, window_bounds = array<i64: 16, 128>}, {pipeline_mode = #tpu.pipeline_mode<synchronous>, transform_indices = @transform_2, window_bounds = array<i64: 12800, 8>}, {pipeline_mode = #tpu.pipeline_mode<synchronous>, transform_indices = @transform_3, window_bounds = array<i64: 8, 256>}, {pipeline_mode = #tpu.pipeline_mode<synchronous>, transform_indices = @transform_4, window_bounds = array<i64: 1, 256>}, {pipeline_mode = #tpu.pipeline_mode<synchronous>, transform_indices = @transform_5, window_bounds = array<i64: 128, 128>}, {pipeline_mode = #tpu.pipeline_mode<synchronous>, transform_indices = @transform_6, window_bounds = array<i64: 1, 128>}, {pipeline_mode = #tpu.pipeline_mode<synchronous>, transform_indices = @transform_7, window_bounds = array<i64: 128, 1024>}, {pipeline_mode = #tpu.pipeline_mode<synchronous>, transform_indices = @transform_8, window_bounds = array<i64: 1, 1024>}, {transform_indices = @transform_9, window_bounds = array<i64: 16, 400>}, {transform_indices = @transform_10, window_bounds = array<i64: 16, 400>}, {transform_indices = @transform_11, window_bounds = array<i64: 16, 4>}, {transform_indices = @transform_12, window_bounds = array<i64: 16, 4>}]} {
    %c0 = arith.constant 0 : index
    %c0_0 = arith.constant 0 : index
    %0 = vector.load %arg1[%c0, %c0_0] : memref<16x12800xf32, #tpu.memory_space<vmem>>, vector<16x12800xf32>
    %c0_1 = arith.constant 0 : index
    %c0_2 = arith.constant 0 : index
    %1 = vector.load %arg3[%c0_1, %c0_2] : memref<12800x8xbf16, #tpu.memory_space<vmem>>, vector<12800x8xbf16>
    %2 = arith.truncf %0 : vector<16x12800xf32> to vector<16x12800xbf16>
    %cst = arith.constant dense<0.000000e+00> : vector<16x8xf32>
    %3 = tpu.matmul %2, %1, %cst {dimension_numbers = #tpu.dot_dimension_numbers<[1], [0], [0], [1], [0, 0, 1, 1], [], []>} : vector<16x12800xbf16>, vector<12800x8xbf16>, vector<16x8xf32> -> vector<16x8xf32>
    %cst_3 = arith.constant 3.125000e-02 : f32
    %4 = vector.broadcast %cst_3 : f32 to vector<16x8xf32>
    %5 = arith.mulf %3, %4 : vector<16x8xf32>
    %c0_4 = arith.constant 0 : index
    %c0_5 = arith.constant 0 : index
    %6 = vector.load %arg4[%c0_4, %c0_5] : memref<8x256xbf16, #tpu.memory_space<vmem>>, vector<8x256xbf16>
    %7 = arith.truncf %5 : vector<16x8xf32> to vector<16x8xbf16>
    %cst_6 = arith.constant dense<0.000000e+00> : vector<16x256xf32>
    %8 = tpu.matmul %7, %6, %cst_6 {dimension_numbers = #tpu.dot_dimension_numbers<[1], [0], [0], [1], [0, 0, 1, 1], [], []>} : vector<16x8xbf16>, vector<8x256xbf16>, vector<16x256xf32> -> vector<16x256xf32>
    %c0_7 = arith.constant 0 : index
    %c0_8 = arith.constant 0 : index
    %9 = vector.load %arg5[%c0_7, %c0_8] : memref<1x256xf32, #tpu.memory_space<vmem>>, vector<1x256xf32>
    %10 = vector.broadcast %9 : vector<1x256xf32> to vector<16x256xf32>
    %11 = arith.addf %8, %10 : vector<16x256xf32>
    %cst_9 = arith.constant 0.000000e+00 : f32
    %12 = vector.broadcast %cst_9 : f32 to vector<16x256xf32>
    %13 = arith.cmpf ogt, %11, %12 : vector<16x256xf32>
    %cst_10 = arith.constant 0.000000e+00 : f32
    %14 = vector.broadcast %cst_10 : f32 to vector<16x256xf32>
    %15 = arith.minimumf %11, %14 : vector<16x256xf32>
    %16 = math.exp %15 : vector<16x256xf32>
    %cst_11 = arith.constant 1.000000e+00 : f32
    %17 = vector.broadcast %cst_11 : f32 to vector<16x256xf32>
    %18 = arith.subf %16, %17 : vector<16x256xf32>
    %19 = arith.select %13, %11, %18 : vector<16x256xi1>, vector<16x256xf32>
    %20 = vector.extract_strided_slice %19 {offsets = [0, 0], sizes = [16, 128], strides = [1, 1]} : vector<16x256xf32> to vector<16x128xf32>
    %21 = vector.extract_strided_slice %19 {offsets = [0, 128], sizes = [16, 128], strides = [1, 1]} : vector<16x256xf32> to vector<16x128xf32>
    %c0_12 = arith.constant 0 : index
    %c0_13 = arith.constant 0 : index
    %22 = vector.load %arg2[%c0_12, %c0_13] : memref<16x128xf32, #tpu.memory_space<vmem>>, vector<16x128xf32>
    %23 = math.exp %21 : vector<16x128xf32>
    %24 = arith.mulf %22, %23 : vector<16x128xf32>
    %25 = arith.addf %20, %24 : vector<16x128xf32>
    %c0_14 = arith.constant 0 : index
    %c0_15 = arith.constant 0 : index
    %26 = vector.load %arg6[%c0_14, %c0_15] : memref<128x128xbf16, #tpu.memory_space<vmem>>, vector<128x128xbf16>
    %27 = arith.truncf %25 : vector<16x128xf32> to vector<16x128xbf16>
    %cst_16 = arith.constant dense<0.000000e+00> : vector<16x128xf32>
    %28 = tpu.matmul %27, %26, %cst_16 {dimension_numbers = #tpu.dot_dimension_numbers<[1], [0], [0], [1], [0, 0, 1, 1], [], []>} : vector<16x128xbf16>, vector<128x128xbf16>, vector<16x128xf32> -> vector<16x128xf32>
    %c0_17 = arith.constant 0 : index
    %c0_18 = arith.constant 0 : index
    %29 = vector.load %arg7[%c0_17, %c0_18] : memref<1x128xf32, #tpu.memory_space<vmem>>, vector<1x128xf32>
    %30 = vector.broadcast %29 : vector<1x128xf32> to vector<16x128xf32>
    %31 = arith.addf %28, %30 : vector<16x128xf32>
    %cst_19 = arith.constant 5.000000e-01 : f32
    %32 = vector.broadcast %cst_19 : f32 to vector<16x128xf32>
    %33 = arith.mulf %32, %31 : vector<16x128xf32>
    %34 = arith.mulf %31, %31 : vector<16x128xf32>
    %35 = arith.mulf %34, %31 : vector<16x128xf32>
    %cst_20 = arith.constant 4.471500e-02 : f32
    %36 = vector.broadcast %cst_20 : f32 to vector<16x128xf32>
    %37 = arith.mulf %36, %35 : vector<16x128xf32>
    %38 = arith.addf %31, %37 : vector<16x128xf32>
    %cst_21 = arith.constant 0.797884583 : f32
    %39 = vector.broadcast %cst_21 : f32 to vector<16x128xf32>
    %40 = arith.mulf %39, %38 : vector<16x128xf32>
    %41 = math.tanh %40 : vector<16x128xf32>
    %cst_22 = arith.constant 1.000000e+00 : f32
    %42 = vector.broadcast %cst_22 : f32 to vector<16x128xf32>
    %43 = arith.addf %42, %41 : vector<16x128xf32>
    %44 = arith.mulf %33, %43 : vector<16x128xf32>
    %c0_23 = arith.constant 0 : index
    %c0_24 = arith.constant 0 : index
    %45 = vector.load %arg8[%c0_23, %c0_24] : memref<128x1024xbf16, #tpu.memory_space<vmem>>, vector<128x1024xbf16>
    %46 = arith.truncf %44 : vector<16x128xf32> to vector<16x128xbf16>
    %cst_25 = arith.constant dense<0.000000e+00> : vector<16x1024xf32>
    %47 = tpu.matmul %46, %45, %cst_25 {dimension_numbers = #tpu.dot_dimension_numbers<[1], [0], [0], [1], [0, 0, 1, 1], [], []>} : vector<16x128xbf16>, vector<128x1024xbf16>, vector<16x1024xf32> -> vector<16x1024xf32>
    %c0_26 = arith.constant 0 : index
    %c0_27 = arith.constant 0 : index
    %48 = vector.load %arg9[%c0_26, %c0_27] : memref<1x1024xf32, #tpu.memory_space<vmem>>, vector<1x1024xf32>
    %49 = vector.broadcast %48 : vector<1x1024xf32> to vector<16x1024xf32>
    %50 = arith.addf %47, %49 : vector<16x1024xf32>
    %cst_28 = arith.constant 5.000000e-01 : f32
    %51 = vector.broadcast %cst_28 : f32 to vector<16x1024xf32>
    %52 = arith.mulf %51, %50 : vector<16x1024xf32>
    %53 = arith.mulf %50, %50 : vector<16x1024xf32>
    %54 = arith.mulf %53, %50 : vector<16x1024xf32>
    %cst_29 = arith.constant 4.471500e-02 : f32
    %55 = vector.broadcast %cst_29 : f32 to vector<16x1024xf32>
    %56 = arith.mulf %55, %54 : vector<16x1024xf32>
    %57 = arith.addf %50, %56 : vector<16x1024xf32>
    %cst_30 = arith.constant 0.797884583 : f32
    %58 = vector.broadcast %cst_30 : f32 to vector<16x1024xf32>
    %59 = arith.mulf %58, %57 : vector<16x1024xf32>
    %60 = math.tanh %59 : vector<16x1024xf32>
    %cst_31 = arith.constant 1.000000e+00 : f32
    %61 = vector.broadcast %cst_31 : f32 to vector<16x1024xf32>
    %62 = arith.addf %61, %60 : vector<16x1024xf32>
    %63 = arith.mulf %52, %62 : vector<16x1024xf32>
    %64 = vector.extract_strided_slice %63 {offsets = [0, 0], sizes = [16, 400], strides = [1, 1]} : vector<16x1024xf32> to vector<16x400xf32>
    %c0_32 = arith.constant 0 : index
    %c0_33 = arith.constant 0 : index
    %65 = vector.load %arg10[%c0_32, %c0_33] : memref<16x400xf32, #tpu.memory_space<vmem>>, vector<16x400xf32>
    tpu.vector_store %arg10[%c0_32, %c0_33], %64 {strides = array<i32>} : memref<16x400xf32, #tpu.memory_space<vmem>>, vector<16x400xf32>,
    %66 = vector.extract_strided_slice %63 {offsets = [0, 512], sizes = [16, 400], strides = [1, 1]} : vector<16x1024xf32> to vector<16x400xf32>
    %c0_34 = arith.constant 0 : index
    %c0_35 = arith.constant 0 : index
    %67 = vector.load %arg11[%c0_34, %c0_35] : memref<16x400xf32, #tpu.memory_space<vmem>>, vector<16x400xf32>
    tpu.vector_store %arg11[%c0_34, %c0_35], %66 {strides = array<i32>} : memref<16x400xf32, #tpu.memory_space<vmem>>, vector<16x400xf32>,
    %68 = vector.extract_strided_slice %20 {offsets = [0, 0], sizes = [16, 4], strides = [1, 1]} : vector<16x128xf32> to vector<16x4xf32>
    %c0_36 = arith.constant 0 : index
    %c0_37 = arith.constant 0 : index
    %69 = vector.load %arg12[%c0_36, %c0_37] : memref<16x4xf32, #tpu.memory_space<vmem>>, vector<16x4xf32>
    tpu.vector_store %arg12[%c0_36, %c0_37], %68 {strides = array<i32>} : memref<16x4xf32, #tpu.memory_space<vmem>>, vector<16x4xf32>,
    %70 = vector.extract_strided_slice %21 {offsets = [0, 0], sizes = [16, 4], strides = [1, 1]} : vector<16x128xf32> to vector<16x4xf32>
    %c0_38 = arith.constant 0 : index
    %c0_39 = arith.constant 0 : index
    %71 = vector.load %arg13[%c0_38, %c0_39] : memref<16x4xf32, #tpu.memory_space<vmem>>, vector<16x4xf32>
    tpu.vector_store %arg13[%c0_38, %c0_39], %70 {strides = array<i32>} : memref<16x4xf32, #tpu.memory_space<vmem>>, vector<16x4xf32>,
    return
  }
  func.func @transform_0(%arg0: i32) -> (i32, i32) {
    %c0_i32 = arith.constant 0 : i32
    %c0_i32_0 = arith.constant 0 : i32
    return %arg0, %c0_i32 : i32, i32
  }
  func.func @transform_1(%arg0: i32) -> (i32, i32) {
    %c0_i32 = arith.constant 0 : i32
    %c0_i32_0 = arith.constant 0 : i32
    return %arg0, %c0_i32 : i32, i32
  }
  func.func @transform_2(%arg0: i32) -> (i32, i32) {
    %c0_i32 = arith.constant 0 : i32
    %c0_i32_0 = arith.constant 0 : i32
    %c0_i32_1 = arith.constant 0 : i32
    return %c0_i32, %c0_i32_0 : i32, i32
  }
  func.func @transform_3(%arg0: i32) -> (i32, i32) {
    %c0_i32 = arith.constant 0 : i32
    %c0_i32_0 = arith.constant 0 : i32
    %c0_i32_1 = arith.constant 0 : i32
    return %c0_i32, %c0_i32_0 : i32, i32
  }
  func.func @transform_4(%arg0: i32) -> (i32, i32) {
    %c0_i32 = arith.constant 0 : i32
    %c0_i32_0 = arith.constant 0 : i32
    %c0_i32_1 = arith.constant 0 : i32
    return %c0_i32, %c0_i32_0 : i32, i32
  }
  func.func @transform_5(%arg0: i32) -> (i32, i32) {
    %c0_i32 = arith.constant 0 : i32
    %c0_i32_0 = arith.constant 0 : i32
    %c0_i32_1 = arith.constant 0 : i32
    return %c0_i32, %c0_i32_0 : i32, i32
  }
  func.func @transform_6(%arg0: i32) -> (i32, i32) {
    %c0_i32 = arith.constant 0 : i32
    %c0_i32_0 = arith.constant 0 : i32
    %c0_i32_1 = arith.constant 0 : i32
    return %c0_i32, %c0_i32_0 : i32, i32
  }
  func.func @transform_7(%arg0: i32) -> (i32, i32) {
    %c0_i32 = arith.constant 0 : i32
    %c0_i32_0 = arith.constant 0 : i32
    %c0_i32_1 = arith.constant 0 : i32
    return %c0_i32, %c0_i32_0 : i32, i32
  }
  func.func @transform_8(%arg0: i32) -> (i32, i32) {
    %c0_i32 = arith.constant 0 : i32
    %c0_i32_0 = arith.constant 0 : i32
    %c0_i32_1 = arith.constant 0 : i32
    return %c0_i32, %c0_i32_0 : i32, i32
  }
  func.func @transform_9(%arg0: i32) -> (i32, i32) {
    %c0_i32 = arith.constant 0 : i32
    %c0_i32_0 = arith.constant 0 : i32
    return %arg0, %c0_i32 : i32, i32
  }
  func.func @transform_10(%arg0: i32) -> (i32, i32) {
    %c0_i32 = arith.constant 0 : i32
    %c0_i32_0 = arith.constant 0 : i32
    return %arg0, %c0_i32 : i32, i32
  }
  func.func @transform_11(%arg0: i32) -> (i32, i32) {
    %c0_i32 = arith.constant 0 : i32
    %c0_i32_0 = arith.constant 0 : i32
    return %arg0, %c0_i32 : i32, i32
  }
  func.func @transform_12(%arg0: i32) -> (i32, i32) {
    %c0_i32 = arith.constant 0 : i32
    %c0_i32_0 = arith.constant 0 : i32
    return %arg0, %c0_i32 : i32, i32
  }
}

</mosaic_0001>

<bundles_post_ra>
// kernel: spike_vae_forward.1
= control target key start
LH: loop header
LB: loop body
LE: loop exit
PB: predicated region body
PF: predicated region fallthrough
CT: control target
= control target key end

     0   :  { %18 = vsyncpa [#allocation3], 0  ;;  %s16865_s0 = inlined_call_operand.vmem [shape: f32[32,12800], index: 0, kind: input, shape index: {}]   ;;  %s16866_s1 = inlined_call_operand.vmem [shape: f32[32,128], index: 1, kind: input, shape index: {}]   ;;  %s16867_s2 = inlined_call_operand.vmem [shape: bf16[12800,8], index: 2, kind: input, shape index: {}]   ;;  %s16868_s3 = inlined_call_operand.vmem [shape: bf16[8,256], index: 3, kind: input, shape index: {}]   ;;  %s16869_s4 = inlined_call_operand.vmem [shape: f32[1,256], index: 4, kind: input, shape index: {}]   ;;  %s16870_s5 = inlined_call_operand.vmem [shape: bf16[128,128], index: 5, kind: input, shape index: {}]   ;;  %s16871_s6 = inlined_call_operand.vmem [shape: f32[1,128], index: 6, kind: input, shape index: {}]   ;;  %s16872_s7 = inlined_call_operand.vmem [shape: bf16[128,1024], index: 7, kind: input, shape index: {}]   ;;  %s16873_s8 = inlined_call_operand.vmem [shape: f32[1,1024], index: 8, kind: input, shape index: {}]   ;;  %s16874_s9 = inlined_call_operand.hbm [shape: f32[32,400], index: 9, kind: output, shape index: {0}]   ;;  %s16875_s10 = inlined_call_operand.hbm [shape: f32[32,400], index: 10, kind: output, shape index: {1}]   ;;  %s16876_s11 = inlined_call_operand.vmem [shape: f32[32,4], index: 11, kind: output, shape index: {2}]   ;;  %s16877_s12 = inlined_call_operand.vmem [shape: f32[32,4], index: 12, kind: output, shape index: {3}]  }
   0x1   :  { %20 = vsyncpa [#allocation3 + $0x1], 0 }
   0x2   :  { %21 = vsyncpa [#allocation5], 0 }
   0x3   :  { %23 = vsyncpa [#allocation5 + $0x1], 0  ;;  %s13559_s21 = smov 0   ;;  %s13561_s22 = smov 0  }
   0x4   :  { %s13563_s23 = smov 0   ;;  %s13565_s24 = smov 0  }
   0x5 LB: > { %16883 = sst [smem:[#allocation8_spill]] %s13481_s23  ;;  %s13580_s25 = sadd.s32 4294967295, %s13485_s24   ;;  %s13485_s24 = sphi %s13565_s24, %s16891_s24   ;;  %s13481_s23 = sphi %s13563_s23, %s16893_s23   ;;  %s13477_s22 = sphi %s13561_s22, %s16895_s22   ;;  %s13473_s21 = sphi %s13559_s21, %s16894_s21  }
   0x6   : > { %s10445_s26 = sadd.s32 4294967294, %s13485_s24   ;;  %s13584_s27 = sadd.s32 1, %s13485_s24  }
   0x7   : > { %16884 = sst [smem:[#allocation9_spill]] %s13584_s27  ;;  %s235_s28 = sadd.s32 1, %s13481_s23 }
   0x8   : > { %s232_s29 = ssub.s32 %s13485_s24, %s13584_s27  ;;  %p245_p0 = scmp.ne.s32.totalorder %s13481_s23, %s13477_s22 }
   0x9   : > { %p233_p1 = scmp.eq.s32.totalorder %s232_s29, 0  ;;  %p246_p2 = scmp.eq.s32.totalorder %s13580_s25, 1 }
   0xa   : > { %p251_p3 = scmp.ne.s32.totalorder %s13477_s22, %s13473_s21  ;;  %p252_p4 = scmp.eq.s32.totalorder %s10445_s26, 1 }
   0xb   : > { %s13595_s30 = scalar_select %p233_p1, %s13481_s23, %s235_s28  }
   0xc   : > { %p13597_p5 = por %p246_p2, %p245_p0  ;;  %p13601_p6 = por %p252_p4, %p251_p3 }
   0xd   : > { %16885 = sst [smem:[#allocation10_spill]] %s13595_s30  ;;  %p10448_p7 = scmp.ge.s32.totalorder %s13485_s24, 1 }
   0xe   : > { %p388_p8 = scmp.lt.s32.totalorder %s13485_s24, 3 }
  0x10   : > { %p389_p9 = pnand %p10448_p7, %p388_p8 }
  0x11   : > { %v12533_v0 = vld [vmem:[%s16867_s2 + $0x40] sm:$0xff] (!%p389_p9)   ;;  %v12537_v4 = vld [vmem:[%s16867_s2 + $0x48] sm:$0xff] (!%p389_p9)   ;;  %v12541_v8 = vld [vmem:[%s16867_s2 + $0x50] sm:$0xff] (!%p389_p9)   ;;  %s10451_s15 = sshll.u32 (!%p389_p9), %s13580_s25, 1  ;;  %vm9254_vm0 = vcmask (!%p389_p9), 1043456   ;;  %vm9250_vm1 = vcmask (!%p389_p9), 64512  }
  0x12   : > { %392 = sbr.rel (%p389_p9) target bundleno = 1878 (0x756), region = 56  ;;  %v12534_v1 = vld [vmem:[%s16867_s2 + $0xc0] sm:$0xff] (!%p389_p9)   ;;  %11354 = vmatprep.subr.bf16.mxu0 (!%p389_p9), %v12533_v0  ;;  %v12538_v5 = vld [vmem:[%s16867_s2 + $0xc8] sm:$0xff] (!%p389_p9)   ;;  %v12542_v9 = vld [vmem:[%s16867_s2 + $0xd0] sm:$0xff] (!%p389_p9)   ;;  %p452_p10 = scmp.lt.s32.totalorder (!%p389_p9), %s10451_s15, 3  ;;  %vm13489_vm2 = vmmov (!%p389_p9), 0  }
  0x13   : > { %v12535_v2 = vld [vmem:[%s16867_s2] sm:$0xff] (!%p389_p9)   ;;  %11376 = vmatprep.subr.bf16.mxu1 (!%p389_p9), %v12534_v1  ;;  %v12539_v6 = vld [vmem:[%s16867_s2 + $0x8] sm:$0xff] (!%p389_p9)   ;;  %v12543_v10 = vld [vmem:[%s16867_s2 + $0x10] sm:$0xff] (!%p389_p9)   ;;  %vm10229_vm3 = vcmask (!%p389_p9), 31744   ;;  %s16673_s17 = sand.u32 (!%p389_p9), 1, %s13477_s22   ;;  %vm10215_vm8 = vcmask (!%p389_p9), 130048  }
  0x14   : > { %v12536_v3 = vld [vmem:[%s16867_s2 + $0x80] sm:$0xff] (!%p389_p9)   ;;  %11355 = vmatpush3.bf16.msra.mxu0 (!%p389_p9), %v12535_v2  ;;  %v12540_v7 = vld [vmem:[%s16867_s2 + $0x88] sm:$0xff] (!%p389_p9)   ;;  %v12544_v11 = vld [vmem:[%s16867_s2 + $0x90] sm:$0xff] (!%p389_p9)   ;;  %s10235_s29 = scalar_lea.sflag (!%p389_p9), [#allocation3], %s16673_s17 }
  0x15   : > { %11377 = vmatpush3.bf16.msra.mxu1 (!%p389_p9), %v12536_v3  ;;  %11356 = vmatprep.subr.bf16.mxu0 (!%p389_p9), %v12537_v4  ;;  %v12545_v12 = vld [vmem:[%s16867_s2 + $0x58] sm:$0xff] (!%p389_p9)   ;;  %v12549_v16 = vld [vmem:[%s16867_s2 + $0x60] sm:$0xff] (!%p389_p9)   ;;  %v12553_v20 = vld [vmem:[%s16867_s2 + $0x68] sm:$0xff] (!%p389_p9)  }
  0x16   : > { %11378 = vmatprep.subr.bf16.mxu1 (!%p389_p9), %v12538_v5  ;;  %v12546_v13 = vld [vmem:[%s16867_s2 + $0xd8] sm:$0xff] (!%p389_p9)   ;;  %v12550_v17 = vld [vmem:[%s16867_s2 + $0xe0] sm:$0xff] (!%p389_p9)   ;;  %v12554_v21 = vld [vmem:[%s16867_s2 + $0xe8] sm:$0xff] (!%p389_p9)  }
  0x17   : > { %v12547_v14 = vld [vmem:[%s16867_s2 + $0x18] sm:$0xff] (!%p389_p9)   ;;  %v12551_v18 = vld [vmem:[%s16867_s2 + $0x20] sm:$0xff] (!%p389_p9)   ;;  %v12555_v22 = vld [vmem:[%s16867_s2 + $0x28] sm:$0xff] (!%p389_p9)  }
  0x18   : > { %11357 = vmatpush3.bf16.msra.mxu0 (!%p389_p9), %v12539_v6  ;;  %v12548_v15 = vld [vmem:[%s16867_s2 + $0x98] sm:$0xff] (!%p389_p9)   ;;  %v12552_v19 = vld [vmem:[%s16867_s2 + $0xa0] sm:$0xff] (!%p389_p9)   ;;  %v12556_v23 = vld [vmem:[%s16867_s2 + $0xa8] sm:$0xff] (!%p389_p9)  }
  0x19   : > { %11379 = vmatpush3.bf16.msra.mxu1 %v12540_v7  ;;  %11358 = vmatprep.subr.bf16.mxu0 %v12541_v8  ;;  %s16897_s15 = smov (!%p452_p10, %s10451_s15), 3  ;;  %v12557_v24 = vld [vmem:[%s16867_s2 + $0x70] sm:$0xff]   ;;  %v12561_v28 = vld [vmem:[%s16867_s2 + $0x78] sm:$0xff]   ;;  %v12565_v44 = vld [vmem:[%s16867_s2 + $0x140] sm:$0xff]  }
  0x1a   : > { %11380 = vmatprep.subr.bf16.mxu1 %v12542_v9  ;;  %v12558_v25 = vld [vmem:[%s16867_s2 + $0xf0] sm:$0xff]   ;;  %s12483_s20 = smul.u32 800, %s16897_s15  ;;  %v12562_v29 = vld [vmem:[%s16867_s2 + $0xf8] sm:$0xff]   ;;  %v12566_v45 = vld [vmem:[%s16867_s2 + $0x1c0] sm:$0xff]  }
  0x1b   : > { %v12559_v26 = vld [vmem:[%s16867_s2 + $0x30] sm:$0xff]   ;;  %v12563_v30 = vld [vmem:[%s16867_s2 + $0x38] sm:$0xff]   ;;  %v12567_v46 = vld [vmem:[%s16867_s2 + $0x100] sm:$0xff]  }
  0x1c   : > { %11359 = vmatpush3.bf16.msra.mxu0 %v12543_v10  ;;  %v12560_v27 = vld [vmem:[%s16867_s2 + $0xb0] sm:$0xff]   ;;  %s13704_s23 = scalar_lea.vmem %s16865_s0, %s12483_s20  ;;  %v12564_v31 = vld [vmem:[%s16867_s2 + $0xb8] sm:$0xff]   ;;  %v12568_v47 = vld [vmem:[%s16867_s2 + $0x180] sm:$0xff]   ;;  %s10454_s20 = sshll.u32 %s16897_s15, 3 }
  0x1d   : > { %11381 = vmatpush3.bf16.msra.mxu1 %v12544_v11  ;;  %11360 = vmatprep.subr.bf16.mxu0 %v12545_v12  ;;  %v480_v32 = vld [vmem:[%s13704_s23 + $0x8] sm:$0xff]  ;;  %v482_v34 = vld [vmem:[%s13704_s23 + $0x18] sm:$0xff]  ;;  %v479_v37 = vld [vmem:[%s13704_s23] sm:$0xff]  ;;  %s470_s18 = scalar_lea.vmem %s16876_s11, %s10454_s20  ;;  %s476_s26 = scalar_lea.vmem %s16877_s12, %s10454_s20 }
  0x1e   : > { %11382 = vmatprep.subr.bf16.mxu1 %v12546_v13  ;;  %v580_v33 = vld [vmem:[%s13704_s23 + $0x328] sm:$0xff]  ;;  %v582_v36 = vld [vmem:[%s13704_s23 + $0x338] sm:$0xff]  ;;  %v579_v38 = vld [vmem:[%s13704_s23 + $0x320] sm:$0xff]  ;;  %s462_s28 = scalar_lea.vmem %s16866_s1, %s10454_s20  ;;  %s13490_s20 = smov [#allocation2]  }
  0x1f   : > { %v2280_v35 = vpack.c.bf16 %v580_v33, %v480_v32  ;;  %v2282_v39 = vpack.c.bf16 %v582_v36, %v482_v34  ;;  %v2279_v40 = vpack.c.bf16 %v579_v38, %v479_v37  ;;  %v481_v41 = vld [vmem:[%s13704_s23 + $0x10] sm:$0xff]  ;;  %v12569_v48 = vld [vmem:[%s16867_s2 + $0x148] sm:$0xff]   ;;  %v12577_v56 = vld [vmem:[%s16867_s2 + $0x158] sm:$0xff]   ;;  %s13395_s16 = sshll.u32 %s13490_s20, 4  ;;  %s13396_s16 = int_to_ptr.vmem [resolvable:$false] %s13395_s16 }
  0x20   : > { %11361 = vmatpush3.bf16.msra.mxu0 %v12547_v14  ;;  %v581_v42 = vld [vmem:[%s13704_s23 + $0x330] sm:$0xff]  ;;  %v12570_v49 = vld [vmem:[%s16867_s2 + $0x1c8] sm:$0xff]   ;;  %v12578_v57 = vld [vmem:[%s16867_s2 + $0x1d8] sm:$0xff]  }
  0x21   : > { %11383 = vmatpush3.bf16.msra.mxu1 %v12548_v15  ;;  %11362 = vmatprep.subr.bf16.mxu0 %v12549_v16  ;;  %v2281_v43 = vpack.c.bf16 %v581_v42, %v481_v41  ;;  %v12571_v50 = vld [vmem:[%s16867_s2 + $0x108] sm:$0xff]   ;;  %v12573_v52 = vld [vmem:[%s16867_s2 + $0x150] sm:$0xff]   ;;  %v12579_v58 = vld [vmem:[%s16867_s2 + $0x118] sm:$0xff]  }
  0x22   : > { %11384 = vmatprep.subr.bf16.mxu1 %v12550_v17  ;;  %7211 = vmatprep.mubr.bf16.mxu0 %v2280_v35  ;;  %v12572_v51 = vld [vmem:[%s16867_s2 + $0x188] sm:$0xff]   ;;  %v12574_v53 = vld [vmem:[%s16867_s2 + $0x1d0] sm:$0xff]   ;;  %v12580_v59 = vld [vmem:[%s16867_s2 + $0x198] sm:$0xff]  }
  0x23   : > { %7252 = vmatprep.mubr.bf16.mxu1 %v2282_v39  ;;  %v12575_v54 = vld [vmem:[%s16867_s2 + $0x110] sm:$0xff]   ;;  %v12581_v60 = vld [vmem:[%s16867_s2 + $0x160] sm:$0xff]   ;;  %v12585_v0 = vld [vmem:[%s16867_s2 + $0x168] sm:$0xff]  }
  0x24   : > { %11363 = vmatpush3.bf16.msra.mxu0 %v12551_v18  ;;  %v12576_v55 = vld [vmem:[%s16867_s2 + $0x190] sm:$0xff]   ;;  %v12582_v61 = vld [vmem:[%s16867_s2 + $0x1e0] sm:$0xff]   ;;  %v12586_v1 = vld [vmem:[%s16867_s2 + $0x1e8] sm:$0xff]  }
  0x25   : > { %11385 = vmatpush3.bf16.msra.mxu1 %v12552_v19  ;;  %11364 = vmatprep.subr.bf16.mxu0 %v12553_v20  ;;  %v12583_v62 = vld [vmem:[%s16867_s2 + $0x120] sm:$0xff]   ;;  %v12587_v2 = vld [vmem:[%s16867_s2 + $0x128] sm:$0xff]   ;;  %v12589_v4 = vld [vmem:[%s16867_s2 + $0x170] sm:$0xff]  }
  0x26   : > { %11386 = vmatprep.subr.bf16.mxu1 %v12554_v21  ;;  %v12584_v63 = vld [vmem:[%s16867_s2 + $0x1a0] sm:$0xff]   ;;  %v12588_v3 = vld [vmem:[%s16867_s2 + $0x1a8] sm:$0xff]   ;;  %v12590_v5 = vld [vmem:[%s16867_s2 + $0x1f0] sm:$0xff]  }
  0x27   : > { %v12591_v6 = vld [vmem:[%s16867_s2 + $0x130] sm:$0xff]   ;;  %v12593_v8 = vld [vmem:[%s16867_s2 + $0x178] sm:$0xff]   ;;  %v484_v12 = vld [vmem:[%s13704_s23 + $0x28] sm:$0xff] }
  0x28   : > { %11365 = vmatpush3.bf16.msra.mxu0 %v12555_v22  ;;  %v12592_v7 = vld [vmem:[%s16867_s2 + $0x1b0] sm:$0xff]   ;;  %v12594_v9 = vld [vmem:[%s16867_s2 + $0x1f8] sm:$0xff]   ;;  %v584_v13 = vld [vmem:[%s13704_s23 + $0x348] sm:$0xff] }
  0x29   : > { %11387 = vmatpush3.bf16.msra.mxu1 %v12556_v23  ;;  %11366 = vmatprep.subr.bf16.mxu0 %v12557_v24  ;;  %v12595_v10 = vld [vmem:[%s16867_s2 + $0x138] sm:$0xff]   ;;  %v2284_v16 = vpack.c.bf16 %v584_v13, %v484_v12  ;;  %v483_v18 = vld [vmem:[%s13704_s23 + $0x20] sm:$0xff]  ;;  %v485_v20 = vld [vmem:[%s13704_s23 + $0x30] sm:$0xff] }
  0x2a   : > { %11388 = vmatprep.subr.bf16.mxu1 %v12558_v25  ;;  %v12596_v11 = vld [vmem:[%s16867_s2 + $0x1b8] sm:$0xff]   ;;  %v583_v19 = vld [vmem:[%s13704_s23 + $0x340] sm:$0xff]  ;;  %v585_v22 = vld [vmem:[%s13704_s23 + $0x350] sm:$0xff] }
  0x2b   : > { %v486_v14 = vld [vmem:[%s13704_s23 + $0x38] sm:$0xff]  ;;  %v2283_v21 = vpack.c.bf16 %v583_v19, %v483_v18  ;;  %v2285_v23 = vpack.c.bf16 %v585_v22, %v485_v20  ;;  %v12597_v24 = vld [vmem:[%s16867_s2 + $0x240] sm:$0xff]   ;;  %v12605_v32 = vld [vmem:[%s16867_s2 + $0x250] sm:$0xff]  }
  0x2c   : > { %11367 = vmatpush3.bf16.msra.mxu0 %v12559_v26  ;;  %v586_v15 = vld [vmem:[%s13704_s23 + $0x358] sm:$0xff]  ;;  %v12598_v25 = vld [vmem:[%s16867_s2 + $0x2c0] sm:$0xff]   ;;  %v12606_v33 = vld [vmem:[%s16867_s2 + $0x2d0] sm:$0xff]  }
  0x2d   : > { %11389 = vmatpush3.bf16.msra.mxu1 %v12560_v27  ;;  %11368 = vmatprep.subr.bf16.mxu0 %v12561_v28  ;;  %v2286_v17 = vpack.c.bf16 %v586_v15, %v486_v14  ;;  %v12599_v26 = vld [vmem:[%s16867_s2 + $0x200] sm:$0xff]   ;;  %v12601_v28 = vld [vmem:[%s16867_s2 + $0x248] sm:$0xff]   ;;  %v12607_v34 = vld [vmem:[%s16867_s2 + $0x210] sm:$0xff]  }
  0x2e   : > { %11390 = vmatprep.subr.bf16.mxu1 %v12562_v29  ;;  %v12600_v27 = vld [vmem:[%s16867_s2 + $0x280] sm:$0xff]   ;;  %v12602_v29 = vld [vmem:[%s16867_s2 + $0x2c8] sm:$0xff]   ;;  %v12608_v35 = vld [vmem:[%s16867_s2 + $0x290] sm:$0xff]  }
  0x2f   : > { %v12609_v36 = vld [vmem:[%s16867_s2 + $0x258] sm:$0xff]   ;;  %v12614_v41 = vld [vmem:[%s16867_s2 + $0x2e0] sm:$0xff]   ;;  %v12637_v12 = vld [vmem:[%s16867_s2 + $0x350] sm:$0xff]  }
  0x30   : > { %11369 = vmatpush3.bf16.msra.mxu0 %v12563_v30  ;;  %v12603_v30 = vld [vmem:[%s16867_s2 + $0x208] sm:$0xff]   ;;  %v12610_v37 = vld [vmem:[%s16867_s2 + $0x2d8] sm:$0xff]   ;;  %v12615_v42 = vld [vmem:[%s16867_s2 + $0x220] sm:$0xff]  }
  0x31   : > { %11391 = vmatpush3.bf16.msra.mxu1 %v12564_v31  ;;  %11398 = vmatprep.subr.bf16.mxu0 %v12565_v44  ;;  %v12604_v31 = vld [vmem:[%s16867_s2 + $0x288] sm:$0xff]   ;;  %v12611_v38 = vld [vmem:[%s16867_s2 + $0x218] sm:$0xff]   ;;  %v12638_v13 = vld [vmem:[%s16867_s2 + $0x3d0] sm:$0xff]  }
  0x32   : > { %11420 = vmatprep.subr.bf16.mxu1 %v12566_v45  ;;  %v12612_v39 = vld [vmem:[%s16867_s2 + $0x298] sm:$0xff]   ;;  %v12617_v44 = vld [vmem:[%s16867_s2 + $0x268] sm:$0xff]   ;;  %v12639_v14 = vld [vmem:[%s16867_s2 + $0x310] sm:$0xff]  }
  0x33   : > { %7212 = vmatmul.mubr.bf16.vlgmr.msra.gmra.mrb[0].mxu0 %v2279_v40  ;;  %v12613_v40 = vld [vmem:[%s16867_s2 + $0x260] sm:$0xff]   ;;  %v12618_v45 = vld [vmem:[%s16867_s2 + $0x2e8] sm:$0xff]   ;;  %v12640_v15 = vld [vmem:[%s16867_s2 + $0x390] sm:$0xff]  }
  0x34   : > { %7253 = vmatmul.mubr.bf16.vlgmr.msra.gmra.mrb[0].mxu1 %v2281_v43  ;;  %11399 = vmatpush3.bf16.msra.mxu0 %v12567_v46  ;;  %v12616_v43 = vld [vmem:[%s16867_s2 + $0x2a0] sm:$0xff]   ;;  %v12619_v46 = vld [vmem:[%s16867_s2 + $0x228] sm:$0xff]   ;;  %v12643_v18 = vld [vmem:[%s16867_s2 + $0x318] sm:$0xff]  }
  0x35   : > { %11421 = vmatpush3.bf16.msra.mxu1 %v12568_v47  ;;  %11400 = vmatprep.subr.bf16.mxu0 %v12569_v48  ;;  %v12620_v47 = vld [vmem:[%s16867_s2 + $0x2a8] sm:$0xff]   ;;  %v12621_v48 = vld [vmem:[%s16867_s2 + $0x270] sm:$0xff]   ;;  %v12644_v19 = vld [vmem:[%s16867_s2 + $0x398] sm:$0xff]  }
  0x36   : > { %11422 = vmatprep.subr.bf16.mxu1 %v12570_v49  ;;  %7293 = vmatprep.mubr.bf16.mxu0 %v2284_v16  ;;  %v12622_v49 = vld [vmem:[%s16867_s2 + $0x2f0] sm:$0xff]   ;;  %v12641_v16 = vld [vmem:[%s16867_s2 + $0x358] sm:$0xff]   ;;  %v12645_v20 = vld [vmem:[%s16867_s2 + $0x360] sm:$0xff]  }
  0x37   : > { %7334 = vmatprep.mubr.bf16.mxu1 %v2286_v17  ;;  %v12642_v17 = vld [vmem:[%s16867_s2 + $0x3d8] sm:$0xff]   ;;  %v12647_v22 = vld [vmem:[%s16867_s2 + $0x320] sm:$0xff]  }
  0x38   : > { %11401 = vmatpush3.bf16.msra.mxu0 %v12571_v50  ;;  %v12623_v50 = vld [vmem:[%s16867_s2 + $0x230] sm:$0xff]  }
  0x39   : > { %11423 = vmatpush3.bf16.msra.mxu1 %v12572_v51  ;;  %11402 = vmatprep.subr.bf16.mxu0 %v12573_v52  ;;  %v12624_v51 = vld [vmem:[%s16867_s2 + $0x2b0] sm:$0xff]   ;;  %v12625_v52 = vld [vmem:[%s16867_s2 + $0x278] sm:$0xff]  }
  0x3a   : > { %11424 = vmatprep.subr.bf16.mxu1 %v12574_v53  ;;  %v12626_v53 = vld [vmem:[%s16867_s2 + $0x2f8] sm:$0xff]  }
  0x3c   : > { %11403 = vmatpush3.bf16.msra.mxu0 %v12575_v54  ;;  %v12627_v54 = vld [vmem:[%s16867_s2 + $0x238] sm:$0xff]  }
  0x3d   : > { %11425 = vmatpush3.bf16.msra.mxu1 %v12576_v55  ;;  %11404 = vmatprep.subr.bf16.mxu0 %v12577_v56  ;;  %v12628_v55 = vld [vmem:[%s16867_s2 + $0x2b8] sm:$0xff]   ;;  %v488_v56 = vld [vmem:[%s13704_s23 + $0x48] sm:$0xff] }
  0x3e   : > { %11426 = vmatprep.subr.bf16.mxu1 %v12578_v57  ;;  %v588_v57 = vld [vmem:[%s13704_s23 + $0x368] sm:$0xff] }
  0x40   : > { %11405 = vmatpush3.bf16.msra.mxu0 %v12579_v58  ;;  %v2288_v58 = vpack.c.bf16 %v588_v57, %v488_v56  ;;  %v12669_v56 = vld [vmem:[%s16867_s2 + $0x450] sm:$0xff]  }
  0x41   : > { %11427 = vmatpush3.bf16.msra.mxu1 %v12580_v59  ;;  %11406 = vmatprep.subr.bf16.mxu0 %v12581_v60  ;;  %v490_v59 = vld [vmem:[%s13704_s23 + $0x58] sm:$0xff]  ;;  %v12670_v57 = vld [vmem:[%s16867_s2 + $0x4d0] sm:$0xff]  }
  0x42   : > { %11428 = vmatprep.subr.bf16.mxu1 %v12582_v61  ;;  %v590_v60 = vld [vmem:[%s13704_s23 + $0x378] sm:$0xff]  ;;  %v487_v61 = vld [vmem:[%s13704_s23 + $0x40] sm:$0xff] }
  0x44   : > { %11407 = vmatpush3.bf16.msra.mxu0 %v12583_v62  ;;  %v2290_v62 = vpack.c.bf16 %v590_v60, %v490_v59  ;;  %v12672_v59 = vld [vmem:[%s16867_s2 + $0x490] sm:$0xff]   ;;  %v12673_v60 = vld [vmem:[%s16867_s2 + $0x458] sm:$0xff]  }
  0x45   : > { %11429 = vmatpush3.bf16.msra.mxu1 %v12584_v63  ;;  %11408 = vmatprep.subr.bf16.mxu0 %v12585_v0  ;;  %v587_v63 = vld [vmem:[%s13704_s23 + $0x360] sm:$0xff]  ;;  %v489_v0 = vld [vmem:[%s13704_s23 + $0x50] sm:$0xff] }
  0x46   : > { %11430 = vmatprep.subr.bf16.mxu1 %v12586_v1  ;;  %v589_v1 = vld [vmem:[%s13704_s23 + $0x370] sm:$0xff] }
  0x48   : > { %11409 = vmatpush3.bf16.msra.mxu0 %v12587_v2  ;;  %v2287_v2 = vpack.c.bf16 %v587_v63, %v487_v61  ;;  %v12674_v61 = vld [vmem:[%s16867_s2 + $0x4d8] sm:$0xff]  }
  0x49   : > { %11431 = vmatpush3.bf16.msra.mxu1 %v12588_v3  ;;  %11410 = vmatprep.subr.bf16.mxu0 %v12589_v4  ;;  %v2289_v3 = vpack.c.bf16 %v589_v1, %v489_v0  ;;  %v12629_v4 = vld [vmem:[%s16867_s2 + $0x340] sm:$0xff]   ;;  %v12676_v63 = vld [vmem:[%s16867_s2 + $0x498] sm:$0xff]  }
  0x4a   : > { %11432 = vmatprep.subr.bf16.mxu1 %v12590_v5  ;;  %v12630_v5 = vld [vmem:[%s16867_s2 + $0x3c0] sm:$0xff]  }
  0x4b   : > { %v12677_v0 = vld [vmem:[%s16867_s2 + $0x460] sm:$0xff]  }
  0x4c   : > { %11411 = vmatpush3.bf16.msra.mxu0 %v12591_v6  ;;  %v12631_v6 = vld [vmem:[%s16867_s2 + $0x300] sm:$0xff]  }
  0x4d   : > { %11433 = vmatpush3.bf16.msra.mxu1 %v12592_v7  ;;  %11412 = vmatprep.subr.bf16.mxu0 %v12593_v8  ;;  %v12632_v7 = vld [vmem:[%s16867_s2 + $0x380] sm:$0xff]   ;;  %v12633_v8 = vld [vmem:[%s16867_s2 + $0x348] sm:$0xff]  }
  0x4e   : > { %11434 = vmatprep.subr.bf16.mxu1 %v12594_v9  ;;  %v12634_v9 = vld [vmem:[%s16867_s2 + $0x3c8] sm:$0xff]   ;;  %v12678_v1 = vld [vmem:[%s16867_s2 + $0x4e0] sm:$0xff]  }
  0x50   : > { %11413 = vmatpush3.bf16.msra.mxu0 %v12595_v10  ;;  %v12635_v10 = vld [vmem:[%s16867_s2 + $0x308] sm:$0xff]  }
  0x51   : > { %11435 = vmatpush3.bf16.msra.mxu1 %v12596_v11  ;;  %11442 = vmatprep.subr.bf16.mxu0 %v12597_v24  ;;  %v12636_v11 = vld [vmem:[%s16867_s2 + $0x388] sm:$0xff]  }
  0x52   : > { %11464 = vmatprep.subr.bf16.mxu1 %v12598_v25  ;;  %v12649_v24 = vld [vmem:[%s16867_s2 + $0x368] sm:$0xff]  }
  0x53   : > { %7294 = vmatmul.mubr.bf16.vlgmr.msra.gmra.mrb[4].mxu0 %v2283_v21  ;;  %v12646_v21 = vld [vmem:[%s16867_s2 + $0x3e0] sm:$0xff]   ;;  %v12650_v25 = vld [vmem:[%s16867_s2 + $0x3e8] sm:$0xff]  }
  0x54   : > { %7335 = vmatmul.mubr.bf16.vlgmr.msra.gmra.mrb[4].mxu1 %v2285_v23  ;;  %11443 = vmatpush3.bf16.msra.mxu0 %v12599_v26  ;;  %v12648_v23 = vld [vmem:[%s16867_s2 + $0x3a0] sm:$0xff]   ;;  %v12651_v26 = vld [vmem:[%s16867_s2 + $0x328] sm:$0xff]  }
  0x55   : > { %11465 = vmatpush3.bf16.msra.mxu1 %v12600_v27  ;;  %11444 = vmatprep.subr.bf16.mxu0 %v12601_v28  ;;  %v12652_v27 = vld [vmem:[%s16867_s2 + $0x3a8] sm:$0xff]   ;;  %v12653_v28 = vld [vmem:[%s16867_s2 + $0x370] sm:$0xff]  }
  0x56   : > { %11466 = vmatprep.subr.bf16.mxu1 %v12602_v29  ;;  %7375 = vmatprep.mubr.bf16.mxu0 %v2288_v58  ;;  %v12654_v29 = vld [vmem:[%s16867_s2 + $0x3f0] sm:$0xff]  }
  0x57   : > { %7416 = vmatprep.mubr.bf16.mxu1 %v2290_v62  ;;  %v12671_v58 = vld [vmem:[%s16867_s2 + $0x410] sm:$0xff]   ;;  %v12675_v62 = vld [vmem:[%s16867_s2 + $0x418] sm:$0xff]  }
  0x58   : > { %11445 = vmatpush3.bf16.msra.mxu0 %v12603_v30  ;;  %v12655_v30 = vld [vmem:[%s16867_s2 + $0x330] sm:$0xff]  }
  0x59   : > { %11467 = vmatpush3.bf16.msra.mxu1 %v12604_v31  ;;  %11446 = vmatprep.subr.bf16.mxu0 %v12605_v32  ;;  %v12656_v31 = vld [vmem:[%s16867_s2 + $0x3b0] sm:$0xff]   ;;  %v12657_v32 = vld [vmem:[%s16867_s2 + $0x378] sm:$0xff]  }
  0x5a   : > { %11468 = vmatprep.subr.bf16.mxu1 %v12606_v33  ;;  %v12658_v33 = vld [vmem:[%s16867_s2 + $0x3f8] sm:$0xff]  }
  0x5c   : > { %11447 = vmatpush3.bf16.msra.mxu0 %v12607_v34  ;;  %v12659_v34 = vld [vmem:[%s16867_s2 + $0x338] sm:$0xff]  }
  0x5d   : > { %11469 = vmatpush3.bf16.msra.mxu1 %v12608_v35  ;;  %11448 = vmatprep.subr.bf16.mxu0 %v12609_v36  ;;  %v12660_v35 = vld [vmem:[%s16867_s2 + $0x3b8] sm:$0xff]   ;;  %v492_v36 = vld [vmem:[%s13704_s23 + $0x68] sm:$0xff] }
  0x5e   : > { %11470 = vmatprep.subr.bf16.mxu1 %v12610_v37  ;;  %v592_v37 = vld [vmem:[%s13704_s23 + $0x388] sm:$0xff] }
  0x60   : > { %11449 = vmatpush3.bf16.msra.mxu0 %v12611_v38  ;;  %v494_v38 = vld [vmem:[%s13704_s23 + $0x78] sm:$0xff] }
  0x61   : > { %11471 = vmatpush3.bf16.msra.mxu1 %v12612_v39  ;;  %11450 = vmatprep.subr.bf16.mxu0 %v12613_v40  ;;  %v2292_v39 = vpack.c.bf16 %v592_v37, %v492_v36  ;;  %v594_v40 = vld [vmem:[%s13704_s23 + $0x398] sm:$0xff]  ;;  %v12701_v36 = vld [vmem:[%s16867_s2 + $0x550] sm:$0xff]  }
  0x62   : > { %11472 = vmatprep.subr.bf16.mxu1 %v12614_v41  ;;  %v491_v41 = vld [vmem:[%s13704_s23 + $0x60] sm:$0xff]  ;;  %v12702_v37 = vld [vmem:[%s16867_s2 + $0x5d0] sm:$0xff]  }
  0x64   : > { %11451 = vmatpush3.bf16.msra.mxu0 %v12615_v42  ;;  %v591_v42 = vld [vmem:[%s13704_s23 + $0x380] sm:$0xff] }
  0x65   : > { %11473 = vmatpush3.bf16.msra.mxu1 %v12616_v43  ;;  %11452 = vmatprep.subr.bf16.mxu0 %v12617_v44  ;;  %v2294_v43 = vpack.c.bf16 %v594_v40, %v494_v38  ;;  %v2291_v44 = vpack.c.bf16 %v591_v42, %v491_v41  ;;  %v12703_v38 = vld [vmem:[%s16867_s2 + $0x510] sm:$0xff]   ;;  %v12705_v40 = vld [vmem:[%s16867_s2 + $0x558] sm:$0xff]  }
  0x66   : > { %11474 = vmatprep.subr.bf16.mxu1 %v12618_v45  ;;  %v493_v45 = vld [vmem:[%s13704_s23 + $0x70] sm:$0xff]  ;;  %v12706_v41 = vld [vmem:[%s16867_s2 + $0x5d8] sm:$0xff]  }
  0x67   : > { %v12707_v42 = vld [vmem:[%s16867_s2 + $0x518] sm:$0xff]  }
  0x68   : > { %11453 = vmatpush3.bf16.msra.mxu0 %v12619_v46  ;;  %v593_v46 = vld [vmem:[%s13704_s23 + $0x390] sm:$0xff] }
  0x69   : > { %11475 = vmatpush3.bf16.msra.mxu1 %v12620_v47  ;;  %11454 = vmatprep.subr.bf16.mxu0 %v12621_v48  ;;  %v2293_v47 = vpack.c.bf16 %v593_v46, %v493_v45  ;;  %v12661_v48 = vld [vmem:[%s16867_s2 + $0x440] sm:$0xff]  }
  0x6a   : > { %11476 = vmatprep.subr.bf16.mxu1 %v12622_v49  ;;  %v12662_v49 = vld [vmem:[%s16867_s2 + $0x4c0] sm:$0xff]  }
  0x6b   : > { %v12710_v45 = vld [vmem:[%s16867_s2 + $0x5e0] sm:$0xff]  }
  0x6c   : > { %11455 = vmatpush3.bf16.msra.mxu0 %v12623_v50  ;;  %v12663_v50 = vld [vmem:[%s16867_s2 + $0x400] sm:$0xff]  }
  0x6d   : > { %11477 = vmatpush3.bf16.msra.mxu1 %v12624_v51  ;;  %11456 = vmatprep.subr.bf16.mxu0 %v12625_v52  ;;  %v12664_v51 = vld [vmem:[%s16867_s2 + $0x480] sm:$0xff]   ;;  %v12665_v52 = vld [vmem:[%s16867_s2 + $0x448] sm:$0xff]  }
  0x6e   : > { %11478 = vmatprep.subr.bf16.mxu1 %v12626_v53  ;;  %v12666_v53 = vld [vmem:[%s16867_s2 + $0x4c8] sm:$0xff]   ;;  %v12711_v46 = vld [vmem:[%s16867_s2 + $0x520] sm:$0xff]  }
  0x70   : > { %11457 = vmatpush3.bf16.msra.mxu0 %v12627_v54  ;;  %v12667_v54 = vld [vmem:[%s16867_s2 + $0x408] sm:$0xff]  }
  0x71   : > { %11479 = vmatpush3.bf16.msra.mxu1 %v12628_v55  ;;  %11486 = vmatprep.subr.bf16.mxu0 %v12629_v4  ;;  %v12668_v55 = vld [vmem:[%s16867_s2 + $0x488] sm:$0xff]  }
  0x72   : > { %11508 = vmatprep.subr.bf16.mxu1 %v12630_v5  ;;  %v12681_v4 = vld [vmem:[%s16867_s2 + $0x468] sm:$0xff]  }
  0x73   : > { %7376 = vmatmul.mubr.bf16.vlgmr.msra.gmra.mrb[8].mxu0 %v2287_v2  ;;  %v12679_v2 = vld [vmem:[%s16867_s2 + $0x420] sm:$0xff]   ;;  %v12682_v5 = vld [vmem:[%s16867_s2 + $0x4e8] sm:$0xff]  }
  0x74   : > { %7417 = vmatmul.mubr.bf16.vlgmr.msra.gmra.mrb[8].mxu1 %v2289_v3  ;;  %11487 = vmatpush3.bf16.msra.mxu0 %v12631_v6  ;;  %v12680_v3 = vld [vmem:[%s16867_s2 + $0x4a0] sm:$0xff]   ;;  %v12683_v6 = vld [vmem:[%s16867_s2 + $0x428] sm:$0xff]  }
  0x75   : > { %11509 = vmatpush3.bf16.msra.mxu1 %v12632_v7  ;;  %11488 = vmatprep.subr.bf16.mxu0 %v12633_v8  ;;  %v12684_v7 = vld [vmem:[%s16867_s2 + $0x4a8] sm:$0xff]   ;;  %v12685_v8 = vld [vmem:[%s16867_s2 + $0x470] sm:$0xff]  }
  0x76   : > { %11510 = vmatprep.subr.bf16.mxu1 %v12634_v9  ;;  %7457 = vmatprep.mubr.bf16.mxu0 %v2292_v39  ;;  %v12686_v9 = vld [vmem:[%s16867_s2 + $0x4f0] sm:$0xff]  }
  0x77   : > { %7498 = vmatprep.mubr.bf16.mxu1 %v2294_v43  ;;  %v12704_v39 = vld [vmem:[%s16867_s2 + $0x590] sm:$0xff]   ;;  %v12708_v43 = vld [vmem:[%s16867_s2 + $0x598] sm:$0xff]  }
  0x78   : > { %11489 = vmatpush3.bf16.msra.mxu0 %v12635_v10  ;;  %v12687_v10 = vld [vmem:[%s16867_s2 + $0x430] sm:$0xff]  }
  0x79   : > { %11511 = vmatpush3.bf16.msra.mxu1 %v12636_v11  ;;  %11490 = vmatprep.subr.bf16.mxu0 %v12637_v12  ;;  %v12688_v11 = vld [vmem:[%s16867_s2 + $0x4b0] sm:$0xff]   ;;  %v12689_v12 = vld [vmem:[%s16867_s2 + $0x478] sm:$0xff]  }
  0x7a   : > { %11512 = vmatprep.subr.bf16.mxu1 %v12638_v13  ;;  %v12690_v13 = vld [vmem:[%s16867_s2 + $0x4f8] sm:$0xff]  }
  0x7c   : > { %11491 = vmatpush3.bf16.msra.mxu0 %v12639_v14  ;;  %v12691_v14 = vld [vmem:[%s16867_s2 + $0x438] sm:$0xff]  }
  0x7d   : > { %11513 = vmatpush3.bf16.msra.mxu1 %v12640_v15  ;;  %11492 = vmatprep.subr.bf16.mxu0 %v12641_v16  ;;  %v12692_v15 = vld [vmem:[%s16867_s2 + $0x4b8] sm:$0xff]   ;;  %v496_v16 = vld [vmem:[%s13704_s23 + $0x88] sm:$0xff] }
  0x7e   : > { %11514 = vmatprep.subr.bf16.mxu1 %v12642_v17  ;;  %v596_v17 = vld [vmem:[%s13704_s23 + $0x3a8] sm:$0xff] }
  0x80   : > { %11493 = vmatpush3.bf16.msra.mxu0 %v12643_v18  ;;  %v498_v18 = vld [vmem:[%s13704_s23 + $0x98] sm:$0xff] }
  0x81   : > { %11515 = vmatpush3.bf16.msra.mxu1 %v12644_v19  ;;  %11494 = vmatprep.subr.bf16.mxu0 %v12645_v20  ;;  %v598_v19 = vld [vmem:[%s13704_s23 + $0x3b8] sm:$0xff]  ;;  %v2296_v20 = vpack.c.bf16 %v596_v17, %v496_v16  ;;  %v12733_v16 = vld [vmem:[%s16867_s2 + $0x650] sm:$0xff]  }
  0x82   : > { %11516 = vmatprep.subr.bf16.mxu1 %v12646_v21  ;;  %v2298_v21 = vpack.c.bf16 %v598_v19, %v498_v18  ;;  %v12734_v17 = vld [vmem:[%s16867_s2 + $0x6d0] sm:$0xff]  }
  0x83   : > { %v12735_v18 = vld [vmem:[%s16867_s2 + $0x610] sm:$0xff]  }
  0x84   : > { %11495 = vmatpush3.bf16.msra.mxu0 %v12647_v22  ;;  %v495_v22 = vld [vmem:[%s13704_s23 + $0x80] sm:$0xff]  ;;  %v12736_v19 = vld [vmem:[%s16867_s2 + $0x690] sm:$0xff]  }
  0x85   : > { %11517 = vmatpush3.bf16.msra.mxu1 %v12648_v23  ;;  %11496 = vmatprep.subr.bf16.mxu0 %v12649_v24  ;;  %v595_v23 = vld [vmem:[%s13704_s23 + $0x3a0] sm:$0xff]  ;;  %v497_v24 = vld [vmem:[%s13704_s23 + $0x90] sm:$0xff] }
  0x86   : > { %11518 = vmatprep.subr.bf16.mxu1 %v12650_v25  ;;  %v2295_v25 = vpack.c.bf16 %v595_v23, %v495_v22  ;;  %v12739_v22 = vld [vmem:[%s16867_s2 + $0x618] sm:$0xff]  }
  0x87   : > { %v12740_v23 = vld [vmem:[%s16867_s2 + $0x698] sm:$0xff]  }
  0x88   : > { %11497 = vmatpush3.bf16.msra.mxu0 %v12651_v26  ;;  %v597_v26 = vld [vmem:[%s13704_s23 + $0x3b0] sm:$0xff] }
  0x89   : > { %11519 = vmatpush3.bf16.msra.mxu1 %v12652_v27  ;;  %11498 = vmatprep.subr.bf16.mxu0 %v12653_v28  ;;  %v2297_v27 = vpack.c.bf16 %v597_v26, %v497_v24  ;;  %v12693_v28 = vld [vmem:[%s16867_s2 + $0x540] sm:$0xff]  }
  0x8a   : > { %11520 = vmatprep.subr.bf16.mxu1 %v12654_v29  ;;  %v12694_v29 = vld [vmem:[%s16867_s2 + $0x5c0] sm:$0xff]  }
  0x8b   : > { %v12741_v24 = vld [vmem:[%s16867_s2 + $0x660] sm:$0xff]  }
  0x8c   : > { %11499 = vmatpush3.bf16.msra.mxu0 %v12655_v30  ;;  %v12695_v30 = vld [vmem:[%s16867_s2 + $0x500] sm:$0xff]  }
  0x8d   : > { %11521 = vmatpush3.bf16.msra.mxu1 %v12656_v31  ;;  %11500 = vmatprep.subr.bf16.mxu0 %v12657_v32  ;;  %v12696_v31 = vld [vmem:[%s16867_s2 + $0x580] sm:$0xff]   ;;  %v12697_v32 = vld [vmem:[%s16867_s2 + $0x548] sm:$0xff]  }
  0x8e   : > { %11522 = vmatprep.subr.bf16.mxu1 %v12658_v33  ;;  %v12698_v33 = vld [vmem:[%s16867_s2 + $0x5c8] sm:$0xff]   ;;  %v12743_v26 = vld [vmem:[%s16867_s2 + $0x620] sm:$0xff]  }
  0x90   : > { %11501 = vmatpush3.bf16.msra.mxu0 %v12659_v34  ;;  %v12699_v34 = vld [vmem:[%s16867_s2 + $0x508] sm:$0xff]  }
  0x91   : > { %11523 = vmatpush3.bf16.msra.mxu1 %v12660_v35  ;;  %11530 = vmatprep.subr.bf16.mxu0 %v12661_v48  ;;  %v12700_v35 = vld [vmem:[%s16867_s2 + $0x588] sm:$0xff]  }
  0x92   : > { %11552 = vmatprep.subr.bf16.mxu1 %v12662_v49  ;;  %v12713_v48 = vld [vmem:[%s16867_s2 + $0x568] sm:$0xff]  }
  0x93   : > { %7458 = vmatmul.mubr.bf16.vlgmr.msra.gmra.mrb[12].mxu0 %v2291_v44  ;;  %v12709_v44 = vld [vmem:[%s16867_s2 + $0x560] sm:$0xff]   ;;  %v12714_v49 = vld [vmem:[%s16867_s2 + $0x5e8] sm:$0xff]  }
  0x94   : > { %7499 = vmatmul.mubr.bf16.vlgmr.msra.gmra.mrb[12].mxu1 %v2293_v47  ;;  %11531 = vmatpush3.bf16.msra.mxu0 %v12663_v50  ;;  %v12712_v47 = vld [vmem:[%s16867_s2 + $0x5a0] sm:$0xff]   ;;  %v12715_v50 = vld [vmem:[%s16867_s2 + $0x528] sm:$0xff]  }
  0x95   : > { %11553 = vmatpush3.bf16.msra.mxu1 %v12664_v51  ;;  %11532 = vmatprep.subr.bf16.mxu0 %v12665_v52  ;;  %v12716_v51 = vld [vmem:[%s16867_s2 + $0x5a8] sm:$0xff]   ;;  %v12717_v52 = vld [vmem:[%s16867_s2 + $0x570] sm:$0xff]  }
  0x96   : > { %11554 = vmatprep.subr.bf16.mxu1 %v12666_v53  ;;  %7539 = vmatprep.mubr.bf16.mxu0 %v2296_v20  ;;  %v12718_v53 = vld [vmem:[%s16867_s2 + $0x5f0] sm:$0xff]   ;;  %v12737_v20 = vld [vmem:[%s16867_s2 + $0x658] sm:$0xff]  }
  0x97   : > { %7580 = vmatprep.mubr.bf16.mxu1 %v2298_v21  ;;  %v12738_v21 = vld [vmem:[%s16867_s2 + $0x6d8] sm:$0xff]  }
  0x98   : > { %11533 = vmatpush3.bf16.msra.mxu0 %v12667_v54  ;;  %v12719_v54 = vld [vmem:[%s16867_s2 + $0x530] sm:$0xff]  }
  0x99   : > { %11555 = vmatpush3.bf16.msra.mxu1 %v12668_v55  ;;  %11534 = vmatprep.subr.bf16.mxu0 %v12669_v56  ;;  %v12720_v55 = vld [vmem:[%s16867_s2 + $0x5b0] sm:$0xff]   ;;  %v12721_v56 = vld [vmem:[%s16867_s2 + $0x578] sm:$0xff]  }
  0x9a   : > { %11556 = vmatprep.subr.bf16.mxu1 %v12670_v57  ;;  %v12722_v57 = vld [vmem:[%s16867_s2 + $0x5f8] sm:$0xff]  }
  0x9c   : > { %11535 = vmatpush3.bf16.msra.mxu0 %v12671_v58  ;;  %v12723_v58 = vld [vmem:[%s16867_s2 + $0x538] sm:$0xff]  }
  0x9d   : > { %11557 = vmatpush3.bf16.msra.mxu1 %v12672_v59  ;;  %11536 = vmatprep.subr.bf16.mxu0 %v12673_v60  ;;  %v12724_v59 = vld [vmem:[%s16867_s2 + $0x5b8] sm:$0xff]   ;;  %v500_v60 = vld [vmem:[%s13704_s23 + $0xa8] sm:$0xff] }
  0x9e   : > { %11558 = vmatprep.subr.bf16.mxu1 %v12674_v61  ;;  %v600_v61 = vld [vmem:[%s13704_s23 + $0x3c8] sm:$0xff] }
  0xa0   : > { %11537 = vmatpush3.bf16.msra.mxu0 %v12675_v62  ;;  %v2300_v62 = vpack.c.bf16 %v600_v61, %v500_v60  ;;  %v12763_v60 = vld [vmem:[%s16867_s2 + $0x708] sm:$0xff]  }
  0xa1   : > { %11559 = vmatpush3.bf16.msra.mxu1 %v12676_v63  ;;  %11538 = vmatprep.subr.bf16.mxu0 %v12677_v0  ;;  %v502_v63 = vld [vmem:[%s13704_s23 + $0xb8] sm:$0xff] }
  0xa2   : > { %11560 = vmatprep.subr.bf16.mxu1 %v12678_v1  ;;  %v602_v0 = vld [vmem:[%s13704_s23 + $0x3d8] sm:$0xff]  ;;  %v499_v1 = vld [vmem:[%s13704_s23 + $0xa0] sm:$0xff] }
  0xa4   : > { %11539 = vmatpush3.bf16.msra.mxu0 %v12679_v2  ;;  %v2302_v2 = vpack.c.bf16 %v602_v0, %v502_v63 }
  0xa5   : > { %11561 = vmatpush3.bf16.msra.mxu1 %v12680_v3  ;;  %11540 = vmatprep.subr.bf16.mxu0 %v12681_v4  ;;  %v599_v3 = vld [vmem:[%s13704_s23 + $0x3c0] sm:$0xff]  ;;  %v501_v4 = vld [vmem:[%s13704_s23 + $0xb0] sm:$0xff] }
  0xa6   : > { %11562 = vmatprep.subr.bf16.mxu1 %v12682_v5  ;;  %v601_v5 = vld [vmem:[%s13704_s23 + $0x3d0] sm:$0xff] }
  0xa8   : > { %11541 = vmatpush3.bf16.msra.mxu0 %v12683_v6  ;;  %v2299_v6 = vpack.c.bf16 %v599_v3, %v499_v1  ;;  %v12765_v1 = vld [vmem:[%s16867_s2 + $0x750] sm:$0xff]  }
  0xa9   : > { %11563 = vmatpush3.bf16.msra.mxu1 %v12684_v7  ;;  %11542 = vmatprep.subr.bf16.mxu0 %v12685_v8  ;;  %v2301_v7 = vpack.c.bf16 %v601_v5, %v501_v4  ;;  %v12725_v8 = vld [vmem:[%s16867_s2 + $0x640] sm:$0xff]   ;;  %v12766_v4 = vld [vmem:[%s16867_s2 + $0x7d0] sm:$0xff]  }
  0xaa   : > { %11564 = vmatprep.subr.bf16.mxu1 %v12686_v9  ;;  %v12726_v9 = vld [vmem:[%s16867_s2 + $0x6c0] sm:$0xff]  }
  0xac   : > { %11543 = vmatpush3.bf16.msra.mxu0 %v12687_v10  ;;  %v12727_v10 = vld [vmem:[%s16867_s2 + $0x600] sm:$0xff]  }
  0xad   : > { %11565 = vmatpush3.bf16.msra.mxu1 %v12688_v11  ;;  %11544 = vmatprep.subr.bf16.mxu0 %v12689_v12  ;;  %v12728_v11 = vld [vmem:[%s16867_s2 + $0x680] sm:$0xff]   ;;  %v12729_v12 = vld [vmem:[%s16867_s2 + $0x648] sm:$0xff]  }
  0xae   : > { %11566 = vmatprep.subr.bf16.mxu1 %v12690_v13  ;;  %v12730_v13 = vld [vmem:[%s16867_s2 + $0x6c8] sm:$0xff]  }
  0xb0   : > { %11545 = vmatpush3.bf16.msra.mxu0 %v12691_v14  ;;  %v12731_v14 = vld [vmem:[%s16867_s2 + $0x608] sm:$0xff]  }
  0xb1   : > { %11567 = vmatpush3.bf16.msra.mxu1 %v12692_v15  ;;  %11574 = vmatprep.subr.bf16.mxu0 %v12693_v28  ;;  %v12732_v15 = vld [vmem:[%s16867_s2 + $0x688] sm:$0xff]  }
  0xb2   : > { %11596 = vmatprep.subr.bf16.mxu1 %v12694_v29  ;;  %v12745_v28 = vld [vmem:[%s16867_s2 + $0x668] sm:$0xff]  }
  0xb3   : > { %7540 = vmatmul.mubr.bf16.vlgmr.msra.gmra.mrb[16].mxu0 %v2295_v25  ;;  %v12742_v25 = vld [vmem:[%s16867_s2 + $0x6e0] sm:$0xff]   ;;  %v12746_v29 = vld [vmem:[%s16867_s2 + $0x6e8] sm:$0xff]  }
  0xb4   : > { %7581 = vmatmul.mubr.bf16.vlgmr.msra.gmra.mrb[16].mxu1 %v2297_v27  ;;  %11575 = vmatpush3.bf16.msra.mxu0 %v12695_v30  ;;  %v12744_v27 = vld [vmem:[%s16867_s2 + $0x6a0] sm:$0xff]   ;;  %v12747_v30 = vld [vmem:[%s16867_s2 + $0x628] sm:$0xff]  }
  0xb5   : > { %11597 = vmatpush3.bf16.msra.mxu1 %v12696_v31  ;;  %11576 = vmatprep.subr.bf16.mxu0 %v12697_v32  ;;  %v12748_v31 = vld [vmem:[%s16867_s2 + $0x6a8] sm:$0xff]   ;;  %v12749_v32 = vld [vmem:[%s16867_s2 + $0x670] sm:$0xff]  }
  0xb6   : > { %11598 = vmatprep.subr.bf16.mxu1 %v12698_v33  ;;  %7621 = vmatprep.mubr.bf16.mxu0 %v2300_v62  ;;  %v12750_v33 = vld [vmem:[%s16867_s2 + $0x6f0] sm:$0xff]   ;;  %v12764_v62 = vld [vmem:[%s16867_s2 + $0x788] sm:$0xff]  }
  0xb7   : > { %7662 = vmatprep.mubr.bf16.mxu1 %v2302_v2 }
  0xb8   : > { %11577 = vmatpush3.bf16.msra.mxu0 %v12699_v34  ;;  %v12751_v34 = vld [vmem:[%s16867_s2 + $0x630] sm:$0xff]  }
  0xb9   : > { %11599 = vmatpush3.bf16.msra.mxu1 %v12700_v35  ;;  %11578 = vmatprep.subr.bf16.mxu0 %v12701_v36  ;;  %v12752_v35 = vld [vmem:[%s16867_s2 + $0x6b0] sm:$0xff]   ;;  %v12753_v36 = vld [vmem:[%s16867_s2 + $0x678] sm:$0xff]  }
  0xba   : > { %11600 = vmatprep.subr.bf16.mxu1 %v12702_v37  ;;  %v12754_v37 = vld [vmem:[%s16867_s2 + $0x6f8] sm:$0xff]  }
  0xbc   : > { %11579 = vmatpush3.bf16.msra.mxu0 %v12703_v38  ;;  %v12755_v38 = vld [vmem:[%s16867_s2 + $0x638] sm:$0xff]  }
  0xbd   : > { %11601 = vmatpush3.bf16.msra.mxu1 %v12704_v39  ;;  %11580 = vmatprep.subr.bf16.mxu0 %v12705_v40  ;;  %v12756_v39 = vld [vmem:[%s16867_s2 + $0x6b8] sm:$0xff]   ;;  %v504_v40 = vld [vmem:[%s13704_s23 + $0xc8] sm:$0xff] }
  0xbe   : > { %11602 = vmatprep.subr.bf16.mxu1 %v12706_v41  ;;  %v604_v41 = vld [vmem:[%s13704_s23 + $0x3e8] sm:$0xff] }
  0xc0   : > { %11581 = vmatpush3.bf16.msra.mxu0 %v12707_v42  ;;  %v506_v42 = vld [vmem:[%s13704_s23 + $0xd8] sm:$0xff] }
  0xc1   : > { %11603 = vmatpush3.bf16.msra.mxu1 %v12708_v43  ;;  %11582 = vmatprep.subr.bf16.mxu0 %v12709_v44  ;;  %v2304_v43 = vpack.c.bf16 %v604_v41, %v504_v40  ;;  %v606_v44 = vld [vmem:[%s13704_s23 + $0x3f8] sm:$0xff]  ;;  %v507_v40 = vld [vmem:[%s13704_s23 + $0xe0] sm:$0xff] }
  0xc2   : > { %11604 = vmatprep.subr.bf16.mxu1 %v12710_v45  ;;  %v503_v45 = vld [vmem:[%s13704_s23 + $0xc0] sm:$0xff] }
  0xc3   : > { %v607_v41 = vld [vmem:[%s13704_s23 + $0x400] sm:$0xff] }
  0xc4   : > { %11583 = vmatpush3.bf16.msra.mxu0 %v12711_v46  ;;  %v603_v46 = vld [vmem:[%s13704_s23 + $0x3e0] sm:$0xff] }
  0xc5   : > { %11605 = vmatpush3.bf16.msra.mxu1 %v12712_v47  ;;  %11584 = vmatprep.subr.bf16.mxu0 %v12713_v48  ;;  %v2306_v47 = vpack.c.bf16 %v606_v44, %v506_v42  ;;  %v2303_v48 = vpack.c.bf16 %v603_v46, %v503_v45  ;;  %v509_v42 = vld [vmem:[%s13704_s23 + $0xf0] sm:$0xff]  ;;  %v12789_v46 = vld [vmem:[%s16867_s2 + $0x840] sm:$0xff]  }
  0xc6   : > { %11606 = vmatprep.subr.bf16.mxu1 %v12714_v49  ;;  %v505_v49 = vld [vmem:[%s13704_s23 + $0xd0] sm:$0xff] }
  0xc7   : > { %v609_v44 = vld [vmem:[%s13704_s23 + $0x410] sm:$0xff] }
  0xc8   : > { %11585 = vmatpush3.bf16.msra.mxu0 %v12715_v50  ;;  %v605_v50 = vld [vmem:[%s13704_s23 + $0x3f0] sm:$0xff]  ;;  %v2309_v45 = vpack.c.bf16 %v609_v44, %v509_v42  ;;  %v12821_v42 = vld [vmem:[%s16867_s2 + $0x940] sm:$0xff]  }
  0xc9   : > { %11607 = vmatpush3.bf16.msra.mxu1 %v12716_v51  ;;  %11586 = vmatprep.subr.bf16.mxu0 %v12717_v52  ;;  %v2305_v51 = vpack.c.bf16 %v605_v50, %v505_v49  ;;  %v12757_v52 = vld [vmem:[%s16867_s2 + $0x740] sm:$0xff]   ;;  %v12793_v50 = vld [vmem:[%s16867_s2 + $0x848] sm:$0xff]  }
  0xca   : > { %11608 = vmatprep.subr.bf16.mxu1 %v12718_v53  ;;  %v12758_v53 = vld [vmem:[%s16867_s2 + $0x7c0] sm:$0xff]  }
  0xcb   : > { %v12792_v49 = vld [vmem:[%s16867_s2 + $0x880] sm:$0xff]  }
  0xcc   : > { %11587 = vmatpush3.bf16.msra.mxu0 %v12719_v54  ;;  %v12759_v54 = vld [vmem:[%s16867_s2 + $0x700] sm:$0xff]  }
  0xcd   : > { %11609 = vmatpush3.bf16.msra.mxu1 %v12720_v55  ;;  %11588 = vmatprep.subr.bf16.mxu0 %v12721_v56  ;;  %v12760_v55 = vld [vmem:[%s16867_s2 + $0x780] sm:$0xff]   ;;  %v12761_v56 = vld [vmem:[%s16867_s2 + $0x748] sm:$0xff]  }
  0xce   : > { %11610 = vmatprep.subr.bf16.mxu1 %v12722_v57  ;;  %v12823_v44 = vld [vmem:[%s16867_s2 + $0x900] sm:$0xff]  }
  0xd0   : > { %11589 = vmatpush3.bf16.msra.mxu0 %v12723_v58  ;;  %v12762_v58 = vld [vmem:[%s16867_s2 + $0x7c8] sm:$0xff]  }
  0xd1   : > { %11611 = vmatpush3.bf16.msra.mxu1 %v12724_v59  ;;  %11618 = vmatprep.subr.bf16.mxu0 %v12725_v8 }
  0xd2   : > { %11640 = vmatprep.subr.bf16.mxu1 %v12726_v9  ;;  %v12768_v9 = vld [vmem:[%s16867_s2 + $0x790] sm:$0xff]  }
  0xd3   : > { %7622 = vmatmul.mubr.bf16.vlgmr.msra.gmra.mrb[20].mxu0 %v2299_v6  ;;  %v12767_v6 = vld [vmem:[%s16867_s2 + $0x710] sm:$0xff]  }
  0xd4   : > { %7663 = vmatmul.mubr.bf16.vlgmr.msra.gmra.mrb[20].mxu1 %v2301_v7  ;;  %11619 = vmatpush3.bf16.msra.mxu0 %v12727_v10 }
  0xd5   : > { %11641 = vmatpush3.bf16.msra.mxu1 %v12728_v11  ;;  %11620 = vmatprep.subr.bf16.mxu0 %v12729_v12  ;;  %v12769_v12 = vld [vmem:[%s16867_s2 + $0x758] sm:$0xff]  }
  0xd6   : > { %11642 = vmatprep.subr.bf16.mxu1 %v12730_v13  ;;  %7703 = vmatprep.mubr.bf16.mxu0 %v2304_v43  ;;  %v2307_v43 = vpack.c.bf16 %v607_v41, %v507_v40 }
  0xd7   : > { %7744 = vmatprep.mubr.bf16.mxu1 %v2306_v47  ;;  %v12790_v47 = vld [vmem:[%s16867_s2 + $0x8c0] sm:$0xff]  }
  0xd8   : > { %11621 = vmatpush3.bf16.msra.mxu0 %v12731_v14  ;;  %v12770_v14 = vld [vmem:[%s16867_s2 + $0x7d8] sm:$0xff]  }
  0xd9   : > { %11643 = vmatpush3.bf16.msra.mxu1 %v12732_v15  ;;  %11622 = vmatprep.subr.bf16.mxu0 %v12733_v16  ;;  %v12771_v15 = vld [vmem:[%s16867_s2 + $0x718] sm:$0xff]  }
  0xda   : > { %11644 = vmatprep.subr.bf16.mxu1 %v12734_v17  ;;  %v12772_v17 = vld [vmem:[%s16867_s2 + $0x798] sm:$0xff]  }
  0xdc   : > { %11623 = vmatpush3.bf16.msra.mxu0 %v12735_v18  ;;  %v12773_v18 = vld [vmem:[%s16867_s2 + $0x760] sm:$0xff]  }
  0xdd   : > { %11645 = vmatpush3.bf16.msra.mxu1 %v12736_v19  ;;  %11624 = vmatprep.subr.bf16.mxu0 %v12737_v20  ;;  %v12774_v19 = vld [vmem:[%s16867_s2 + $0x7e0] sm:$0xff]  }
  0xde   : > { %11646 = vmatprep.subr.bf16.mxu1 %v12738_v21  ;;  %v12775_v20 = vld [vmem:[%s16867_s2 + $0x720] sm:$0xff]  }
  0xdf   : > { %v12776_v21 = vld [vmem:[%s16867_s2 + $0x7a0] sm:$0xff]  }
  0xe0   : > { %11625 = vmatpush3.bf16.msra.mxu0 %v12739_v22  ;;  %v12777_v22 = vld [vmem:[%s16867_s2 + $0x768] sm:$0xff]  }
  0xe1   : > { %11647 = vmatpush3.bf16.msra.mxu1 %v12740_v23  ;;  %11626 = vmatprep.subr.bf16.mxu0 %v12741_v24  ;;  %v12778_v23 = vld [vmem:[%s16867_s2 + $0x7e8] sm:$0xff]  }
  0xe2   : > { %11648 = vmatprep.subr.bf16.mxu1 %v12742_v25  ;;  %v12779_v24 = vld [vmem:[%s16867_s2 + $0x728] sm:$0xff]  }
  0xe3   : > { %v12780_v25 = vld [vmem:[%s16867_s2 + $0x7a8] sm:$0xff]  }
  0xe4   : > { %11627 = vmatpush3.bf16.msra.mxu0 %v12743_v26  ;;  %v12781_v26 = vld [vmem:[%s16867_s2 + $0x770] sm:$0xff]  }
  0xe5   : > { %11649 = vmatpush3.bf16.msra.mxu1 %v12744_v27  ;;  %11628 = vmatprep.subr.bf16.mxu0 %v12745_v28  ;;  %v12782_v27 = vld [vmem:[%s16867_s2 + $0x7f0] sm:$0xff]  }
  0xe6   : > { %11650 = vmatprep.subr.bf16.mxu1 %v12746_v29  ;;  %v12783_v28 = vld [vmem:[%s16867_s2 + $0x730] sm:$0xff]  }
  0xe7   : > { %v12784_v29 = vld [vmem:[%s16867_s2 + $0x7b0] sm:$0xff]  }
  0xe8   : > { %11629 = vmatpush3.bf16.msra.mxu0 %v12747_v30  ;;  %v12785_v30 = vld [vmem:[%s16867_s2 + $0x778] sm:$0xff]  }
  0xe9   : > { %11651 = vmatpush3.bf16.msra.mxu1 %v12748_v31  ;;  %11630 = vmatprep.subr.bf16.mxu0 %v12749_v32  ;;  %v12786_v31 = vld [vmem:[%s16867_s2 + $0x7f8] sm:$0xff]  }
  0xea   : > { %11652 = vmatprep.subr.bf16.mxu1 %v12750_v33  ;;  %v12787_v32 = vld [vmem:[%s16867_s2 + $0x738] sm:$0xff]  }
  0xeb   : > { %v12788_v33 = vld [vmem:[%s16867_s2 + $0x7b8] sm:$0xff]  }
  0xec   : > { %11631 = vmatpush3.bf16.msra.mxu0 %v12751_v34  ;;  %v508_v34 = vld [vmem:[%s13704_s23 + $0xe8] sm:$0xff] }
  0xed   : > { %11653 = vmatpush3.bf16.msra.mxu1 %v12752_v35  ;;  %11632 = vmatprep.subr.bf16.mxu0 %v12753_v36  ;;  %v608_v35 = vld [vmem:[%s13704_s23 + $0x408] sm:$0xff]  ;;  %v510_v36 = vld [vmem:[%s13704_s23 + $0xf8] sm:$0xff] }
  0xee   : > { %11654 = vmatprep.subr.bf16.mxu1 %v12754_v37  ;;  %v610_v37 = vld [vmem:[%s13704_s23 + $0x418] sm:$0xff] }
  0xf0   : > { %11633 = vmatpush3.bf16.msra.mxu0 %v12755_v38  ;;  %v2308_v38 = vpack.c.bf16 %v608_v35, %v508_v34  ;;  %v614_v34 = vld [vmem:[%s13704_s23 + $0x438] sm:$0xff]  ;;  %v511_v35 = vld [vmem:[%s13704_s23 + $0x100] sm:$0xff] }
  0xf1   : > { %11655 = vmatpush3.bf16.msra.mxu1 %v12756_v39  ;;  %11662 = vmatprep.subr.bf16.mxu0 %v12757_v52  ;;  %v2310_v39 = vpack.c.bf16 %v610_v37, %v510_v36  ;;  %v12794_v52 = vld [vmem:[%s16867_s2 + $0x8c8] sm:$0xff]   ;;  %v611_v37 = vld [vmem:[%s13704_s23 + $0x420] sm:$0xff] }
  0xf2   : > { %11684 = vmatprep.subr.bf16.mxu1 %v12758_v53  ;;  %v2311_v40 = vpack.c.bf16 %v611_v37, %v511_v35  ;;  %v517_v35 = vld [vmem:[%s13704_s23 + $0x130] sm:$0xff] }
  0xf3   : > { %7704 = vmatmul.mubr.bf16.vlgmr.msra.gmra.mrb[24].mxu0 %v2303_v48  ;;  %v12791_v48 = vld [vmem:[%s16867_s2 + $0x800] sm:$0xff]  }
  0xf4   : > { %7745 = vmatmul.mubr.bf16.vlgmr.msra.gmra.mrb[24].mxu1 %v2305_v51  ;;  %11663 = vmatpush3.bf16.msra.mxu0 %v12759_v54  ;;  %v12795_v54 = vld [vmem:[%s16867_s2 + $0x808] sm:$0xff]  }
  0xf5   : > { %11685 = vmatpush3.bf16.msra.mxu1 %v12760_v55  ;;  %11664 = vmatprep.subr.bf16.mxu0 %v12761_v56  ;;  %v12796_v56 = vld [vmem:[%s16867_s2 + $0x888] sm:$0xff]  }
  0xf6   : > { %11686 = vmatprep.subr.bf16.mxu1 %v12762_v58  ;;  %7785 = vmatprep.mubr.bf16.mxu0 %v2308_v38  ;;  %v513_v38 = vld [vmem:[%s13704_s23 + $0x110] sm:$0xff] }
  0xf7   : > { %7826 = vmatprep.mubr.bf16.mxu1 %v2310_v39  ;;  %v613_v39 = vld [vmem:[%s13704_s23 + $0x430] sm:$0xff] }
  0xf8   : > { %11665 = vmatpush3.bf16.msra.mxu0 %v12763_v60  ;;  %v2313_v41 = vpack.c.bf16 %v613_v39, %v513_v38  ;;  %v12853_v38 = vld [vmem:[%s16867_s2 + $0xa40] sm:$0xff]  }
  0xf9   : > { %11687 = vmatpush3.bf16.msra.mxu1 %v12764_v62  ;;  %11666 = vmatprep.subr.bf16.mxu0 %v12765_v1  ;;  %v12798_v62 = vld [vmem:[%s16867_s2 + $0x8d0] sm:$0xff]   ;;  %v12854_v39 = vld [vmem:[%s16867_s2 + $0xac0] sm:$0xff]  }
  0xfa   : > { %11688 = vmatprep.subr.bf16.mxu1 %v12766_v4  ;;  %v12799_v1 = vld [vmem:[%s16867_s2 + $0x810] sm:$0xff]  }
  0xfc   : > { %11667 = vmatpush3.bf16.msra.mxu0 %v12767_v6 }
  0xfd   : > { %11689 = vmatpush3.bf16.msra.mxu1 %v12768_v9  ;;  %11668 = vmatprep.subr.bf16.mxu0 %v12769_v12  ;;  %v12802_v9 = vld [vmem:[%s16867_s2 + $0x8d8] sm:$0xff]  }
  0xfe   : > { %11690 = vmatprep.subr.bf16.mxu1 %v12770_v14  ;;  %v12804_v12 = vld [vmem:[%s16867_s2 + $0x898] sm:$0xff]   ;;  %v12805_v14 = vld [vmem:[%s16867_s2 + $0x860] sm:$0xff]  }
 0x100   : > { %11669 = vmatpush3.bf16.msra.mxu0 %v12771_v15  ;;  %v12806_v15 = vld [vmem:[%s16867_s2 + $0x8e0] sm:$0xff]  }
 0x101   : > { %11691 = vmatpush3.bf16.msra.mxu1 %v12772_v17  ;;  %11670 = vmatprep.subr.bf16.mxu0 %v12773_v18  ;;  %v12808_v17 = vld [vmem:[%s16867_s2 + $0x8a0] sm:$0xff]   ;;  %v12809_v18 = vld [vmem:[%s16867_s2 + $0x868] sm:$0xff]  }
 0x102   : > { %11692 = vmatprep.subr.bf16.mxu1 %v12774_v19  ;;  %v12810_v19 = vld [vmem:[%s16867_s2 + $0x8e8] sm:$0xff]  }
 0x104   : > { %11671 = vmatpush3.bf16.msra.mxu0 %v12775_v20  ;;  %v12811_v20 = vld [vmem:[%s16867_s2 + $0x828] sm:$0xff]  }
 0x105   : > { %11693 = vmatpush3.bf16.msra.mxu1 %v12776_v21  ;;  %11672 = vmatprep.subr.bf16.mxu0 %v12777_v22  ;;  %v12812_v21 = vld [vmem:[%s16867_s2 + $0x8a8] sm:$0xff]   ;;  %v12813_v22 = vld [vmem:[%s16867_s2 + $0x870] sm:$0xff]  }
 0x106   : > { %v11370_v57 = vpop.f32.mrb[0].mxu0  ;;  %11694 = vmatprep.subr.bf16.mxu1 %v12778_v23  ;;  %v12814_v23 = vld [vmem:[%s16867_s2 + $0x8f0] sm:$0xff]  }
 0x107   : > { %v11392_v59 = vpop.f32.mrb[0].mxu1  ;;  %v11371_v61 = vpop.f32.mrb[1].mxu0 }
 0x108   : > { %v11372_v63 = vadd.f32 %v11371_v61, %v11370_v57  ;;  %v11393_v0 = vpop.f32.mrb[1].mxu1  ;;  %v11373_v3 = vpop.f32.mrb[2].mxu0  ;;  %11673 = vmatpush3.bf16.msra.mxu0 %v12779_v24  ;;  %v12815_v24 = vld [vmem:[%s16867_s2 + $0x830] sm:$0xff]  }
 0x109   : > { %v11394_v2 = vadd.f32 %v11393_v0, %v11392_v59  ;;  %v11395_v5 = vpop.f32.mrb[2].mxu1  ;;  %v11374_v8 = vpop.f32.mrb[3].mxu0  ;;  %11695 = vmatpush3.bf16.msra.mxu1 %v12780_v25  ;;  %11674 = vmatprep.subr.bf16.mxu0 %v12781_v26  ;;  %v12797_v59 = vld [vmem:[%s16867_s2 + $0x850] sm:$0xff]   ;;  %v12817_v26 = vld [vmem:[%s16867_s2 + $0x878] sm:$0xff]  }
 0x10a   : > { %v11375_v10 = vadd.f32 %v11374_v8, %v11373_v3  ;;  %v11396_v11 = vpop.f32.mrb[3].mxu1  ;;  %11696 = vmatprep.subr.bf16.mxu1 %v12782_v27  ;;  %v12800_v3 = vld [vmem:[%s16867_s2 + $0x890] sm:$0xff]   ;;  %v12818_v27 = vld [vmem:[%s16867_s2 + $0x8f8] sm:$0xff]  }
 0x10b   : > { %v14377_v7 = vadd.f32 %v11394_v2, %v11372_v63  ;;  %v11397_v13 = vadd.f32 %v11396_v11, %v11395_v5  ;;  %v12803_v11 = vld [vmem:[%s16867_s2 + $0x818] sm:$0xff]   ;;  %v12816_v25 = vld [vmem:[%s16867_s2 + $0x8b0] sm:$0xff]  }
 0x10c   : > { %11675 = vmatpush3.bf16.msra.mxu0 %v12783_v28  ;;  %v12819_v28 = vld [vmem:[%s16867_s2 + $0x838] sm:$0xff]  }
 0x10d   : > { %v14391_v16 = vadd.f32 %v11397_v13, %v11375_v10  ;;  %11697 = vmatpush3.bf16.msra.mxu1 %v12784_v29  ;;  %11676 = vmatprep.subr.bf16.mxu0 %v12785_v30  ;;  %v12820_v29 = vld [vmem:[%s16867_s2 + $0x8b8] sm:$0xff]   ;;  %v512_v30 = vld [vmem:[%s13704_s23 + $0x108] sm:$0xff] }
 0x10e   : > { %11698 = vmatprep.subr.bf16.mxu1 %v12786_v31  ;;  %v612_v31 = vld [vmem:[%s13704_s23 + $0x428] sm:$0xff] }
 0x110   : > { %11677 = vmatpush3.bf16.msra.mxu0 %v12787_v32  ;;  %v2312_v32 = vpack.c.bf16 %v612_v31, %v512_v30  ;;  %v618_v30 = vld [vmem:[%s13704_s23 + $0x458] sm:$0xff]  ;;  %v515_v31 = vld [vmem:[%s13704_s23 + $0x120] sm:$0xff] }
 0x111   : > { %11699 = vmatpush3.bf16.msra.mxu1 %v12788_v33  ;;  %11706 = vmatprep.subr.bf16.mxu0 %v12789_v46  ;;  %v514_v33 = vld [vmem:[%s13704_s23 + $0x118] sm:$0xff]  ;;  %v12825_v46 = vld [vmem:[%s16867_s2 + $0x948] sm:$0xff]  }
 0x112   : > { %11728 = vmatprep.subr.bf16.mxu1 %v12790_v47  ;;  %v2314_v36 = vpack.c.bf16 %v614_v34, %v514_v33  ;;  %v12826_v47 = vld [vmem:[%s16867_s2 + $0x9c8] sm:$0xff]  }
 0x113   : > { %7786 = vmatmul.mubr.bf16.vlgmr.msra.gmra.mrb[28].mxu0 %v2307_v43  ;;  %v12822_v43 = vld [vmem:[%s16867_s2 + $0x9c0] sm:$0xff]  }
 0x114   : > { %7827 = vmatmul.mubr.bf16.vlgmr.msra.gmra.mrb[28].mxu1 %v2309_v45  ;;  %11707 = vmatpush3.bf16.msra.mxu0 %v12791_v48  ;;  %v12824_v45 = vld [vmem:[%s16867_s2 + $0x980] sm:$0xff]  }
 0x115   : > { %11729 = vmatpush3.bf16.msra.mxu1 %v12792_v49  ;;  %11708 = vmatprep.subr.bf16.mxu0 %v12793_v50  ;;  %v12827_v49 = vld [vmem:[%s16867_s2 + $0x908] sm:$0xff]  }
 0x116   : > { %11730 = vmatprep.subr.bf16.mxu1 %v12794_v52  ;;  %7867 = vmatprep.mubr.bf16.mxu0 %v2312_v32  ;;  %v615_v32 = vld [vmem:[%s13704_s23 + $0x440] sm:$0xff] }
 0x117   : > { %7908 = vmatprep.mubr.bf16.mxu1 %v2314_v36  ;;  %v2315_v34 = vpack.c.bf16 %v615_v32, %v515_v31  ;;  %v617_v36 = vld [vmem:[%s13704_s23 + $0x450] sm:$0xff] }
 0x118   : > { %11709 = vmatpush3.bf16.msra.mxu0 %v12795_v54  ;;  %v2317_v37 = vpack.c.bf16 %v617_v36, %v517_v35  ;;  %v621_v32 = vld [vmem:[%s13704_s23 + $0x470] sm:$0xff]  ;;  %v12886_v35 = vld [vmem:[%s16867_s2 + $0xbc0] sm:$0xff]  }
 0x119   : > { %11731 = vmatpush3.bf16.msra.mxu1 %v12796_v56  ;;  %11710 = vmatprep.subr.bf16.mxu0 %v12797_v59  ;;  %v12830_v56 = vld [vmem:[%s16867_s2 + $0x9d0] sm:$0xff]   ;;  %v12887_v36 = vld [vmem:[%s16867_s2 + $0xb00] sm:$0xff]  }
 0x11a   : > { %11732 = vmatprep.subr.bf16.mxu1 %v12798_v62  ;;  %v12831_v59 = vld [vmem:[%s16867_s2 + $0x910] sm:$0xff]  }
 0x11b   : > { %v12832_v62 = vld [vmem:[%s16867_s2 + $0x990] sm:$0xff]  }
 0x11c   : > { %11711 = vmatpush3.bf16.msra.mxu0 %v12799_v1 }
 0x11d   : > { %11733 = vmatpush3.bf16.msra.mxu1 %v12800_v3 }
 0x11e   : > { %11734 = vmatprep.subr.bf16.mxu1 %v12802_v9  ;;  %v12837_v9 = vld [vmem:[%s16867_s2 + $0x960] sm:$0xff]  }
 0x121   : > { %11735 = vmatpush3.bf16.msra.mxu1 %v12804_v12  ;;  %v12839_v12 = vld [vmem:[%s16867_s2 + $0x920] sm:$0xff]  }
 0x122   : > { %11736 = vmatprep.subr.bf16.mxu1 %v12806_v15  ;;  %v12842_v15 = vld [vmem:[%s16867_s2 + $0x9e8] sm:$0xff]  }
 0x125   : > { %11737 = vmatpush3.bf16.msra.mxu1 %v12808_v17  ;;  %v12844_v17 = vld [vmem:[%s16867_s2 + $0x9a8] sm:$0xff]  }
 0x126   : > { %v11414_v51 = vpop.f32.mrb[4].mxu0  ;;  %11738 = vmatprep.subr.bf16.mxu1 %v12810_v19  ;;  %v12846_v19 = vld [vmem:[%s16867_s2 + $0x9f0] sm:$0xff]  }
 0x127   : > { %v11436_v53 = vpop.f32.mrb[4].mxu1  ;;  %v11415_v55 = vpop.f32.mrb[5].mxu0 }
 0x128   : > { %v11416_v57 = vadd.f32 %v11415_v55, %v11414_v51  ;;  %v11437_v58 = vpop.f32.mrb[5].mxu1  ;;  %v11417_v61 = vpop.f32.mrb[6].mxu0  ;;  %v12828_v51 = vld [vmem:[%s16867_s2 + $0x988] sm:$0xff]  }
 0x129   : > { %v11438_v60 = vadd.f32 %v11437_v58, %v11436_v53  ;;  %v11439_v0 = vpop.f32.mrb[6].mxu1  ;;  %v11418_v2 = vpop.f32.mrb[7].mxu0  ;;  %11739 = vmatpush3.bf16.msra.mxu1 %v12812_v21  ;;  %v12829_v53 = vld [vmem:[%s16867_s2 + $0x950] sm:$0xff]  }
 0x12a   : > { %v7296_v63 = vadd.f32 %v11416_v57, %v14377_v7  ;;  %v11419_v5 = vadd.f32 %v11418_v2, %v11417_v61  ;;  %v11440_v6 = vpop.f32.mrb[7].mxu1  ;;  %v12801_v7 = vld [vmem:[%s16867_s2 + $0x858] sm:$0xff]   ;;  %11740 = vmatprep.subr.bf16.mxu1 %v12814_v23  ;;  %v12848_v21 = vld [vmem:[%s16867_s2 + $0x9b0] sm:$0xff]  }
 0x12b   : > { %v11441_v8 = vadd.f32 %v11440_v6, %v11439_v0  ;;  %11712 = vmatprep.subr.bf16.mxu0 %v12801_v7  ;;  %v12833_v0 = vld [vmem:[%s16867_s2 + $0x958] sm:$0xff]  }
 0x12c   : > { %v14489_v4 = vadd.f32 %v11438_v60, %v7296_v63  ;;  %v7299_v10 = vadd.f32 %v11419_v5, %v14391_v16  ;;  %11713 = vmatpush3.bf16.msra.mxu0 %v12803_v11  ;;  %v12807_v16 = vld [vmem:[%s16867_s2 + $0x820] sm:$0xff]   ;;  %v12835_v6 = vld [vmem:[%s16867_s2 + $0x918] sm:$0xff]  }
 0x12d   : > { %11714 = vmatprep.subr.bf16.mxu0 %v12805_v14  ;;  %11741 = vmatpush3.bf16.msra.mxu1 %v12816_v25  ;;  %v12838_v11 = vld [vmem:[%s16867_s2 + $0x9e0] sm:$0xff]   ;;  %v12841_v14 = vld [vmem:[%s16867_s2 + $0x968] sm:$0xff]   ;;  %v12850_v23 = vld [vmem:[%s16867_s2 + $0x9f8] sm:$0xff]  }
 0x12e   : > { %v14504_v13 = vadd.f32 %v11441_v8, %v7299_v10  ;;  %11742 = vmatprep.subr.bf16.mxu1 %v12818_v27  ;;  %v12836_v8 = vld [vmem:[%s16867_s2 + $0x998] sm:$0xff]   ;;  %v616_v27 = vld [vmem:[%s13704_s23 + $0x448] sm:$0xff] }
 0x12f   : > { %v12852_v25 = vld [vmem:[%s16867_s2 + $0x9b8] sm:$0xff]  }
 0x130   : > { %11715 = vmatpush3.bf16.msra.mxu0 %v12807_v16  ;;  %v12843_v16 = vld [vmem:[%s16867_s2 + $0x928] sm:$0xff]  }
 0x131   : > { %11716 = vmatprep.subr.bf16.mxu0 %v12809_v18  ;;  %11743 = vmatpush3.bf16.msra.mxu1 %v12820_v29  ;;  %v12845_v18 = vld [vmem:[%s16867_s2 + $0x970] sm:$0xff]  }
 0x132   : > { %11772 = vmatprep.subr.bf16.mxu1 %v12822_v43 }
 0x134   : > { %11717 = vmatpush3.bf16.msra.mxu0 %v12811_v20  ;;  %7909 = vmatmul.mubr.bf16.vlgmr.msra.gmra.mrb[32].mxu1 %v2313_v41  ;;  %v12847_v20 = vld [vmem:[%s16867_s2 + $0x930] sm:$0xff]   ;;  %v12856_v41 = vld [vmem:[%s16867_s2 + $0xa80] sm:$0xff]  }
 0x135   : > { %11718 = vmatprep.subr.bf16.mxu0 %v12813_v22  ;;  %11773 = vmatpush3.bf16.msra.mxu1 %v12824_v45  ;;  %v12849_v22 = vld [vmem:[%s16867_s2 + $0x978] sm:$0xff]  }
 0x136   : > { %11774 = vmatprep.subr.bf16.mxu1 %v12826_v47 }
 0x138   : > { %11719 = vmatpush3.bf16.msra.mxu0 %v12815_v24  ;;  %v12851_v24 = vld [vmem:[%s16867_s2 + $0x938] sm:$0xff]  }
 0x139   : > { %11720 = vmatprep.subr.bf16.mxu0 %v12817_v26  ;;  %11775 = vmatpush3.bf16.msra.mxu1 %v12828_v51  ;;  %v516_v26 = vld [vmem:[%s13704_s23 + $0x128] sm:$0xff]  ;;  %v12861_v51 = vld [vmem:[%s16867_s2 + $0xa50] sm:$0xff]  }
 0x13a   : > { %11776 = vmatprep.subr.bf16.mxu1 %v12830_v56  ;;  %v2316_v29 = vpack.c.bf16 %v616_v27, %v516_v26 }
 0x13c   : > { %11721 = vmatpush3.bf16.msra.mxu0 %v12819_v28  ;;  %v518_v28 = vld [vmem:[%s13704_s23 + $0x138] sm:$0xff] }
 0x13d   : > { %11750 = vmatprep.subr.bf16.mxu0 %v12821_v42  ;;  %11777 = vmatpush3.bf16.msra.mxu1 %v12832_v62  ;;  %v2318_v33 = vpack.c.bf16 %v618_v30, %v518_v28  ;;  %v12857_v42 = vld [vmem:[%s16867_s2 + $0xa48] sm:$0xff]   ;;  %v519_v28 = vld [vmem:[%s13704_s23 + $0x140] sm:$0xff]  ;;  %v521_v30 = vld [vmem:[%s13704_s23 + $0x150] sm:$0xff] }
 0x13f   : > { %7868 = vmatmul.mubr.bf16.vlgmr.msra.gmra.mrb[32].mxu0 %v2311_v40  ;;  %7990 = vmatprep.mubr.bf16.mxu1 %v2318_v33  ;;  %v12855_v40 = vld [vmem:[%s16867_s2 + $0xa00] sm:$0xff]   ;;  %v2321_v33 = vpack.c.bf16 %v621_v32, %v521_v30 }
 0x140   : > { %11751 = vmatpush3.bf16.msra.mxu0 %v12823_v44  ;;  %7949 = vmatprep.mubr.bf16.mxu0 %v2316_v29  ;;  %v12858_v44 = vld [vmem:[%s16867_s2 + $0xac8] sm:$0xff]   ;;  %v619_v29 = vld [vmem:[%s13704_s23 + $0x460] sm:$0xff] }
 0x141   : > { %11752 = vmatprep.subr.bf16.mxu0 %v12825_v46  ;;  %v12859_v46 = vld [vmem:[%s16867_s2 + $0xa08] sm:$0xff]   ;;  %v2319_v31 = vpack.c.bf16 %v619_v29, %v519_v28  ;;  %v12917_v30 = vld [vmem:[%s16867_s2 + $0xc40] sm:$0xff]  }
 0x142   : > { %v12919_v32 = vld [vmem:[%s16867_s2 + $0xc00] sm:$0xff]  }
 0x144   : > { %11753 = vmatpush3.bf16.msra.mxu0 %v12827_v49 }
 0x145   : > { %11754 = vmatprep.subr.bf16.mxu0 %v12829_v53 }
 0x146   : > { %v11458_v48 = vpop.f32.mrb[8].mxu0 }
 0x147   : > { %v11480_v50 = vpop.f32.mrb[8].mxu1  ;;  %v11459_v52 = vpop.f32.mrb[9].mxu0 }
 0x148   : > { %v11460_v54 = vadd.f32 %v11459_v52, %v11458_v48  ;;  %v11481_v55 = vpop.f32.mrb[9].mxu1  ;;  %v11461_v58 = vpop.f32.mrb[10].mxu0  ;;  %11755 = vmatpush3.bf16.msra.mxu0 %v12831_v59  ;;  %v12860_v48 = vld [vmem:[%s16867_s2 + $0xa88] sm:$0xff]   ;;  %v12864_v59 = vld [vmem:[%s16867_s2 + $0xa90] sm:$0xff]  }
 0x149   : > { %v11482_v57 = vadd.f32 %v11481_v55, %v11480_v50  ;;  %v11483_v61 = vpop.f32.mrb[10].mxu1  ;;  %v11462_v63 = vpop.f32.mrb[11].mxu0  ;;  %11756 = vmatprep.subr.bf16.mxu0 %v12833_v0 }
 0x14a   : > { %v7378_v60 = vadd.f32 %v11460_v54, %v14489_v4  ;;  %v11463_v2 = vadd.f32 %v11462_v63, %v11461_v58  ;;  %v11484_v3 = vpop.f32.mrb[11].mxu1  ;;  %v12834_v4 = vld [vmem:[%s16867_s2 + $0x9d8] sm:$0xff]   ;;  %v12862_v54 = vld [vmem:[%s16867_s2 + $0xad0] sm:$0xff]  }
 0x14b   : > { %v11485_v5 = vadd.f32 %v11484_v3, %v11483_v61  ;;  %11778 = vmatprep.subr.bf16.mxu1 %v12834_v4  ;;  %v12865_v63 = vld [vmem:[%s16867_s2 + $0xa58] sm:$0xff]  }
 0x14c   : > { %v14602_v1 = vadd.f32 %v11482_v57, %v7378_v60  ;;  %v7381_v7 = vadd.f32 %v11463_v2, %v14504_v13  ;;  %11757 = vmatpush3.bf16.msra.mxu0 %v12835_v6  ;;  %11779 = vmatpush3.bf16.msra.mxu1 %v12836_v8  ;;  %v12840_v13 = vld [vmem:[%s16867_s2 + $0x9a0] sm:$0xff]   ;;  %v12863_v57 = vld [vmem:[%s16867_s2 + $0xa10] sm:$0xff]   ;;  %v12867_v3 = vld [vmem:[%s16867_s2 + $0xa18] sm:$0xff]  }
 0x14d   : > { %11758 = vmatprep.subr.bf16.mxu0 %v12837_v9  ;;  %11780 = vmatprep.subr.bf16.mxu1 %v12838_v11  ;;  %v12868_v4 = vld [vmem:[%s16867_s2 + $0xa98] sm:$0xff]   ;;  %v12869_v6 = vld [vmem:[%s16867_s2 + $0xa60] sm:$0xff]   ;;  %v12874_v11 = vld [vmem:[%s16867_s2 + $0xae8] sm:$0xff]  }
 0x14e   : > { %v14617_v10 = vadd.f32 %v11485_v5, %v7381_v7  ;;  %v12870_v7 = vld [vmem:[%s16867_s2 + $0xae0] sm:$0xff]  }
 0x14f   : > { %v12871_v8 = vld [vmem:[%s16867_s2 + $0xa20] sm:$0xff]  }
 0x150   : > { %11759 = vmatpush3.bf16.msra.mxu0 %v12839_v12  ;;  %11781 = vmatpush3.bf16.msra.mxu1 %v12840_v13  ;;  %v12872_v9 = vld [vmem:[%s16867_s2 + $0xaa0] sm:$0xff]   ;;  %v12875_v12 = vld [vmem:[%s16867_s2 + $0xa28] sm:$0xff]  }
 0x151   : > { %11760 = vmatprep.subr.bf16.mxu0 %v12841_v14  ;;  %11782 = vmatprep.subr.bf16.mxu1 %v12842_v15  ;;  %v12876_v13 = vld [vmem:[%s16867_s2 + $0xaa8] sm:$0xff]   ;;  %v12877_v14 = vld [vmem:[%s16867_s2 + $0xa70] sm:$0xff]  }
 0x152   : > { %v12878_v15 = vld [vmem:[%s16867_s2 + $0xaf0] sm:$0xff]  }
 0x154   : > { %11761 = vmatpush3.bf16.msra.mxu0 %v12843_v16  ;;  %11783 = vmatpush3.bf16.msra.mxu1 %v12844_v17  ;;  %v12879_v16 = vld [vmem:[%s16867_s2 + $0xa30] sm:$0xff]  }
 0x155   : > { %11762 = vmatprep.subr.bf16.mxu0 %v12845_v18  ;;  %11784 = vmatprep.subr.bf16.mxu1 %v12846_v19  ;;  %v12880_v17 = vld [vmem:[%s16867_s2 + $0xab0] sm:$0xff]   ;;  %v12881_v18 = vld [vmem:[%s16867_s2 + $0xa78] sm:$0xff]  }
 0x156   : > { %v12882_v19 = vld [vmem:[%s16867_s2 + $0xaf8] sm:$0xff]  }
 0x158   : > { %11763 = vmatpush3.bf16.msra.mxu0 %v12847_v20  ;;  %11785 = vmatpush3.bf16.msra.mxu1 %v12848_v21  ;;  %v12883_v20 = vld [vmem:[%s16867_s2 + $0xa38] sm:$0xff]  }
 0x159   : > { %11764 = vmatprep.subr.bf16.mxu0 %v12849_v22  ;;  %11786 = vmatprep.subr.bf16.mxu1 %v12850_v23  ;;  %v12884_v21 = vld [vmem:[%s16867_s2 + $0xab8] sm:$0xff]   ;;  %v520_v22 = vld [vmem:[%s13704_s23 + $0x148] sm:$0xff] }
 0x15a   : > { %v620_v23 = vld [vmem:[%s13704_s23 + $0x468] sm:$0xff] }
 0x15b   : > { %v2320_v26 = vpack.c.bf16 %v620_v23, %v520_v22  ;;  %v626_v22 = vld [vmem:[%s13704_s23 + $0x498] sm:$0xff]  ;;  %v523_v23 = vld [vmem:[%s13704_s23 + $0x160] sm:$0xff] }
 0x15c   : > { %11765 = vmatpush3.bf16.msra.mxu0 %v12851_v24  ;;  %11787 = vmatpush3.bf16.msra.mxu1 %v12852_v25  ;;  %v522_v24 = vld [vmem:[%s13704_s23 + $0x158] sm:$0xff] }
 0x15d   : > { %11794 = vmatprep.subr.bf16.mxu0 %v12853_v38  ;;  %11816 = vmatprep.subr.bf16.mxu1 %v12854_v39  ;;  %v622_v25 = vld [vmem:[%s13704_s23 + $0x478] sm:$0xff]  ;;  %v12889_v38 = vld [vmem:[%s16867_s2 + $0xb48] sm:$0xff]  }
 0x15e   : > { %v2322_v27 = vpack.c.bf16 %v622_v25, %v522_v24  ;;  %v623_v25 = vld [vmem:[%s13704_s23 + $0x480] sm:$0xff] }
 0x15f   : > { %7950 = vmatmul.mubr.bf16.vlgmr.msra.gmra.mrb[36].mxu0 %v2315_v34  ;;  %7991 = vmatmul.mubr.bf16.vlgmr.msra.gmra.mrb[36].mxu1 %v2317_v37  ;;  %v12885_v34 = vld [vmem:[%s16867_s2 + $0xb40] sm:$0xff]   ;;  %v2323_v28 = vpack.c.bf16 %v623_v25, %v523_v23  ;;  %v529_v23 = vld [vmem:[%s13704_s23 + $0x190] sm:$0xff] }
 0x160   : > { %11795 = vmatpush3.bf16.msra.mxu0 %v12855_v40  ;;  %11817 = vmatpush3.bf16.msra.mxu1 %v12856_v41  ;;  %v12888_v37 = vld [vmem:[%s16867_s2 + $0xb80] sm:$0xff]   ;;  %v12890_v40 = vld [vmem:[%s16867_s2 + $0xbc8] sm:$0xff]  }
 0x161   : > { %11796 = vmatprep.subr.bf16.mxu0 %v12857_v42  ;;  %11818 = vmatprep.subr.bf16.mxu1 %v12858_v44  ;;  %v12891_v42 = vld [vmem:[%s16867_s2 + $0xb08] sm:$0xff]  }
 0x162   : > { %8031 = vmatprep.mubr.bf16.mxu0 %v2320_v26  ;;  %8072 = vmatprep.mubr.bf16.mxu1 %v2322_v27  ;;  %v12892_v44 = vld [vmem:[%s16867_s2 + $0xb88] sm:$0xff]   ;;  %v525_v26 = vld [vmem:[%s13704_s23 + $0x170] sm:$0xff] }
 0x163   : > { %v625_v27 = vld [vmem:[%s13704_s23 + $0x490] sm:$0xff] }
 0x164   : > { %11797 = vmatpush3.bf16.msra.mxu0 %v12859_v46  ;;  %11819 = vmatpush3.bf16.msra.mxu1 %v12860_v48  ;;  %v2325_v29 = vpack.c.bf16 %v625_v27, %v525_v26  ;;  %v12949_v26 = vld [vmem:[%s16867_s2 + $0xd40] sm:$0xff]  }
 0x165   : > { %11798 = vmatprep.subr.bf16.mxu0 %v12861_v51  ;;  %11820 = vmatprep.subr.bf16.mxu1 %v12862_v54  ;;  %v12950_v27 = vld [vmem:[%s16867_s2 + $0xdc0] sm:$0xff]  }
 0x166   : > { %v11502_v43 = vpop.f32.mrb[12].mxu0 }
 0x167   : > { %v11524_v45 = vpop.f32.mrb[12].mxu1  ;;  %v11503_v47 = vpop.f32.mrb[13].mxu0 }
 0x168   : > { %v11504_v49 = vadd.f32 %v11503_v47, %v11502_v43  ;;  %v11525_v50 = vpop.f32.mrb[13].mxu1  ;;  %v11505_v53 = vpop.f32.mrb[14].mxu0  ;;  %11799 = vmatpush3.bf16.msra.mxu0 %v12863_v57  ;;  %11821 = vmatpush3.bf16.msra.mxu1 %v12864_v59  ;;  %v12893_v47 = vld [vmem:[%s16867_s2 + $0xb50] sm:$0xff]   ;;  %v12897_v59 = vld [vmem:[%s16867_s2 + $0xb58] sm:$0xff]  }
 0x169   : > { %v11526_v52 = vadd.f32 %v11525_v50, %v11524_v45  ;;  %v11527_v56 = vpop.f32.mrb[14].mxu1  ;;  %v11506_v58 = vpop.f32.mrb[15].mxu0  ;;  %11800 = vmatprep.subr.bf16.mxu0 %v12865_v63  ;;  %v12894_v50 = vld [vmem:[%s16867_s2 + $0xbd0] sm:$0xff]   ;;  %v12899_v63 = vld [vmem:[%s16867_s2 + $0xb18] sm:$0xff]  }
 0x16a   : > { %v7460_v55 = vadd.f32 %v11504_v49, %v14602_v1  ;;  %v11507_v61 = vadd.f32 %v11506_v58, %v11505_v53  ;;  %v11528_v62 = vpop.f32.mrb[15].mxu1  ;;  %v12866_v1 = vld [vmem:[%s16867_s2 + $0xad8] sm:$0xff]   ;;  %v12895_v53 = vld [vmem:[%s16867_s2 + $0xb10] sm:$0xff]  }
 0x16b   : > { %v11529_v0 = vadd.f32 %v11528_v62, %v11527_v56  ;;  %11822 = vmatprep.subr.bf16.mxu1 %v12866_v1 }
 0x16c   : > { %v14709_v60 = vadd.f32 %v11526_v52, %v7460_v55  ;;  %v7463_v2 = vadd.f32 %v11507_v61, %v14617_v10  ;;  %11801 = vmatpush3.bf16.msra.mxu0 %v12867_v3  ;;  %11823 = vmatpush3.bf16.msra.mxu1 %v12868_v4  ;;  %v12873_v10 = vld [vmem:[%s16867_s2 + $0xa68] sm:$0xff]   ;;  %v12896_v55 = vld [vmem:[%s16867_s2 + $0xb90] sm:$0xff]   ;;  %v12898_v61 = vld [vmem:[%s16867_s2 + $0xbd8] sm:$0xff]  }
 0x16d   : > { %11802 = vmatprep.subr.bf16.mxu0 %v12869_v6  ;;  %11824 = vmatprep.subr.bf16.mxu1 %v12870_v7  ;;  %v12902_v3 = vld [vmem:[%s16867_s2 + $0xbe0] sm:$0xff]   ;;  %v12905_v6 = vld [vmem:[%s16867_s2 + $0xb68] sm:$0xff]  }
 0x16e   : > { %v14724_v5 = vadd.f32 %v11529_v0, %v7463_v2  ;;  %v12900_v0 = vld [vmem:[%s16867_s2 + $0xb98] sm:$0xff]   ;;  %v12901_v2 = vld [vmem:[%s16867_s2 + $0xb60] sm:$0xff]   ;;  %v12906_v7 = vld [vmem:[%s16867_s2 + $0xbe8] sm:$0xff]  }
 0x16f   : > { %v12903_v4 = vld [vmem:[%s16867_s2 + $0xb20] sm:$0xff]  }
 0x170   : > { %11803 = vmatpush3.bf16.msra.mxu0 %v12871_v8  ;;  %11825 = vmatpush3.bf16.msra.mxu1 %v12872_v9  ;;  %v12907_v8 = vld [vmem:[%s16867_s2 + $0xb28] sm:$0xff]  }
 0x171   : > { %11804 = vmatprep.subr.bf16.mxu0 %v12873_v10  ;;  %11826 = vmatprep.subr.bf16.mxu1 %v12874_v11  ;;  %v12908_v9 = vld [vmem:[%s16867_s2 + $0xba8] sm:$0xff]   ;;  %v12909_v10 = vld [vmem:[%s16867_s2 + $0xb70] sm:$0xff]  }
 0x172   : > { %v12910_v11 = vld [vmem:[%s16867_s2 + $0xbf0] sm:$0xff]  }
 0x174   : > { %11805 = vmatpush3.bf16.msra.mxu0 %v12875_v12  ;;  %11827 = vmatpush3.bf16.msra.mxu1 %v12876_v13  ;;  %v12911_v12 = vld [vmem:[%s16867_s2 + $0xb30] sm:$0xff]  }
 0x175   : > { %11806 = vmatprep.subr.bf16.mxu0 %v12877_v14  ;;  %11828 = vmatprep.subr.bf16.mxu1 %v12878_v15  ;;  %v12912_v13 = vld [vmem:[%s16867_s2 + $0xbb0] sm:$0xff]   ;;  %v12913_v14 = vld [vmem:[%s16867_s2 + $0xb78] sm:$0xff]  }
 0x176   : > { %v12914_v15 = vld [vmem:[%s16867_s2 + $0xbf8] sm:$0xff]  }
 0x178   : > { %11807 = vmatpush3.bf16.msra.mxu0 %v12879_v16  ;;  %11829 = vmatpush3.bf16.msra.mxu1 %v12880_v17  ;;  %v12915_v16 = vld [vmem:[%s16867_s2 + $0xb38] sm:$0xff]  }
 0x179   : > { %11808 = vmatprep.subr.bf16.mxu0 %v12881_v18  ;;  %11830 = vmatprep.subr.bf16.mxu1 %v12882_v19  ;;  %v12916_v17 = vld [vmem:[%s16867_s2 + $0xbb8] sm:$0xff]   ;;  %v524_v18 = vld [vmem:[%s13704_s23 + $0x168] sm:$0xff] }
 0x17a   : > { %v624_v19 = vld [vmem:[%s13704_s23 + $0x488] sm:$0xff] }
 0x17c   : > { %11809 = vmatpush3.bf16.msra.mxu0 %v12883_v20  ;;  %11831 = vmatpush3.bf16.msra.mxu1 %v12884_v21  ;;  %v2324_v20 = vpack.c.bf16 %v624_v19, %v524_v18  ;;  %v526_v21 = vld [vmem:[%s13704_s23 + $0x178] sm:$0xff]  ;;  %v527_v19 = vld [vmem:[%s13704_s23 + $0x180] sm:$0xff] }
 0x17d   : > { %11838 = vmatprep.subr.bf16.mxu0 %v12885_v34  ;;  %11860 = vmatprep.subr.bf16.mxu1 %v12886_v35  ;;  %v2326_v24 = vpack.c.bf16 %v626_v22, %v526_v21  ;;  %v12921_v34 = vld [vmem:[%s16867_s2 + $0xc48] sm:$0xff]   ;;  %v630_v18 = vld [vmem:[%s13704_s23 + $0x4b8] sm:$0xff] }
 0x17e   : > { %v12922_v35 = vld [vmem:[%s16867_s2 + $0xcc8] sm:$0xff]  }
 0x17f   : > { %8032 = vmatmul.mubr.bf16.vlgmr.msra.gmra.mrb[40].mxu0 %v2319_v31  ;;  %8073 = vmatmul.mubr.bf16.vlgmr.msra.gmra.mrb[40].mxu1 %v2321_v33  ;;  %v12918_v31 = vld [vmem:[%s16867_s2 + $0xcc0] sm:$0xff]  }
 0x180   : > { %11839 = vmatpush3.bf16.msra.mxu0 %v12887_v36  ;;  %11861 = vmatpush3.bf16.msra.mxu1 %v12888_v37  ;;  %v12920_v33 = vld [vmem:[%s16867_s2 + $0xc80] sm:$0xff]   ;;  %v12923_v37 = vld [vmem:[%s16867_s2 + $0xc08] sm:$0xff]  }
 0x181   : > { %11840 = vmatprep.subr.bf16.mxu0 %v12889_v38  ;;  %11862 = vmatprep.subr.bf16.mxu1 %v12890_v40 }
 0x182   : > { %8113 = vmatprep.mubr.bf16.mxu0 %v2324_v20  ;;  %8154 = vmatprep.mubr.bf16.mxu1 %v2326_v24  ;;  %v627_v20 = vld [vmem:[%s13704_s23 + $0x4a0] sm:$0xff]  ;;  %v629_v24 = vld [vmem:[%s13704_s23 + $0x4b0] sm:$0xff] }
 0x183   : > { %v2327_v22 = vpack.c.bf16 %v627_v20, %v527_v19  ;;  %v2329_v25 = vpack.c.bf16 %v629_v24, %v529_v23  ;;  %v633_v20 = vld [vmem:[%s13704_s23 + $0x4d0] sm:$0xff]  ;;  %v12982_v23 = vld [vmem:[%s16867_s2 + $0xec0] sm:$0xff]  }
 0x184   : > { %11841 = vmatpush3.bf16.msra.mxu0 %v12891_v42  ;;  %11863 = vmatpush3.bf16.msra.mxu1 %v12892_v44  ;;  %v12926_v44 = vld [vmem:[%s16867_s2 + $0xcd0] sm:$0xff]   ;;  %v12983_v24 = vld [vmem:[%s16867_s2 + $0xe00] sm:$0xff]  }
 0x185   : > { %11842 = vmatprep.subr.bf16.mxu0 %v12893_v47  ;;  %11864 = vmatprep.subr.bf16.mxu1 %v12894_v50  ;;  %v12927_v47 = vld [vmem:[%s16867_s2 + $0xc10] sm:$0xff]  }
 0x186   : > { %v11546_v39 = vpop.f32.mrb[16].mxu0  ;;  %v12928_v50 = vld [vmem:[%s16867_s2 + $0xc90] sm:$0xff]  }
 0x187   : > { %v11568_v41 = vpop.f32.mrb[16].mxu1  ;;  %v11547_v43 = vpop.f32.mrb[17].mxu0 }
 0x188   : > { %v11548_v45 = vadd.f32 %v11547_v43, %v11546_v39  ;;  %v11569_v46 = vpop.f32.mrb[17].mxu1  ;;  %v11549_v49 = vpop.f32.mrb[18].mxu0  ;;  %11843 = vmatpush3.bf16.msra.mxu0 %v12895_v53  ;;  %11865 = vmatpush3.bf16.msra.mxu1 %v12896_v55  ;;  %v12924_v39 = vld [vmem:[%s16867_s2 + $0xc88] sm:$0xff]  }
 0x189   : > { %v11570_v48 = vadd.f32 %v11569_v46, %v11568_v41  ;;  %v11571_v52 = vpop.f32.mrb[18].mxu1  ;;  %v11550_v54 = vpop.f32.mrb[19].mxu0  ;;  %11844 = vmatprep.subr.bf16.mxu0 %v12897_v59  ;;  %11866 = vmatprep.subr.bf16.mxu1 %v12898_v61  ;;  %v12925_v41 = vld [vmem:[%s16867_s2 + $0xc50] sm:$0xff]   ;;  %v12933_v61 = vld [vmem:[%s16867_s2 + $0xc60] sm:$0xff]  }
 0x18a   : > { %v7542_v51 = vadd.f32 %v11548_v45, %v14709_v60  ;;  %v11551_v57 = vadd.f32 %v11550_v54, %v11549_v49  ;;  %v11572_v58 = vpop.f32.mrb[19].mxu1 }
 0x18b   : > { %v11573_v60 = vadd.f32 %v11572_v58, %v11571_v52  ;;  %v12929_v52 = vld [vmem:[%s16867_s2 + $0xc58] sm:$0xff]  }
 0x18c   : > { %v14819_v56 = vadd.f32 %v11570_v48, %v7542_v51  ;;  %v7545_v62 = vadd.f32 %v11551_v57, %v14724_v5  ;;  %11845 = vmatpush3.bf16.msra.mxu0 %v12899_v63  ;;  %11867 = vmatpush3.bf16.msra.mxu1 %v12900_v0  ;;  %v12904_v5 = vld [vmem:[%s16867_s2 + $0xba0] sm:$0xff]   ;;  %v12931_v58 = vld [vmem:[%s16867_s2 + $0xc18] sm:$0xff]  }
 0x18d   : > { %11846 = vmatprep.subr.bf16.mxu0 %v12901_v2  ;;  %11868 = vmatprep.subr.bf16.mxu1 %v12902_v3  ;;  %v12934_v63 = vld [vmem:[%s16867_s2 + $0xce0] sm:$0xff]   ;;  %v12937_v2 = vld [vmem:[%s16867_s2 + $0xc68] sm:$0xff]  }
 0x18e   : > { %v14834_v1 = vadd.f32 %v11573_v60, %v7545_v62  ;;  %v12932_v60 = vld [vmem:[%s16867_s2 + $0xc98] sm:$0xff]   ;;  %v12935_v0 = vld [vmem:[%s16867_s2 + $0xc20] sm:$0xff]   ;;  %v12938_v3 = vld [vmem:[%s16867_s2 + $0xce8] sm:$0xff]  }
 0x190   : > { %11847 = vmatpush3.bf16.msra.mxu0 %v12903_v4  ;;  %11869 = vmatpush3.bf16.msra.mxu1 %v12904_v5  ;;  %v12939_v4 = vld [vmem:[%s16867_s2 + $0xc28] sm:$0xff]  }
 0x191   : > { %11848 = vmatprep.subr.bf16.mxu0 %v12905_v6  ;;  %11870 = vmatprep.subr.bf16.mxu1 %v12906_v7  ;;  %v12940_v5 = vld [vmem:[%s16867_s2 + $0xca8] sm:$0xff]   ;;  %v12941_v6 = vld [vmem:[%s16867_s2 + $0xc70] sm:$0xff]  }
 0x192   : > { %v12942_v7 = vld [vmem:[%s16867_s2 + $0xcf0] sm:$0xff]  }
 0x194   : > { %11849 = vmatpush3.bf16.msra.mxu0 %v12907_v8  ;;  %11871 = vmatpush3.bf16.msra.mxu1 %v12908_v9  ;;  %v12943_v8 = vld [vmem:[%s16867_s2 + $0xc30] sm:$0xff]  }
 0x195   : > { %11850 = vmatprep.subr.bf16.mxu0 %v12909_v10  ;;  %11872 = vmatprep.subr.bf16.mxu1 %v12910_v11  ;;  %v12944_v9 = vld [vmem:[%s16867_s2 + $0xcb0] sm:$0xff]   ;;  %v12945_v10 = vld [vmem:[%s16867_s2 + $0xc78] sm:$0xff]  }
 0x196   : > { %v12946_v11 = vld [vmem:[%s16867_s2 + $0xcf8] sm:$0xff]  }
 0x198   : > { %11851 = vmatpush3.bf16.msra.mxu0 %v12911_v12  ;;  %11873 = vmatpush3.bf16.msra.mxu1 %v12912_v13  ;;  %v12947_v12 = vld [vmem:[%s16867_s2 + $0xc38] sm:$0xff]  }
 0x199   : > { %11852 = vmatprep.subr.bf16.mxu0 %v12913_v14  ;;  %11874 = vmatprep.subr.bf16.mxu1 %v12914_v15  ;;  %v12948_v13 = vld [vmem:[%s16867_s2 + $0xcb8] sm:$0xff]   ;;  %v528_v14 = vld [vmem:[%s13704_s23 + $0x188] sm:$0xff] }
 0x19a   : > { %v628_v15 = vld [vmem:[%s13704_s23 + $0x4a8] sm:$0xff] }
 0x19c   : > { %11853 = vmatpush3.bf16.msra.mxu0 %v12915_v16  ;;  %11875 = vmatpush3.bf16.msra.mxu1 %v12916_v17  ;;  %v530_v16 = vld [vmem:[%s13704_s23 + $0x198] sm:$0xff]  ;;  %v2328_v17 = vpack.c.bf16 %v628_v15, %v528_v14 }
 0x19d   : > { %11882 = vmatprep.subr.bf16.mxu0 %v12917_v30  ;;  %11904 = vmatprep.subr.bf16.mxu1 %v12918_v31  ;;  %v2330_v21 = vpack.c.bf16 %v630_v18, %v530_v16  ;;  %v12953_v30 = vld [vmem:[%s16867_s2 + $0xd48] sm:$0xff]   ;;  %v531_v16 = vld [vmem:[%s13704_s23 + $0x1a0] sm:$0xff]  ;;  %v533_v18 = vld [vmem:[%s13704_s23 + $0x1b0] sm:$0xff] }
 0x19f   : > { %8114 = vmatmul.mubr.bf16.vlgmr.msra.gmra.mrb[44].mxu0 %v2323_v28  ;;  %8155 = vmatmul.mubr.bf16.vlgmr.msra.gmra.mrb[44].mxu1 %v2325_v29  ;;  %v12951_v28 = vld [vmem:[%s16867_s2 + $0xd00] sm:$0xff]  }
 0x1a0   : > { %11883 = vmatpush3.bf16.msra.mxu0 %v12919_v32  ;;  %11905 = vmatpush3.bf16.msra.mxu1 %v12920_v33  ;;  %v12952_v29 = vld [vmem:[%s16867_s2 + $0xd80] sm:$0xff]   ;;  %v12954_v32 = vld [vmem:[%s16867_s2 + $0xdc8] sm:$0xff]  }
 0x1a1   : > { %11884 = vmatprep.subr.bf16.mxu0 %v12921_v34  ;;  %11906 = vmatprep.subr.bf16.mxu1 %v12922_v35  ;;  %v12955_v34 = vld [vmem:[%s16867_s2 + $0xd08] sm:$0xff]  }
 0x1a2   : > { %8195 = vmatprep.mubr.bf16.mxu0 %v2328_v17  ;;  %8236 = vmatprep.mubr.bf16.mxu1 %v2330_v21  ;;  %v631_v17 = vld [vmem:[%s13704_s23 + $0x4c0] sm:$0xff]  ;;  %v2333_v21 = vpack.c.bf16 %v633_v20, %v533_v18 }
 0x1a3   : > { %v2331_v19 = vpack.c.bf16 %v631_v17, %v531_v16  ;;  %v13013_v18 = vld [vmem:[%s16867_s2 + $0xf40] sm:$0xff]  }
 0x1a4   : > { %11885 = vmatpush3.bf16.msra.mxu0 %v12923_v37  ;;  %11907 = vmatpush3.bf16.msra.mxu1 %v12924_v39  ;;  %v12957_v39 = vld [vmem:[%s16867_s2 + $0xd50] sm:$0xff]   ;;  %v13015_v20 = vld [vmem:[%s16867_s2 + $0xf00] sm:$0xff]  }
 0x1a5   : > { %11886 = vmatprep.subr.bf16.mxu0 %v12925_v41  ;;  %11908 = vmatprep.subr.bf16.mxu1 %v12926_v44 }
 0x1a6   : > { %v11590_v36 = vpop.f32.mrb[20].mxu0 }
 0x1a7   : > { %v11612_v38 = vpop.f32.mrb[20].mxu1  ;;  %v11591_v40 = vpop.f32.mrb[21].mxu0 }
 0x1a8   : > { %v11592_v42 = vadd.f32 %v11591_v40, %v11590_v36  ;;  %v11613_v43 = vpop.f32.mrb[21].mxu1  ;;  %v11593_v46 = vpop.f32.mrb[22].mxu0  ;;  %11887 = vmatpush3.bf16.msra.mxu0 %v12927_v47  ;;  %11909 = vmatpush3.bf16.msra.mxu1 %v12928_v50  ;;  %v12956_v36 = vld [vmem:[%s16867_s2 + $0xd88] sm:$0xff]   ;;  %v12960_v47 = vld [vmem:[%s16867_s2 + $0xd90] sm:$0xff]  }
 0x1a9   : > { %v11614_v45 = vadd.f32 %v11613_v43, %v11612_v38  ;;  %v11615_v49 = vpop.f32.mrb[22].mxu1  ;;  %v11594_v51 = vpop.f32.mrb[23].mxu0  ;;  %11888 = vmatprep.subr.bf16.mxu0 %v12929_v52 }
 0x1aa   : > { %v7624_v48 = vadd.f32 %v11592_v42, %v14819_v56  ;;  %v11595_v54 = vadd.f32 %v11594_v51, %v11593_v46  ;;  %v11616_v55 = vpop.f32.mrb[23].mxu1  ;;  %v12930_v56 = vld [vmem:[%s16867_s2 + $0xcd8] sm:$0xff]   ;;  %v12958_v42 = vld [vmem:[%s16867_s2 + $0xdd0] sm:$0xff]  }
 0x1ab   : > { %v11617_v57 = vadd.f32 %v11616_v55, %v11615_v49  ;;  %11910 = vmatprep.subr.bf16.mxu1 %v12930_v56  ;;  %v12961_v51 = vld [vmem:[%s16867_s2 + $0xd58] sm:$0xff]  }
 0x1ac   : > { %v14932_v53 = vadd.f32 %v11614_v45, %v7624_v48  ;;  %v7627_v59 = vadd.f32 %v11595_v54, %v14834_v1  ;;  %11889 = vmatpush3.bf16.msra.mxu0 %v12931_v58  ;;  %11911 = vmatpush3.bf16.msra.mxu1 %v12932_v60  ;;  %v12936_v1 = vld [vmem:[%s16867_s2 + $0xca0] sm:$0xff]   ;;  %v12959_v45 = vld [vmem:[%s16867_s2 + $0xd10] sm:$0xff]   ;;  %v12963_v55 = vld [vmem:[%s16867_s2 + $0xd18] sm:$0xff]  }
 0x1ad   : > { %11890 = vmatprep.subr.bf16.mxu0 %v12933_v61  ;;  %11912 = vmatprep.subr.bf16.mxu1 %v12934_v63  ;;  %v12964_v56 = vld [vmem:[%s16867_s2 + $0xd98] sm:$0xff]   ;;  %v12965_v58 = vld [vmem:[%s16867_s2 + $0xd60] sm:$0xff]   ;;  %v12970_v63 = vld [vmem:[%s16867_s2 + $0xde8] sm:$0xff]  }
 0x1ae   : > { %v14947_v62 = vadd.f32 %v11617_v57, %v7627_v59  ;;  %v12966_v59 = vld [vmem:[%s16867_s2 + $0xde0] sm:$0xff]  }
 0x1af   : > { %v12967_v60 = vld [vmem:[%s16867_s2 + $0xd20] sm:$0xff]  }
 0x1b0   : > { %11891 = vmatpush3.bf16.msra.mxu0 %v12935_v0  ;;  %11913 = vmatpush3.bf16.msra.mxu1 %v12936_v1  ;;  %v12968_v61 = vld [vmem:[%s16867_s2 + $0xda0] sm:$0xff]   ;;  %v12971_v0 = vld [vmem:[%s16867_s2 + $0xd28] sm:$0xff]  }
 0x1b1   : > { %11892 = vmatprep.subr.bf16.mxu0 %v12937_v2  ;;  %11914 = vmatprep.subr.bf16.mxu1 %v12938_v3  ;;  %v12972_v1 = vld [vmem:[%s16867_s2 + $0xda8] sm:$0xff]   ;;  %v12973_v2 = vld [vmem:[%s16867_s2 + $0xd70] sm:$0xff]  }
 0x1b2   : > { %v12974_v3 = vld [vmem:[%s16867_s2 + $0xdf0] sm:$0xff]  }
 0x1b4   : > { %11893 = vmatpush3.bf16.msra.mxu0 %v12939_v4  ;;  %11915 = vmatpush3.bf16.msra.mxu1 %v12940_v5  ;;  %v12975_v4 = vld [vmem:[%s16867_s2 + $0xd30] sm:$0xff]  }
 0x1b5   : > { %11894 = vmatprep.subr.bf16.mxu0 %v12941_v6  ;;  %11916 = vmatprep.subr.bf16.mxu1 %v12942_v7  ;;  %v12976_v5 = vld [vmem:[%s16867_s2 + $0xdb0] sm:$0xff]   ;;  %v12977_v6 = vld [vmem:[%s16867_s2 + $0xd78] sm:$0xff]  }
 0x1b6   : > { %v12978_v7 = vld [vmem:[%s16867_s2 + $0xdf8] sm:$0xff]  }
 0x1b8   : > { %11895 = vmatpush3.bf16.msra.mxu0 %v12943_v8  ;;  %11917 = vmatpush3.bf16.msra.mxu1 %v12944_v9  ;;  %v12979_v8 = vld [vmem:[%s16867_s2 + $0xd38] sm:$0xff]  }
 0x1b9   : > { %11896 = vmatprep.subr.bf16.mxu0 %v12945_v10  ;;  %11918 = vmatprep.subr.bf16.mxu1 %v12946_v11  ;;  %v12980_v9 = vld [vmem:[%s16867_s2 + $0xdb8] sm:$0xff]   ;;  %v532_v10 = vld [vmem:[%s13704_s23 + $0x1a8] sm:$0xff] }
 0x1ba   : > { %v632_v11 = vld [vmem:[%s13704_s23 + $0x4c8] sm:$0xff] }
 0x1bb   : > { %v2332_v14 = vpack.c.bf16 %v632_v11, %v532_v10  ;;  %v638_v10 = vld [vmem:[%s13704_s23 + $0x4f8] sm:$0xff]  ;;  %v535_v11 = vld [vmem:[%s13704_s23 + $0x1c0] sm:$0xff] }
 0x1bc   : > { %11897 = vmatpush3.bf16.msra.mxu0 %v12947_v12  ;;  %11919 = vmatpush3.bf16.msra.mxu1 %v12948_v13  ;;  %v534_v12 = vld [vmem:[%s13704_s23 + $0x1b8] sm:$0xff] }
 0x1bd   : > { %11926 = vmatprep.subr.bf16.mxu0 %v12949_v26  ;;  %11948 = vmatprep.subr.bf16.mxu1 %v12950_v27  ;;  %v634_v13 = vld [vmem:[%s13704_s23 + $0x4d8] sm:$0xff]  ;;  %v12985_v26 = vld [vmem:[%s16867_s2 + $0xe48] sm:$0xff]  }
 0x1be   : > { %v2334_v15 = vpack.c.bf16 %v634_v13, %v534_v12  ;;  %v635_v13 = vld [vmem:[%s13704_s23 + $0x4e0] sm:$0xff] }
 0x1bf   : > { %8196 = vmatmul.mubr.bf16.vlgmr.msra.gmra.mrb[48].mxu0 %v2327_v22  ;;  %8237 = vmatmul.mubr.bf16.vlgmr.msra.gmra.mrb[48].mxu1 %v2329_v25  ;;  %v12981_v22 = vld [vmem:[%s16867_s2 + $0xe40] sm:$0xff]   ;;  %v2335_v16 = vpack.c.bf16 %v635_v13, %v535_v11  ;;  %v541_v11 = vld [vmem:[%s13704_s23 + $0x1f0] sm:$0xff] }
 0x1c0   : > { %11927 = vmatpush3.bf16.msra.mxu0 %v12951_v28  ;;  %11949 = vmatpush3.bf16.msra.mxu1 %v12952_v29  ;;  %v12984_v25 = vld [vmem:[%s16867_s2 + $0xe80] sm:$0xff]   ;;  %v12986_v28 = vld [vmem:[%s16867_s2 + $0xec8] sm:$0xff]  }
 0x1c1   : > { %11928 = vmatprep.subr.bf16.mxu0 %v12953_v30  ;;  %11950 = vmatprep.subr.bf16.mxu1 %v12954_v32  ;;  %v12987_v30 = vld [vmem:[%s16867_s2 + $0xe08] sm:$0xff]  }
 0x1c2   : > { %8277 = vmatprep.mubr.bf16.mxu0 %v2332_v14  ;;  %8318 = vmatprep.mubr.bf16.mxu1 %v2334_v15  ;;  %v12988_v32 = vld [vmem:[%s16867_s2 + $0xe88] sm:$0xff]   ;;  %v537_v14 = vld [vmem:[%s13704_s23 + $0x1d0] sm:$0xff] }
 0x1c3   : > { %v637_v15 = vld [vmem:[%s13704_s23 + $0x4f0] sm:$0xff] }
 0x1c4   : > { %11929 = vmatpush3.bf16.msra.mxu0 %v12955_v34  ;;  %11951 = vmatpush3.bf16.msra.mxu1 %v12956_v36  ;;  %v2337_v17 = vpack.c.bf16 %v637_v15, %v537_v14  ;;  %v13045_v14 = vld [vmem:[%s16867_s2 + $0x1040] sm:$0xff]  }
 0x1c5   : > { %11930 = vmatprep.subr.bf16.mxu0 %v12957_v39  ;;  %11952 = vmatprep.subr.bf16.mxu1 %v12958_v42  ;;  %v13046_v15 = vld [vmem:[%s16867_s2 + $0x10c0] sm:$0xff]  }
 0x1c6   : > { %v11634_v31 = vpop.f32.mrb[24].mxu0 }
 0x1c7   : > { %v11656_v33 = vpop.f32.mrb[24].mxu1  ;;  %v11635_v35 = vpop.f32.mrb[25].mxu0 }
 0x1c8   : > { %v11636_v37 = vadd.f32 %v11635_v35, %v11634_v31  ;;  %v11657_v38 = vpop.f32.mrb[25].mxu1  ;;  %v11637_v41 = vpop.f32.mrb[26].mxu0  ;;  %11931 = vmatpush3.bf16.msra.mxu0 %v12959_v45  ;;  %11953 = vmatpush3.bf16.msra.mxu1 %v12960_v47  ;;  %v12989_v35 = vld [vmem:[%s16867_s2 + $0xe50] sm:$0xff]   ;;  %v12993_v47 = vld [vmem:[%s16867_s2 + $0xe58] sm:$0xff]  }
 0x1c9   : > { %v11658_v40 = vadd.f32 %v11657_v38, %v11656_v33  ;;  %v11659_v44 = vpop.f32.mrb[26].mxu1  ;;  %v11638_v46 = vpop.f32.mrb[27].mxu0  ;;  %11932 = vmatprep.subr.bf16.mxu0 %v12961_v51  ;;  %v12990_v38 = vld [vmem:[%s16867_s2 + $0xed0] sm:$0xff]   ;;  %v12995_v51 = vld [vmem:[%s16867_s2 + $0xe18] sm:$0xff]  }
 0x1ca   : > { %v7706_v43 = vadd.f32 %v11636_v37, %v14932_v53  ;;  %v11639_v49 = vadd.f32 %v11638_v46, %v11637_v41  ;;  %v11660_v50 = vpop.f32.mrb[27].mxu1  ;;  %v12962_v53 = vld [vmem:[%s16867_s2 + $0xdd8] sm:$0xff]   ;;  %v12991_v41 = vld [vmem:[%s16867_s2 + $0xe10] sm:$0xff]  }
 0x1cb   : > { %v11661_v52 = vadd.f32 %v11660_v50, %v11659_v44  ;;  %11954 = vmatprep.subr.bf16.mxu1 %v12962_v53 }
 0x1cc   : > { %v15039_v48 = vadd.f32 %v11658_v40, %v7706_v43  ;;  %v7709_v54 = vadd.f32 %v11639_v49, %v14947_v62  ;;  %11933 = vmatpush3.bf16.msra.mxu0 %v12963_v55  ;;  %11955 = vmatpush3.bf16.msra.mxu1 %v12964_v56  ;;  %v12969_v62 = vld [vmem:[%s16867_s2 + $0xd68] sm:$0xff]   ;;  %v12992_v43 = vld [vmem:[%s16867_s2 + $0xe90] sm:$0xff]   ;;  %v12994_v49 = vld [vmem:[%s16867_s2 + $0xed8] sm:$0xff]  }
 0x1cd   : > { %11934 = vmatprep.subr.bf16.mxu0 %v12965_v58  ;;  %11956 = vmatprep.subr.bf16.mxu1 %v12966_v59  ;;  %v12998_v55 = vld [vmem:[%s16867_s2 + $0xee0] sm:$0xff]   ;;  %v13001_v58 = vld [vmem:[%s16867_s2 + $0xe68] sm:$0xff]  }
 0x1ce   : > { %v15054_v57 = vadd.f32 %v11661_v52, %v7709_v54  ;;  %v12996_v52 = vld [vmem:[%s16867_s2 + $0xe98] sm:$0xff]   ;;  %v12997_v54 = vld [vmem:[%s16867_s2 + $0xe60] sm:$0xff]   ;;  %v13002_v59 = vld [vmem:[%s16867_s2 + $0xee8] sm:$0xff]  }
 0x1cf   : > { %v12999_v56 = vld [vmem:[%s16867_s2 + $0xe20] sm:$0xff]  }
 0x1d0   : > { %11935 = vmatpush3.bf16.msra.mxu0 %v12967_v60  ;;  %11957 = vmatpush3.bf16.msra.mxu1 %v12968_v61  ;;  %v13003_v60 = vld [vmem:[%s16867_s2 + $0xe28] sm:$0xff]  }
 0x1d1   : > { %11936 = vmatprep.subr.bf16.mxu0 %v12969_v62  ;;  %11958 = vmatprep.subr.bf16.mxu1 %v12970_v63  ;;  %v13004_v61 = vld [vmem:[%s16867_s2 + $0xea8] sm:$0xff]   ;;  %v13005_v62 = vld [vmem:[%s16867_s2 + $0xe70] sm:$0xff]  }
 0x1d2   : > { %v13006_v63 = vld [vmem:[%s16867_s2 + $0xef0] sm:$0xff]  }
 0x1d4   : > { %11937 = vmatpush3.bf16.msra.mxu0 %v12971_v0  ;;  %11959 = vmatpush3.bf16.msra.mxu1 %v12972_v1  ;;  %v13007_v0 = vld [vmem:[%s16867_s2 + $0xe30] sm:$0xff]  }
 0x1d5   : > { %11938 = vmatprep.subr.bf16.mxu0 %v12973_v2  ;;  %11960 = vmatprep.subr.bf16.mxu1 %v12974_v3  ;;  %v13008_v1 = vld [vmem:[%s16867_s2 + $0xeb0] sm:$0xff]   ;;  %v13009_v2 = vld [vmem:[%s16867_s2 + $0xe78] sm:$0xff]  }
 0x1d6   : > { %v13010_v3 = vld [vmem:[%s16867_s2 + $0xef8] sm:$0xff]  }
 0x1d8   : > { %11939 = vmatpush3.bf16.msra.mxu0 %v12975_v4  ;;  %11961 = vmatpush3.bf16.msra.mxu1 %v12976_v5  ;;  %v13011_v4 = vld [vmem:[%s16867_s2 + $0xe38] sm:$0xff]  }
 0x1d9   : > { %11940 = vmatprep.subr.bf16.mxu0 %v12977_v6  ;;  %11962 = vmatprep.subr.bf16.mxu1 %v12978_v7  ;;  %v13012_v5 = vld [vmem:[%s16867_s2 + $0xeb8] sm:$0xff]   ;;  %v536_v6 = vld [vmem:[%s13704_s23 + $0x1c8] sm:$0xff] }
 0x1da   : > { %v636_v7 = vld [vmem:[%s13704_s23 + $0x4e8] sm:$0xff] }
 0x1dc   : > { %11941 = vmatpush3.bf16.msra.mxu0 %v12979_v8  ;;  %11963 = vmatpush3.bf16.msra.mxu1 %v12980_v9  ;;  %v2336_v8 = vpack.c.bf16 %v636_v7, %v536_v6  ;;  %v538_v9 = vld [vmem:[%s13704_s23 + $0x1d8] sm:$0xff]  ;;  %v539_v7 = vld [vmem:[%s13704_s23 + $0x1e0] sm:$0xff] }
 0x1dd   : > { %11970 = vmatprep.subr.bf16.mxu0 %v12981_v22  ;;  %11992 = vmatprep.subr.bf16.mxu1 %v12982_v23  ;;  %v2338_v12 = vpack.c.bf16 %v638_v10, %v538_v9  ;;  %v13017_v22 = vld [vmem:[%s16867_s2 + $0xf48] sm:$0xff]   ;;  %v642_v6 = vld [vmem:[%s13704_s23 + $0x518] sm:$0xff] }
 0x1de   : > { %v13018_v23 = vld [vmem:[%s16867_s2 + $0xfc8] sm:$0xff]  }
 0x1df   : > { %8278 = vmatmul.mubr.bf16.vlgmr.msra.gmra.mrb[52].mxu0 %v2331_v19  ;;  %8319 = vmatmul.mubr.bf16.vlgmr.msra.gmra.mrb[52].mxu1 %v2333_v21  ;;  %v13014_v19 = vld [vmem:[%s16867_s2 + $0xfc0] sm:$0xff]  }
 0x1e0   : > { %11971 = vmatpush3.bf16.msra.mxu0 %v12983_v24  ;;  %11993 = vmatpush3.bf16.msra.mxu1 %v12984_v25  ;;  %v13016_v21 = vld [vmem:[%s16867_s2 + $0xf80] sm:$0xff]   ;;  %v13019_v25 = vld [vmem:[%s16867_s2 + $0xf08] sm:$0xff]  }
 0x1e1   : > { %11972 = vmatprep.subr.bf16.mxu0 %v12985_v26  ;;  %11994 = vmatprep.subr.bf16.mxu1 %v12986_v28 }
 0x1e2   : > { %8359 = vmatprep.mubr.bf16.mxu0 %v2336_v8  ;;  %8400 = vmatprep.mubr.bf16.mxu1 %v2338_v12  ;;  %v639_v8 = vld [vmem:[%s13704_s23 + $0x500] sm:$0xff]  ;;  %v641_v12 = vld [vmem:[%s13704_s23 + $0x510] sm:$0xff] }
 0x1e3   : > { %v2339_v10 = vpack.c.bf16 %v639_v8, %v539_v7  ;;  %v2341_v13 = vpack.c.bf16 %v641_v12, %v541_v11  ;;  %v645_v8 = vld [vmem:[%s13704_s23 + $0x530] sm:$0xff]  ;;  %v13078_v11 = vld [vmem:[%s16867_s2 + $0x11c0] sm:$0xff]  }
 0x1e4   : > { %11973 = vmatpush3.bf16.msra.mxu0 %v12987_v30  ;;  %11995 = vmatpush3.bf16.msra.mxu1 %v12988_v32  ;;  %v13022_v32 = vld [vmem:[%s16867_s2 + $0xfd0] sm:$0xff]   ;;  %v13079_v12 = vld [vmem:[%s16867_s2 + $0x1100] sm:$0xff]  }
 0x1e5   : > { %11974 = vmatprep.subr.bf16.mxu0 %v12989_v35  ;;  %11996 = vmatprep.subr.bf16.mxu1 %v12990_v38  ;;  %v13023_v35 = vld [vmem:[%s16867_s2 + $0xf10] sm:$0xff]  }
 0x1e6   : > { %v11678_v27 = vpop.f32.mrb[28].mxu0  ;;  %v13024_v38 = vld [vmem:[%s16867_s2 + $0xf90] sm:$0xff]  }
 0x1e7   : > { %v11700_v29 = vpop.f32.mrb[28].mxu1  ;;  %v11679_v31 = vpop.f32.mrb[29].mxu0 }
 0x1e8   : > { %v11680_v33 = vadd.f32 %v11679_v31, %v11678_v27  ;;  %v11701_v34 = vpop.f32.mrb[29].mxu1  ;;  %v11681_v37 = vpop.f32.mrb[30].mxu0  ;;  %11975 = vmatpush3.bf16.msra.mxu0 %v12991_v41  ;;  %11997 = vmatpush3.bf16.msra.mxu1 %v12992_v43  ;;  %v13020_v27 = vld [vmem:[%s16867_s2 + $0xf88] sm:$0xff]  }
 0x1e9   : > { %v11702_v36 = vadd.f32 %v11701_v34, %v11700_v29  ;;  %v11703_v40 = vpop.f32.mrb[30].mxu1  ;;  %v11682_v42 = vpop.f32.mrb[31].mxu0  ;;  %11976 = vmatprep.subr.bf16.mxu0 %v12993_v47  ;;  %11998 = vmatprep.subr.bf16.mxu1 %v12994_v49  ;;  %v13021_v29 = vld [vmem:[%s16867_s2 + $0xf50] sm:$0xff]   ;;  %v13029_v49 = vld [vmem:[%s16867_s2 + $0xf60] sm:$0xff]  }
 0x1ea   : > { %v7788_v39 = vadd.f32 %v11680_v33, %v15039_v48  ;;  %v11683_v45 = vadd.f32 %v11682_v42, %v11681_v37  ;;  %v11704_v46 = vpop.f32.mrb[31].mxu1 }
 0x1eb   : > { %v11705_v48 = vadd.f32 %v11704_v46, %v11703_v40  ;;  %v13025_v40 = vld [vmem:[%s16867_s2 + $0xf58] sm:$0xff]  }
 0x1ec   : > { %v15149_v44 = vadd.f32 %v11702_v36, %v7788_v39  ;;  %v7791_v50 = vadd.f32 %v11683_v45, %v15054_v57  ;;  %11977 = vmatpush3.bf16.msra.mxu0 %v12995_v51  ;;  %11999 = vmatpush3.bf16.msra.mxu1 %v12996_v52  ;;  %v13000_v57 = vld [vmem:[%s16867_s2 + $0xea0] sm:$0xff]   ;;  %v13027_v46 = vld [vmem:[%s16867_s2 + $0xf18] sm:$0xff]  }
 0x1ed   : > { %11978 = vmatprep.subr.bf16.mxu0 %v12997_v54  ;;  %12000 = vmatprep.subr.bf16.mxu1 %v12998_v55  ;;  %v13030_v51 = vld [vmem:[%s16867_s2 + $0xfe0] sm:$0xff]   ;;  %v13033_v54 = vld [vmem:[%s16867_s2 + $0xf68] sm:$0xff]  }
 0x1ee   : > { %v15164_v53 = vadd.f32 %v11705_v48, %v7791_v50  ;;  %v13028_v48 = vld [vmem:[%s16867_s2 + $0xf98] sm:$0xff]   ;;  %v13031_v52 = vld [vmem:[%s16867_s2 + $0xf20] sm:$0xff]   ;;  %v13034_v55 = vld [vmem:[%s16867_s2 + $0xfe8] sm:$0xff]  }
 0x1f0   : > { %11979 = vmatpush3.bf16.msra.mxu0 %v12999_v56  ;;  %12001 = vmatpush3.bf16.msra.mxu1 %v13000_v57  ;;  %v13035_v56 = vld [vmem:[%s16867_s2 + $0xf28] sm:$0xff]  }
 0x1f1   : > { %11980 = vmatprep.subr.bf16.mxu0 %v13001_v58  ;;  %12002 = vmatprep.subr.bf16.mxu1 %v13002_v59  ;;  %v13036_v57 = vld [vmem:[%s16867_s2 + $0xfa8] sm:$0xff]   ;;  %v13037_v58 = vld [vmem:[%s16867_s2 + $0xf70] sm:$0xff]  }
 0x1f2   : > { %v13038_v59 = vld [vmem:[%s16867_s2 + $0xff0] sm:$0xff]  }
 0x1f4   : > { %11981 = vmatpush3.bf16.msra.mxu0 %v13003_v60  ;;  %12003 = vmatpush3.bf16.msra.mxu1 %v13004_v61  ;;  %v13039_v60 = vld [vmem:[%s16867_s2 + $0xf30] sm:$0xff]  }
 0x1f5   : > { %11982 = vmatprep.subr.bf16.mxu0 %v13005_v62  ;;  %12004 = vmatprep.subr.bf16.mxu1 %v13006_v63  ;;  %v13040_v61 = vld [vmem:[%s16867_s2 + $0xfb0] sm:$0xff]   ;;  %v13041_v62 = vld [vmem:[%s16867_s2 + $0xf78] sm:$0xff]  }
 0x1f6   : > { %v13042_v63 = vld [vmem:[%s16867_s2 + $0xff8] sm:$0xff]  }
 0x1f8   : > { %11983 = vmatpush3.bf16.msra.mxu0 %v13007_v0  ;;  %12005 = vmatpush3.bf16.msra.mxu1 %v13008_v1  ;;  %v13043_v0 = vld [vmem:[%s16867_s2 + $0xf38] sm:$0xff]  }
 0x1f9   : > { %11984 = vmatprep.subr.bf16.mxu0 %v13009_v2  ;;  %12006 = vmatprep.subr.bf16.mxu1 %v13010_v3  ;;  %v13044_v1 = vld [vmem:[%s16867_s2 + $0xfb8] sm:$0xff]   ;;  %v540_v2 = vld [vmem:[%s13704_s23 + $0x1e8] sm:$0xff] }
 0x1fa   : > { %v640_v3 = vld [vmem:[%s13704_s23 + $0x508] sm:$0xff] }
 0x1fc   : > { %11985 = vmatpush3.bf16.msra.mxu0 %v13011_v4  ;;  %12007 = vmatpush3.bf16.msra.mxu1 %v13012_v5  ;;  %v542_v4 = vld [vmem:[%s13704_s23 + $0x1f8] sm:$0xff]  ;;  %v2340_v5 = vpack.c.bf16 %v640_v3, %v540_v2 }
 0x1fd   : > { %12014 = vmatprep.subr.bf16.mxu0 %v13013_v18  ;;  %12036 = vmatprep.subr.bf16.mxu1 %v13014_v19  ;;  %v2342_v9 = vpack.c.bf16 %v642_v6, %v542_v4  ;;  %v13049_v18 = vld [vmem:[%s16867_s2 + $0x1048] sm:$0xff]   ;;  %v543_v4 = vld [vmem:[%s13704_s23 + $0x200] sm:$0xff]  ;;  %v545_v6 = vld [vmem:[%s13704_s23 + $0x210] sm:$0xff] }
 0x1ff   : > { %8360 = vmatmul.mubr.bf16.vlgmr.msra.gmra.mrb[56].mxu0 %v2335_v16  ;;  %8401 = vmatmul.mubr.bf16.vlgmr.msra.gmra.mrb[56].mxu1 %v2337_v17  ;;  %v13047_v16 = vld [vmem:[%s16867_s2 + $0x1000] sm:$0xff]  }
 0x200   : > { %12015 = vmatpush3.bf16.msra.mxu0 %v13015_v20  ;;  %12037 = vmatpush3.bf16.msra.mxu1 %v13016_v21  ;;  %v13048_v17 = vld [vmem:[%s16867_s2 + $0x1080] sm:$0xff]   ;;  %v13050_v20 = vld [vmem:[%s16867_s2 + $0x10c8] sm:$0xff]  }
 0x201   : > { %12016 = vmatprep.subr.bf16.mxu0 %v13017_v22  ;;  %12038 = vmatprep.subr.bf16.mxu1 %v13018_v23  ;;  %v13051_v22 = vld [vmem:[%s16867_s2 + $0x1008] sm:$0xff]  }
 0x202   : > { %8441 = vmatprep.mubr.bf16.mxu0 %v2340_v5  ;;  %8482 = vmatprep.mubr.bf16.mxu1 %v2342_v9  ;;  %v643_v5 = vld [vmem:[%s13704_s23 + $0x520] sm:$0xff]  ;;  %v2345_v9 = vpack.c.bf16 %v645_v8, %v545_v6 }
 0x203   : > { %v2343_v7 = vpack.c.bf16 %v643_v5, %v543_v4  ;;  %v13109_v6 = vld [vmem:[%s16867_s2 + $0x1240] sm:$0xff]  }
 0x204   : > { %12017 = vmatpush3.bf16.msra.mxu0 %v13019_v25  ;;  %12039 = vmatpush3.bf16.msra.mxu1 %v13020_v27  ;;  %v13053_v27 = vld [vmem:[%s16867_s2 + $0x1050] sm:$0xff]   ;;  %v13111_v8 = vld [vmem:[%s16867_s2 + $0x1200] sm:$0xff]  }
 0x205   : > { %12018 = vmatprep.subr.bf16.mxu0 %v13021_v29  ;;  %12040 = vmatprep.subr.bf16.mxu1 %v13022_v32 }
 0x207   : > { %v11744_v26 = vpop.f32.mrb[32].mxu1 }
 0x208   : > { %v11745_v31 = vpop.f32.mrb[33].mxu1  ;;  %12019 = vmatpush3.bf16.msra.mxu0 %v13023_v35  ;;  %12041 = vmatpush3.bf16.msra.mxu1 %v13024_v38  ;;  %v13056_v35 = vld [vmem:[%s16867_s2 + $0x1090] sm:$0xff]  }
 0x209   : > { %v11746_v33 = vadd.f32 %v11745_v31, %v11744_v26  ;;  %v11747_v37 = vpop.f32.mrb[34].mxu1  ;;  %12020 = vmatprep.subr.bf16.mxu0 %v13025_v40 }
 0x20a   : > { %v11748_v43 = vpop.f32.mrb[35].mxu1 }
 0x20b   : > { %v11749_v45 = vadd.f32 %v11748_v43, %v11747_v37  ;;  %v13059_v43 = vld [vmem:[%s16867_s2 + $0x1018] sm:$0xff]  }
 0x20c   : > { %12021 = vmatpush3.bf16.msra.mxu0 %v13027_v46  ;;  %v13061_v46 = vld [vmem:[%s16867_s2 + $0x1060] sm:$0xff]  }
 0x20d   : > { %12022 = vmatprep.subr.bf16.mxu0 %v13029_v49  ;;  %v13064_v49 = vld [vmem:[%s16867_s2 + $0x10a0] sm:$0xff]  }
 0x210   : > { %12023 = vmatpush3.bf16.msra.mxu0 %v13031_v52  ;;  %v13067_v52 = vld [vmem:[%s16867_s2 + $0x1028] sm:$0xff]  }
 0x211   : > { %12024 = vmatprep.subr.bf16.mxu0 %v13033_v54  ;;  %v13069_v54 = vld [vmem:[%s16867_s2 + $0x1070] sm:$0xff]  }
 0x212   : > { %v11722_v24 = vpop.f32.mrb[32].mxu0 }
 0x213   : > { %v11723_v28 = vpop.f32.mrb[33].mxu0 }
 0x214   : > { %v11724_v30 = vadd.f32 %v11723_v28, %v11722_v24  ;;  %v11725_v34 = vpop.f32.mrb[34].mxu0  ;;  %12025 = vmatpush3.bf16.msra.mxu0 %v13035_v56  ;;  %v13052_v24 = vld [vmem:[%s16867_s2 + $0x1088] sm:$0xff]   ;;  %v13071_v56 = vld [vmem:[%s16867_s2 + $0x1030] sm:$0xff]  }
 0x215   : > { %v11726_v39 = vpop.f32.mrb[35].mxu0  ;;  %12026 = vmatprep.subr.bf16.mxu0 %v13037_v58  ;;  %v13073_v58 = vld [vmem:[%s16867_s2 + $0x1078] sm:$0xff]  }
 0x216   : > { %v7870_v36 = vadd.f32 %v11724_v30, %v15149_v44  ;;  %v11727_v42 = vadd.f32 %v11726_v39, %v11725_v34  ;;  %v13026_v44 = vld [vmem:[%s16867_s2 + $0xfd8] sm:$0xff]   ;;  %v13054_v30 = vld [vmem:[%s16867_s2 + $0x10d0] sm:$0xff]  }
 0x217   : > { %12042 = vmatprep.subr.bf16.mxu1 %v13026_v44  ;;  %v13057_v39 = vld [vmem:[%s16867_s2 + $0x1058] sm:$0xff]  }
 0x218   : > { %v15262_v41 = vadd.f32 %v11746_v33, %v7870_v36  ;;  %v7873_v47 = vadd.f32 %v11727_v42, %v15164_v53  ;;  %12043 = vmatpush3.bf16.msra.mxu1 %v13028_v48  ;;  %v13032_v53 = vld [vmem:[%s16867_s2 + $0xfa0] sm:$0xff]   ;;  %12027 = vmatpush3.bf16.msra.mxu0 %v13039_v60  ;;  %v13055_v33 = vld [vmem:[%s16867_s2 + $0x1010] sm:$0xff]   ;;  %v13060_v44 = vld [vmem:[%s16867_s2 + $0x1098] sm:$0xff]  }
 0x219   : > { %12044 = vmatprep.subr.bf16.mxu1 %v13030_v51  ;;  %12028 = vmatprep.subr.bf16.mxu0 %v13041_v62  ;;  %v13063_v48 = vld [vmem:[%s16867_s2 + $0x1020] sm:$0xff]   ;;  %v13066_v51 = vld [vmem:[%s16867_s2 + $0x10e8] sm:$0xff]   ;;  %v13075_v60 = vld [vmem:[%s16867_s2 + $0x1038] sm:$0xff]  }
 0x21a   : > { %v15277_v50 = vadd.f32 %v11749_v45, %v7873_v47  ;;  %v13062_v47 = vld [vmem:[%s16867_s2 + $0x10e0] sm:$0xff]   ;;  %v544_v62 = vld [vmem:[%s13704_s23 + $0x208] sm:$0xff] }
 0x21c   : > { %12045 = vmatpush3.bf16.msra.mxu1 %v13032_v53  ;;  %12029 = vmatpush3.bf16.msra.mxu0 %v13043_v0  ;;  %v13068_v53 = vld [vmem:[%s16867_s2 + $0x10a8] sm:$0xff]   ;;  %v546_v0 = vld [vmem:[%s13704_s23 + $0x218] sm:$0xff] }
 0x21d   : > { %12046 = vmatprep.subr.bf16.mxu1 %v13034_v55  ;;  %12058 = vmatprep.subr.bf16.mxu0 %v13045_v14  ;;  %v13070_v55 = vld [vmem:[%s16867_s2 + $0x10f0] sm:$0xff]   ;;  %v13081_v14 = vld [vmem:[%s16867_s2 + $0x1148] sm:$0xff]  }
 0x21f   : > { %8442 = vmatmul.mubr.bf16.vlgmr.msra.gmra.mrb[60].mxu0 %v2339_v10  ;;  %v13077_v10 = vld [vmem:[%s16867_s2 + $0x1140] sm:$0xff]  }
 0x220   : > { %12047 = vmatpush3.bf16.msra.mxu1 %v13036_v57  ;;  %12059 = vmatpush3.bf16.msra.mxu0 %v13047_v16  ;;  %v13072_v57 = vld [vmem:[%s16867_s2 + $0x10b0] sm:$0xff]   ;;  %v13082_v16 = vld [vmem:[%s16867_s2 + $0x11c8] sm:$0xff]  }
 0x221   : > { %12048 = vmatprep.subr.bf16.mxu1 %v13038_v59  ;;  %12060 = vmatprep.subr.bf16.mxu0 %v13049_v18  ;;  %v13074_v59 = vld [vmem:[%s16867_s2 + $0x10f8] sm:$0xff]   ;;  %v13083_v18 = vld [vmem:[%s16867_s2 + $0x1108] sm:$0xff]  }
 0x224   : > { %12049 = vmatpush3.bf16.msra.mxu1 %v13040_v61  ;;  %12061 = vmatpush3.bf16.msra.mxu0 %v13051_v22  ;;  %v13076_v61 = vld [vmem:[%s16867_s2 + $0x10b8] sm:$0xff]  }
 0x225   : > { %12050 = vmatprep.subr.bf16.mxu1 %v13042_v63  ;;  %12062 = vmatprep.subr.bf16.mxu0 %v13053_v27  ;;  %v644_v63 = vld [vmem:[%s13704_s23 + $0x528] sm:$0xff] }
 0x226   : > { %v2344_v2 = vpack.c.bf16 %v644_v63, %v544_v62  ;;  %v650_v62 = vld [vmem:[%s13704_s23 + $0x558] sm:$0xff]  ;;  %v547_v63 = vld [vmem:[%s13704_s23 + $0x220] sm:$0xff] }
 0x228   : > { %12051 = vmatpush3.bf16.msra.mxu1 %v13044_v1  ;;  %12063 = vmatpush3.bf16.msra.mxu0 %v13055_v33  ;;  %v646_v1 = vld [vmem:[%s13704_s23 + $0x538] sm:$0xff] }
 0x229   : > { %12080 = vmatprep.subr.bf16.mxu1 %v13046_v15  ;;  %12064 = vmatprep.subr.bf16.mxu0 %v13057_v39  ;;  %v2346_v3 = vpack.c.bf16 %v646_v1, %v546_v0  ;;  %v13091_v39 = vld [vmem:[%s16867_s2 + $0x1118] sm:$0xff]   ;;  %v647_v1 = vld [vmem:[%s13704_s23 + $0x540] sm:$0xff] }
 0x22a   : > { %8523 = vmatprep.mubr.bf16.mxu0 %v2344_v2  ;;  %v549_v2 = vld [vmem:[%s13704_s23 + $0x230] sm:$0xff]  ;;  %v2347_v4 = vpack.c.bf16 %v647_v1, %v547_v63 }
 0x22b   : > { %8483 = vmatmul.mubr.bf16.vlgmr.msra.gmra.mrb[60].mxu1 %v2341_v13  ;;  %v13080_v13 = vld [vmem:[%s16867_s2 + $0x1180] sm:$0xff]   ;;  %v553_v63 = vld [vmem:[%s13704_s23 + $0x250] sm:$0xff] }
 0x22c   : > { %12081 = vmatpush3.bf16.msra.mxu1 %v13048_v17  ;;  %12065 = vmatpush3.bf16.msra.mxu0 %v13059_v43  ;;  %v13094_v43 = vld [vmem:[%s16867_s2 + $0x11e0] sm:$0xff]  }
 0x22d   : > { %12082 = vmatprep.subr.bf16.mxu1 %v13050_v20  ;;  %12066 = vmatprep.subr.bf16.mxu0 %v13061_v46  ;;  %v13084_v20 = vld [vmem:[%s16867_s2 + $0x1188] sm:$0xff]  }
 0x22e   : > { %8564 = vmatprep.mubr.bf16.mxu1 %v2346_v3  ;;  %v13097_v46 = vld [vmem:[%s16867_s2 + $0x1168] sm:$0xff]   ;;  %v649_v3 = vld [vmem:[%s13704_s23 + $0x550] sm:$0xff] }
 0x22f   : > { %v2349_v5 = vpack.c.bf16 %v649_v3, %v549_v2  ;;  %v13141_v2 = vld [vmem:[%s16867_s2 + $0x1340] sm:$0xff]  }
 0x230   : > { %12083 = vmatpush3.bf16.msra.mxu1 %v13052_v24  ;;  %12067 = vmatpush3.bf16.msra.mxu0 %v13063_v48  ;;  %v13099_v48 = vld [vmem:[%s16867_s2 + $0x1128] sm:$0xff]   ;;  %v13142_v3 = vld [vmem:[%s16867_s2 + $0x13c0] sm:$0xff]  }
 0x231   : > { %12084 = vmatprep.subr.bf16.mxu1 %v13054_v30 }
 0x232   : > { %v11766_v19 = vpop.f32.mrb[36].mxu0  ;;  %v11788_v21 = vpop.f32.mrb[36].mxu1 }
 0x233   : > { %v11767_v23 = vpop.f32.mrb[37].mxu0  ;;  %v11789_v26 = vpop.f32.mrb[37].mxu1 }
 0x234   : > { %v11768_v25 = vadd.f32 %v11767_v23, %v11766_v19  ;;  %v11790_v28 = vadd.f32 %v11789_v26, %v11788_v21  ;;  %v11769_v29 = vpop.f32.mrb[38].mxu0  ;;  %v11791_v32 = vpop.f32.mrb[38].mxu1  ;;  %12085 = vmatpush3.bf16.msra.mxu1 %v13056_v35  ;;  %v13085_v23 = vld [vmem:[%s16867_s2 + $0x1150] sm:$0xff]   ;;  %v13089_v35 = vld [vmem:[%s16867_s2 + $0x1158] sm:$0xff]  }
 0x235   : > { %v11770_v34 = vpop.f32.mrb[39].mxu0  ;;  %v11792_v38 = vpop.f32.mrb[39].mxu1  ;;  %v13086_v26 = vld [vmem:[%s16867_s2 + $0x11d0] sm:$0xff]  }
 0x236   : > { %v7952_v31 = vadd.f32 %v11768_v25, %v15262_v41  ;;  %v11771_v37 = vadd.f32 %v11770_v34, %v11769_v29  ;;  %v11793_v40 = vadd.f32 %v11792_v38, %v11791_v32  ;;  %v13058_v41 = vld [vmem:[%s16867_s2 + $0x10d8] sm:$0xff]   ;;  %v13087_v29 = vld [vmem:[%s16867_s2 + $0x1110] sm:$0xff]  }
 0x237   : > { %12086 = vmatprep.subr.bf16.mxu1 %v13058_v41 }
 0x238   : > { %v15369_v36 = vadd.f32 %v11790_v28, %v7952_v31  ;;  %v7955_v42 = vadd.f32 %v11771_v37, %v15277_v50  ;;  %12087 = vmatpush3.bf16.msra.mxu1 %v13060_v44  ;;  %v13065_v50 = vld [vmem:[%s16867_s2 + $0x1068] sm:$0xff]   ;;  %v13088_v31 = vld [vmem:[%s16867_s2 + $0x1190] sm:$0xff]   ;;  %v13090_v37 = vld [vmem:[%s16867_s2 + $0x11d8] sm:$0xff]  }
 0x239   : > { %12088 = vmatprep.subr.bf16.mxu1 %v13062_v47  ;;  %12068 = vmatprep.subr.bf16.mxu0 %v13065_v50  ;;  %v13095_v44 = vld [vmem:[%s16867_s2 + $0x1120] sm:$0xff]   ;;  %v13098_v47 = vld [vmem:[%s16867_s2 + $0x11e8] sm:$0xff]   ;;  %v13101_v50 = vld [vmem:[%s16867_s2 + $0x1170] sm:$0xff]  }
 0x23a   : > { %v15384_v45 = vadd.f32 %v11793_v40, %v7955_v42  ;;  %12069 = vmatpush3.bf16.msra.mxu0 %v13067_v52  ;;  %v13092_v40 = vld [vmem:[%s16867_s2 + $0x1198] sm:$0xff]   ;;  %v13093_v42 = vld [vmem:[%s16867_s2 + $0x1160] sm:$0xff]   ;;  %v13103_v52 = vld [vmem:[%s16867_s2 + $0x1130] sm:$0xff]  }
 0x23b   : > { %12070 = vmatprep.subr.bf16.mxu0 %v13069_v54  ;;  %v13105_v54 = vld [vmem:[%s16867_s2 + $0x1178] sm:$0xff]  }
 0x23c   : > { %12089 = vmatpush3.bf16.msra.mxu1 %v13064_v49  ;;  %v13100_v49 = vld [vmem:[%s16867_s2 + $0x11a8] sm:$0xff]  }
 0x23d   : > { %12090 = vmatprep.subr.bf16.mxu1 %v13066_v51  ;;  %v13102_v51 = vld [vmem:[%s16867_s2 + $0x11f0] sm:$0xff]  }
 0x23e   : > { %12071 = vmatpush3.bf16.msra.mxu0 %v13071_v56  ;;  %v13107_v56 = vld [vmem:[%s16867_s2 + $0x1138] sm:$0xff]  }
 0x23f   : > { %12072 = vmatprep.subr.bf16.mxu0 %v13073_v58  ;;  %v548_v58 = vld [vmem:[%s13704_s23 + $0x228] sm:$0xff] }
 0x240   : > { %12091 = vmatpush3.bf16.msra.mxu1 %v13068_v53  ;;  %v13104_v53 = vld [vmem:[%s16867_s2 + $0x11b0] sm:$0xff]  }
 0x241   : > { %12092 = vmatprep.subr.bf16.mxu1 %v13070_v55  ;;  %v13106_v55 = vld [vmem:[%s16867_s2 + $0x11f8] sm:$0xff]  }
 0x242   : > { %12073 = vmatpush3.bf16.msra.mxu0 %v13075_v60 }
 0x243   : > { %12102 = vmatprep.subr.bf16.mxu0 %v13077_v10  ;;  %v13113_v10 = vld [vmem:[%s16867_s2 + $0x1248] sm:$0xff]  }
 0x244   : > { %12093 = vmatpush3.bf16.msra.mxu1 %v13072_v57  ;;  %v13108_v57 = vld [vmem:[%s16867_s2 + $0x11b8] sm:$0xff]  }
 0x245   : > { %12094 = vmatprep.subr.bf16.mxu1 %v13074_v59  ;;  %8524 = vmatmul.mubr.bf16.vlgmr.msra.gmra.mrb[64].mxu0 %v2343_v7  ;;  %v648_v59 = vld [vmem:[%s13704_s23 + $0x548] sm:$0xff]  ;;  %v13110_v7 = vld [vmem:[%s16867_s2 + $0x12c0] sm:$0xff]  }
 0x246   : > { %12103 = vmatpush3.bf16.msra.mxu0 %v13079_v12  ;;  %v2348_v60 = vpack.c.bf16 %v648_v59, %v548_v58  ;;  %v654_v58 = vld [vmem:[%s13704_s23 + $0x578] sm:$0xff]  ;;  %v551_v59 = vld [vmem:[%s13704_s23 + $0x240] sm:$0xff] }
 0x247   : > { %12104 = vmatprep.subr.bf16.mxu0 %v13081_v14 }
 0x248   : > { %12095 = vmatpush3.bf16.msra.mxu1 %v13076_v61  ;;  %v550_v61 = vld [vmem:[%s13704_s23 + $0x238] sm:$0xff]  ;;  %8605 = vmatprep.mubr.bf16.mxu0 %v2348_v60  ;;  %v651_v60 = vld [vmem:[%s13704_s23 + $0x560] sm:$0xff] }
 0x249   : > { %12124 = vmatprep.subr.bf16.mxu1 %v13078_v11  ;;  %v2350_v0 = vpack.c.bf16 %v650_v62, %v550_v61  ;;  %v13114_v11 = vld [vmem:[%s16867_s2 + $0x12c8] sm:$0xff]   ;;  %v2351_v62 = vpack.c.bf16 %v651_v60, %v551_v59  ;;  %v657_v60 = vld [vmem:[%s13704_s23 + $0x590] sm:$0xff] }
 0x24a   : > { %12105 = vmatpush3.bf16.msra.mxu0 %v13083_v18 }
 0x24b   : > { %8565 = vmatmul.mubr.bf16.vlgmr.msra.gmra.mrb[64].mxu1 %v2345_v9  ;;  %12106 = vmatprep.subr.bf16.mxu0 %v13085_v23  ;;  %v13112_v9 = vld [vmem:[%s16867_s2 + $0x1280] sm:$0xff]   ;;  %v13119_v23 = vld [vmem:[%s16867_s2 + $0x1210] sm:$0xff]  }
 0x24c   : > { %12125 = vmatpush3.bf16.msra.mxu1 %v13080_v13  ;;  %8646 = vmatprep.mubr.bf16.mxu1 %v2350_v0  ;;  %v13115_v13 = vld [vmem:[%s16867_s2 + $0x1208] sm:$0xff]   ;;  %v653_v0 = vld [vmem:[%s13704_s23 + $0x570] sm:$0xff] }
 0x24d   : > { %12126 = vmatprep.subr.bf16.mxu1 %v13082_v16  ;;  %v2353_v1 = vpack.c.bf16 %v653_v0, %v553_v63  ;;  %v13174_v63 = vld [vmem:[%s16867_s2 + $0x14c0] sm:$0xff]  }
 0x24e   : > { %12107 = vmatpush3.bf16.msra.mxu0 %v13087_v29  ;;  %v13175_v0 = vld [vmem:[%s16867_s2 + $0x1400] sm:$0xff]  }
 0x24f   : > { %12108 = vmatprep.subr.bf16.mxu0 %v13089_v35 }
 0x250   : > { %12127 = vmatpush3.bf16.msra.mxu1 %v13084_v20  ;;  %v13118_v20 = vld [vmem:[%s16867_s2 + $0x12d0] sm:$0xff]  }
 0x251   : > { %12128 = vmatprep.subr.bf16.mxu1 %v13086_v26  ;;  %v13120_v26 = vld [vmem:[%s16867_s2 + $0x1290] sm:$0xff]  }
 0x252   : > { %v11810_v15 = vpop.f32.mrb[40].mxu0  ;;  %v11832_v17 = vpop.f32.mrb[40].mxu1  ;;  %12109 = vmatpush3.bf16.msra.mxu0 %v13091_v39  ;;  %v13126_v39 = vld [vmem:[%s16867_s2 + $0x12e0] sm:$0xff]  }
 0x253   : > { %v11811_v19 = vpop.f32.mrb[41].mxu0  ;;  %v11833_v22 = vpop.f32.mrb[41].mxu1  ;;  %12110 = vmatprep.subr.bf16.mxu0 %v13093_v42  ;;  %v13129_v42 = vld [vmem:[%s16867_s2 + $0x1268] sm:$0xff]  }
 0x254   : > { %v11812_v21 = vadd.f32 %v11811_v19, %v11810_v15  ;;  %v11834_v24 = vadd.f32 %v11833_v22, %v11832_v17  ;;  %v11813_v25 = vpop.f32.mrb[42].mxu0  ;;  %v11835_v28 = vpop.f32.mrb[42].mxu1  ;;  %12129 = vmatpush3.bf16.msra.mxu1 %v13088_v31  ;;  %v13116_v15 = vld [vmem:[%s16867_s2 + $0x1288] sm:$0xff]   ;;  %v13117_v17 = vld [vmem:[%s16867_s2 + $0x1250] sm:$0xff]  }
 0x255   : > { %v11814_v30 = vpop.f32.mrb[43].mxu0  ;;  %v11836_v34 = vpop.f32.mrb[43].mxu1  ;;  %12130 = vmatprep.subr.bf16.mxu1 %v13090_v37  ;;  %v13125_v37 = vld [vmem:[%s16867_s2 + $0x1260] sm:$0xff]  }
 0x256   : > { %v8034_v27 = vadd.f32 %v11812_v21, %v15369_v36  ;;  %v11815_v33 = vadd.f32 %v11814_v30, %v11813_v25  ;;  %v11837_v36 = vadd.f32 %v11836_v34, %v11835_v28  ;;  %12111 = vmatpush3.bf16.msra.mxu0 %v13095_v44  ;;  %v13121_v28 = vld [vmem:[%s16867_s2 + $0x1258] sm:$0xff]   ;;  %v13131_v44 = vld [vmem:[%s16867_s2 + $0x1228] sm:$0xff]  }
 0x257   : > { %12112 = vmatprep.subr.bf16.mxu0 %v13097_v46  ;;  %v13123_v34 = vld [vmem:[%s16867_s2 + $0x1218] sm:$0xff]   ;;  %v13133_v46 = vld [vmem:[%s16867_s2 + $0x1270] sm:$0xff]  }
 0x258   : > { %v15479_v32 = vadd.f32 %v11834_v24, %v8034_v27  ;;  %v8037_v38 = vadd.f32 %v11815_v33, %v15384_v45  ;;  %12131 = vmatpush3.bf16.msra.mxu1 %v13092_v40  ;;  %v13096_v45 = vld [vmem:[%s16867_s2 + $0x11a0] sm:$0xff]  }
 0x259   : > { %12132 = vmatprep.subr.bf16.mxu1 %v13094_v43  ;;  %v13127_v40 = vld [vmem:[%s16867_s2 + $0x1220] sm:$0xff]   ;;  %v13130_v43 = vld [vmem:[%s16867_s2 + $0x12e8] sm:$0xff]  }
 0x25a   : > { %v15494_v41 = vadd.f32 %v11837_v36, %v8037_v38  ;;  %12113 = vmatpush3.bf16.msra.mxu0 %v13099_v48  ;;  %v13124_v36 = vld [vmem:[%s16867_s2 + $0x1298] sm:$0xff]   ;;  %v13135_v48 = vld [vmem:[%s16867_s2 + $0x1230] sm:$0xff]  }
 0x25b   : > { %12114 = vmatprep.subr.bf16.mxu0 %v13101_v50  ;;  %v13137_v50 = vld [vmem:[%s16867_s2 + $0x1278] sm:$0xff]  }
 0x25c   : > { %12133 = vmatpush3.bf16.msra.mxu1 %v13096_v45  ;;  %v13132_v45 = vld [vmem:[%s16867_s2 + $0x12a8] sm:$0xff]  }
 0x25d   : > { %12134 = vmatprep.subr.bf16.mxu1 %v13098_v47  ;;  %v13134_v47 = vld [vmem:[%s16867_s2 + $0x12f0] sm:$0xff]  }
 0x25e   : > { %12115 = vmatpush3.bf16.msra.mxu0 %v13103_v52  ;;  %v13139_v52 = vld [vmem:[%s16867_s2 + $0x1238] sm:$0xff]  }
 0x25f   : > { %12116 = vmatprep.subr.bf16.mxu0 %v13105_v54  ;;  %v552_v54 = vld [vmem:[%s13704_s23 + $0x248] sm:$0xff] }
 0x260   : > { %12135 = vmatpush3.bf16.msra.mxu1 %v13100_v49  ;;  %v13136_v49 = vld [vmem:[%s16867_s2 + $0x12b0] sm:$0xff]  }
 0x261   : > { %12136 = vmatprep.subr.bf16.mxu1 %v13102_v51  ;;  %v13138_v51 = vld [vmem:[%s16867_s2 + $0x12f8] sm:$0xff]  }
 0x262   : > { %12117 = vmatpush3.bf16.msra.mxu0 %v13107_v56  ;;  %v554_v56 = vld [vmem:[%s13704_s23 + $0x258] sm:$0xff] }
 0x263   : > { %12146 = vmatprep.subr.bf16.mxu0 %v13109_v6  ;;  %v2354_v61 = vpack.c.bf16 %v654_v58, %v554_v56  ;;  %v13145_v6 = vld [vmem:[%s16867_s2 + $0x1348] sm:$0xff]   ;;  %v555_v56 = vld [vmem:[%s13704_s23 + $0x260] sm:$0xff]  ;;  %v557_v58 = vld [vmem:[%s13704_s23 + $0x270] sm:$0xff] }
 0x264   : > { %12137 = vmatpush3.bf16.msra.mxu1 %v13104_v53  ;;  %v13140_v53 = vld [vmem:[%s16867_s2 + $0x12b8] sm:$0xff]  }
 0x265   : > { %12138 = vmatprep.subr.bf16.mxu1 %v13106_v55  ;;  %8606 = vmatmul.mubr.bf16.vlgmr.msra.gmra.mrb[68].mxu0 %v2347_v4  ;;  %v652_v55 = vld [vmem:[%s13704_s23 + $0x568] sm:$0xff]  ;;  %v13143_v4 = vld [vmem:[%s16867_s2 + $0x1300] sm:$0xff]  }
 0x266   : > { %12147 = vmatpush3.bf16.msra.mxu0 %v13111_v8  ;;  %v13146_v8 = vld [vmem:[%s16867_s2 + $0x13c8] sm:$0xff]  }
 0x267   : > { %12148 = vmatprep.subr.bf16.mxu0 %v13113_v10  ;;  %v13147_v10 = vld [vmem:[%s16867_s2 + $0x1308] sm:$0xff]  }
 0x268   : > { %12139 = vmatpush3.bf16.msra.mxu1 %v13108_v57  ;;  %v2352_v57 = vpack.c.bf16 %v652_v55, %v552_v54 }
 0x269   : > { %12168 = vmatprep.subr.bf16.mxu1 %v13110_v7 }
 0x26a   : > { %12149 = vmatpush3.bf16.msra.mxu0 %v13115_v13  ;;  %8687 = vmatprep.mubr.bf16.mxu0 %v2352_v57  ;;  %v655_v57 = vld [vmem:[%s13704_s23 + $0x580] sm:$0xff] }
 0x26b   : > { %8647 = vmatmul.mubr.bf16.vlgmr.msra.gmra.mrb[68].mxu1 %v2349_v5  ;;  %12150 = vmatprep.subr.bf16.mxu0 %v13117_v17  ;;  %v13144_v5 = vld [vmem:[%s16867_s2 + $0x1380] sm:$0xff]   ;;  %v2355_v59 = vpack.c.bf16 %v655_v57, %v555_v56 }
 0x26c   : > { %12169 = vmatpush3.bf16.msra.mxu1 %v13112_v9  ;;  %8728 = vmatprep.mubr.bf16.mxu1 %v2354_v61  ;;  %v2357_v61 = vpack.c.bf16 %v657_v60, %v557_v58  ;;  %v13205_v58 = vld [vmem:[%s16867_s2 + $0x1540] sm:$0xff]  }
 0x26d   : > { %12170 = vmatprep.subr.bf16.mxu1 %v13114_v11  ;;  %v13207_v60 = vld [vmem:[%s16867_s2 + $0x1500] sm:$0xff]  }
 0x26e   : > { %12151 = vmatpush3.bf16.msra.mxu0 %v13119_v23  ;;  %v13152_v23 = vld [vmem:[%s16867_s2 + $0x1390] sm:$0xff]  }
 0x26f   : > { %12152 = vmatprep.subr.bf16.mxu0 %v13121_v28 }
 0x270   : > { %12171 = vmatpush3.bf16.msra.mxu1 %v13116_v15  ;;  %v13149_v15 = vld [vmem:[%s16867_s2 + $0x1350] sm:$0xff]  }
 0x271   : > { %12172 = vmatprep.subr.bf16.mxu1 %v13118_v20 }
 0x272   : > { %v11854_v12 = vpop.f32.mrb[44].mxu0  ;;  %v11876_v14 = vpop.f32.mrb[44].mxu1  ;;  %12153 = vmatpush3.bf16.msra.mxu0 %v13123_v34  ;;  %v13157_v34 = vld [vmem:[%s16867_s2 + $0x1360] sm:$0xff]  }
 0x273   : > { %v11855_v16 = vpop.f32.mrb[45].mxu0  ;;  %v11877_v19 = vpop.f32.mrb[45].mxu1  ;;  %12154 = vmatprep.subr.bf16.mxu0 %v13125_v37  ;;  %v13160_v37 = vld [vmem:[%s16867_s2 + $0x13a0] sm:$0xff]  }
 0x274   : > { %v11856_v18 = vadd.f32 %v11855_v16, %v11854_v12  ;;  %v11878_v21 = vadd.f32 %v11877_v19, %v11876_v14  ;;  %v11857_v22 = vpop.f32.mrb[46].mxu0  ;;  %v11879_v25 = vpop.f32.mrb[46].mxu1  ;;  %12173 = vmatpush3.bf16.msra.mxu1 %v13120_v26  ;;  %v13148_v12 = vld [vmem:[%s16867_s2 + $0x1388] sm:$0xff]  }
 0x275   : > { %v11858_v27 = vpop.f32.mrb[47].mxu0  ;;  %v11880_v31 = vpop.f32.mrb[47].mxu1 }
 0x276   : > { %v8116_v24 = vadd.f32 %v11856_v18, %v15479_v32  ;;  %v11859_v30 = vadd.f32 %v11858_v27, %v11857_v22  ;;  %v13122_v32 = vld [vmem:[%s16867_s2 + $0x12d8] sm:$0xff]   ;;  %v11881_v33 = vadd.f32 %v11880_v31, %v11879_v25  ;;  %12155 = vmatpush3.bf16.msra.mxu0 %v13127_v40  ;;  %v13150_v18 = vld [vmem:[%s16867_s2 + $0x13d0] sm:$0xff]   ;;  %v13163_v40 = vld [vmem:[%s16867_s2 + $0x1328] sm:$0xff]  }
 0x277   : > { %12174 = vmatprep.subr.bf16.mxu1 %v13122_v32  ;;  %12156 = vmatprep.subr.bf16.mxu0 %v13129_v42  ;;  %v13153_v27 = vld [vmem:[%s16867_s2 + $0x1358] sm:$0xff]   ;;  %v13165_v42 = vld [vmem:[%s16867_s2 + $0x1370] sm:$0xff]  }
 0x278   : > { %v15592_v29 = vadd.f32 %v11878_v21, %v8116_v24  ;;  %v8119_v35 = vadd.f32 %v11859_v30, %v15494_v41  ;;  %12175 = vmatpush3.bf16.msra.mxu1 %v13124_v36  ;;  %v13128_v41 = vld [vmem:[%s16867_s2 + $0x12a0] sm:$0xff]   ;;  %v13151_v21 = vld [vmem:[%s16867_s2 + $0x1310] sm:$0xff]   ;;  %v13155_v31 = vld [vmem:[%s16867_s2 + $0x1318] sm:$0xff]  }
 0x279   : > { %12176 = vmatprep.subr.bf16.mxu1 %v13126_v39  ;;  %v13156_v32 = vld [vmem:[%s16867_s2 + $0x1398] sm:$0xff]   ;;  %v13159_v36 = vld [vmem:[%s16867_s2 + $0x1320] sm:$0xff]   ;;  %v13162_v39 = vld [vmem:[%s16867_s2 + $0x13e8] sm:$0xff]  }
 0x27a   : > { %v15607_v38 = vadd.f32 %v11881_v33, %v8119_v35  ;;  %12157 = vmatpush3.bf16.msra.mxu0 %v13131_v44  ;;  %v13158_v35 = vld [vmem:[%s16867_s2 + $0x13e0] sm:$0xff]   ;;  %v13167_v44 = vld [vmem:[%s16867_s2 + $0x1330] sm:$0xff]  }
 0x27b   : > { %12158 = vmatprep.subr.bf16.mxu0 %v13133_v46  ;;  %v13169_v46 = vld [vmem:[%s16867_s2 + $0x1378] sm:$0xff]  }
 0x27c   : > { %12177 = vmatpush3.bf16.msra.mxu1 %v13128_v41  ;;  %v13164_v41 = vld [vmem:[%s16867_s2 + $0x13a8] sm:$0xff]  }
 0x27d   : > { %12178 = vmatprep.subr.bf16.mxu1 %v13130_v43  ;;  %v13166_v43 = vld [vmem:[%s16867_s2 + $0x13f0] sm:$0xff]  }
 0x27e   : > { %12159 = vmatpush3.bf16.msra.mxu0 %v13135_v48  ;;  %v13171_v48 = vld [vmem:[%s16867_s2 + $0x1338] sm:$0xff]  }
 0x27f   : > { %12160 = vmatprep.subr.bf16.mxu0 %v13137_v50  ;;  %v556_v50 = vld [vmem:[%s13704_s23 + $0x268] sm:$0xff] }
 0x280   : > { %12179 = vmatpush3.bf16.msra.mxu1 %v13132_v45  ;;  %v13168_v45 = vld [vmem:[%s16867_s2 + $0x13b0] sm:$0xff]  }
 0x281   : > { %12180 = vmatprep.subr.bf16.mxu1 %v13134_v47  ;;  %v13170_v47 = vld [vmem:[%s16867_s2 + $0x13f8] sm:$0xff]  }
 0x282   : > { %12161 = vmatpush3.bf16.msra.mxu0 %v13139_v52  ;;  %v558_v52 = vld [vmem:[%s13704_s23 + $0x278] sm:$0xff] }
 0x283   : > { %12190 = vmatprep.subr.bf16.mxu0 %v13141_v2  ;;  %v13177_v2 = vld [vmem:[%s16867_s2 + $0x1448] sm:$0xff]  }
 0x284   : > { %12181 = vmatpush3.bf16.msra.mxu1 %v13136_v49  ;;  %v13172_v49 = vld [vmem:[%s16867_s2 + $0x13b8] sm:$0xff]  }
 0x285   : > { %12182 = vmatprep.subr.bf16.mxu1 %v13138_v51  ;;  %8688 = vmatmul.mubr.bf16.vlgmr.msra.gmra.mrb[72].mxu0 %v2351_v62  ;;  %v656_v51 = vld [vmem:[%s13704_s23 + $0x588] sm:$0xff]  ;;  %v13173_v62 = vld [vmem:[%s16867_s2 + $0x1440] sm:$0xff]  }
 0x286   : > { %12191 = vmatpush3.bf16.msra.mxu0 %v13143_v4  ;;  %v2356_v54 = vpack.c.bf16 %v656_v51, %v556_v50  ;;  %v13178_v4 = vld [vmem:[%s16867_s2 + $0x14c8] sm:$0xff]   ;;  %v662_v50 = vld [vmem:[%s13704_s23 + $0x5b8] sm:$0xff]  ;;  %v559_v51 = vld [vmem:[%s13704_s23 + $0x280] sm:$0xff] }
 0x287   : > { %12192 = vmatprep.subr.bf16.mxu0 %v13145_v6  ;;  %v13179_v6 = vld [vmem:[%s16867_s2 + $0x1408] sm:$0xff]  }
 0x288   : > { %12183 = vmatpush3.bf16.msra.mxu1 %v13140_v53  ;;  %v658_v53 = vld [vmem:[%s13704_s23 + $0x598] sm:$0xff]  ;;  %8769 = vmatprep.mubr.bf16.mxu0 %v2356_v54  ;;  %v561_v54 = vld [vmem:[%s13704_s23 + $0x290] sm:$0xff] }
 0x289   : > { %12212 = vmatprep.subr.bf16.mxu1 %v13142_v3  ;;  %v2358_v55 = vpack.c.bf16 %v658_v53, %v558_v52  ;;  %v659_v53 = vld [vmem:[%s13704_s23 + $0x5a0] sm:$0xff] }
 0x28a   : > { %12193 = vmatpush3.bf16.msra.mxu0 %v13147_v10  ;;  %v2359_v56 = vpack.c.bf16 %v659_v53, %v559_v51  ;;  %v565_v51 = vld [vmem:[%s13704_s23 + $0x2b0] sm:$0xff] }
 0x28b   : > { %8729 = vmatmul.mubr.bf16.vlgmr.msra.gmra.mrb[72].mxu1 %v2353_v1  ;;  %12194 = vmatprep.subr.bf16.mxu0 %v13149_v15  ;;  %v13176_v1 = vld [vmem:[%s16867_s2 + $0x1480] sm:$0xff]  }
 0x28c   : > { %12213 = vmatpush3.bf16.msra.mxu1 %v13144_v5  ;;  %8810 = vmatprep.mubr.bf16.mxu1 %v2358_v55  ;;  %v661_v55 = vld [vmem:[%s13704_s23 + $0x5b0] sm:$0xff] }
 0x28d   : > { %12214 = vmatprep.subr.bf16.mxu1 %v13146_v8  ;;  %v13180_v8 = vld [vmem:[%s16867_s2 + $0x1488] sm:$0xff]   ;;  %v2361_v57 = vpack.c.bf16 %v661_v55, %v561_v54  ;;  %v13237_v54 = vld [vmem:[%s16867_s2 + $0x1640] sm:$0xff]  }
 0x28e   : > { %12195 = vmatpush3.bf16.msra.mxu0 %v13151_v21  ;;  %v13238_v55 = vld [vmem:[%s16867_s2 + $0x16c0] sm:$0xff]  }
 0x28f   : > { %12196 = vmatprep.subr.bf16.mxu0 %v13153_v27  ;;  %v13187_v27 = vld [vmem:[%s16867_s2 + $0x1418] sm:$0xff]  }
 0x290   : > { %12215 = vmatpush3.bf16.msra.mxu1 %v13148_v12 }
 0x291   : > { %12216 = vmatprep.subr.bf16.mxu1 %v13150_v18 }
 0x292   : > { %v11898_v7 = vpop.f32.mrb[48].mxu0  ;;  %v11920_v9 = vpop.f32.mrb[48].mxu1  ;;  %12197 = vmatpush3.bf16.msra.mxu0 %v13155_v31  ;;  %v13190_v31 = vld [vmem:[%s16867_s2 + $0x14e0] sm:$0xff]  }
 0x293   : > { %v11899_v11 = vpop.f32.mrb[49].mxu0  ;;  %v11921_v14 = vpop.f32.mrb[49].mxu1  ;;  %12198 = vmatprep.subr.bf16.mxu0 %v13157_v34  ;;  %v13193_v34 = vld [vmem:[%s16867_s2 + $0x1468] sm:$0xff]  }
 0x294   : > { %v11900_v13 = vadd.f32 %v11899_v11, %v11898_v7  ;;  %v11922_v16 = vadd.f32 %v11921_v14, %v11920_v9  ;;  %v11901_v17 = vpop.f32.mrb[50].mxu0  ;;  %v11923_v20 = vpop.f32.mrb[50].mxu1  ;;  %12217 = vmatpush3.bf16.msra.mxu1 %v13152_v23  ;;  %v13181_v11 = vld [vmem:[%s16867_s2 + $0x1450] sm:$0xff]   ;;  %v13185_v23 = vld [vmem:[%s16867_s2 + $0x1458] sm:$0xff]  }
 0x295   : > { %v11902_v22 = vpop.f32.mrb[51].mxu0  ;;  %v11924_v26 = vpop.f32.mrb[51].mxu1  ;;  %v13182_v14 = vld [vmem:[%s16867_s2 + $0x14d0] sm:$0xff]  }
 0x296   : > { %v8198_v19 = vadd.f32 %v11900_v13, %v15592_v29  ;;  %v11903_v25 = vadd.f32 %v11902_v22, %v11901_v17  ;;  %v11925_v28 = vadd.f32 %v11924_v26, %v11923_v20  ;;  %v13154_v29 = vld [vmem:[%s16867_s2 + $0x13d8] sm:$0xff]   ;;  %12199 = vmatpush3.bf16.msra.mxu0 %v13159_v36  ;;  %v13183_v17 = vld [vmem:[%s16867_s2 + $0x1410] sm:$0xff]   ;;  %v13195_v36 = vld [vmem:[%s16867_s2 + $0x1428] sm:$0xff]  }
 0x297   : > { %12218 = vmatprep.subr.bf16.mxu1 %v13154_v29 }
 0x298   : > { %v15699_v24 = vadd.f32 %v11922_v16, %v8198_v19  ;;  %v8201_v30 = vadd.f32 %v11903_v25, %v15607_v38  ;;  %12219 = vmatpush3.bf16.msra.mxu1 %v13156_v32  ;;  %v13161_v38 = vld [vmem:[%s16867_s2 + $0x1368] sm:$0xff]   ;;  %v13184_v19 = vld [vmem:[%s16867_s2 + $0x1490] sm:$0xff]   ;;  %v13186_v25 = vld [vmem:[%s16867_s2 + $0x14d8] sm:$0xff]  }
 0x299   : > { %12220 = vmatprep.subr.bf16.mxu1 %v13158_v35  ;;  %12200 = vmatprep.subr.bf16.mxu0 %v13161_v38  ;;  %v13191_v32 = vld [vmem:[%s16867_s2 + $0x1420] sm:$0xff]   ;;  %v13194_v35 = vld [vmem:[%s16867_s2 + $0x14e8] sm:$0xff]   ;;  %v13197_v38 = vld [vmem:[%s16867_s2 + $0x1470] sm:$0xff]  }
 0x29a   : > { %v15714_v33 = vadd.f32 %v11925_v28, %v8201_v30  ;;  %12201 = vmatpush3.bf16.msra.mxu0 %v13163_v40  ;;  %v13188_v28 = vld [vmem:[%s16867_s2 + $0x1498] sm:$0xff]   ;;  %v13189_v30 = vld [vmem:[%s16867_s2 + $0x1460] sm:$0xff]   ;;  %v13199_v40 = vld [vmem:[%s16867_s2 + $0x1430] sm:$0xff]  }
 0x29b   : > { %12202 = vmatprep.subr.bf16.mxu0 %v13165_v42  ;;  %v13201_v42 = vld [vmem:[%s16867_s2 + $0x1478] sm:$0xff]  }
 0x29c   : > { %12221 = vmatpush3.bf16.msra.mxu1 %v13160_v37  ;;  %v13196_v37 = vld [vmem:[%s16867_s2 + $0x14a8] sm:$0xff]  }
 0x29d   : > { %12222 = vmatprep.subr.bf16.mxu1 %v13162_v39  ;;  %v13198_v39 = vld [vmem:[%s16867_s2 + $0x14f0] sm:$0xff]  }
 0x29e   : > { %12203 = vmatpush3.bf16.msra.mxu0 %v13167_v44  ;;  %v13203_v44 = vld [vmem:[%s16867_s2 + $0x1438] sm:$0xff]  }
 0x29f   : > { %12204 = vmatprep.subr.bf16.mxu0 %v13169_v46  ;;  %v560_v46 = vld [vmem:[%s13704_s23 + $0x288] sm:$0xff] }
 0x2a0   : > { %12223 = vmatpush3.bf16.msra.mxu1 %v13164_v41  ;;  %v13200_v41 = vld [vmem:[%s16867_s2 + $0x14b0] sm:$0xff]  }
 0x2a1   : > { %12224 = vmatprep.subr.bf16.mxu1 %v13166_v43  ;;  %v13202_v43 = vld [vmem:[%s16867_s2 + $0x14f8] sm:$0xff]  }
 0x2a2   : > { %12205 = vmatpush3.bf16.msra.mxu0 %v13171_v48 }
 0x2a3   : > { %12234 = vmatprep.subr.bf16.mxu0 %v13173_v62  ;;  %v13209_v62 = vld [vmem:[%s16867_s2 + $0x1548] sm:$0xff]  }
 0x2a4   : > { %12225 = vmatpush3.bf16.msra.mxu1 %v13168_v45  ;;  %v13204_v45 = vld [vmem:[%s16867_s2 + $0x14b8] sm:$0xff]  }
 0x2a5   : > { %12226 = vmatprep.subr.bf16.mxu1 %v13170_v47  ;;  %8770 = vmatmul.mubr.bf16.vlgmr.msra.gmra.mrb[76].mxu0 %v2355_v59  ;;  %v660_v47 = vld [vmem:[%s13704_s23 + $0x5a8] sm:$0xff]  ;;  %v13206_v59 = vld [vmem:[%s16867_s2 + $0x15c0] sm:$0xff]  }
 0x2a6   : > { %12235 = vmatpush3.bf16.msra.mxu0 %v13175_v0  ;;  %v2360_v48 = vpack.c.bf16 %v660_v47, %v560_v46  ;;  %v666_v46 = vld [vmem:[%s13704_s23 + $0x5d8] sm:$0xff]  ;;  %v563_v47 = vld [vmem:[%s13704_s23 + $0x2a0] sm:$0xff] }
 0x2a7   : > { %12236 = vmatprep.subr.bf16.mxu0 %v13177_v2 }
 0x2a8   : > { %12227 = vmatpush3.bf16.msra.mxu1 %v13172_v49  ;;  %v562_v49 = vld [vmem:[%s13704_s23 + $0x298] sm:$0xff]  ;;  %8851 = vmatprep.mubr.bf16.mxu0 %v2360_v48  ;;  %v663_v48 = vld [vmem:[%s13704_s23 + $0x5c0] sm:$0xff] }
 0x2a9   : > { %12256 = vmatprep.subr.bf16.mxu1 %v13174_v63  ;;  %v2362_v52 = vpack.c.bf16 %v662_v50, %v562_v49  ;;  %v13210_v63 = vld [vmem:[%s16867_s2 + $0x15c8] sm:$0xff]   ;;  %v2363_v50 = vpack.c.bf16 %v663_v48, %v563_v47  ;;  %v669_v48 = vld [vmem:[%s13704_s23 + $0x5f0] sm:$0xff] }
 0x2aa   : > { %12237 = vmatpush3.bf16.msra.mxu0 %v13179_v6 }
 0x2ab   : > { %8811 = vmatmul.mubr.bf16.vlgmr.msra.gmra.mrb[76].mxu1 %v2357_v61  ;;  %12238 = vmatprep.subr.bf16.mxu0 %v13181_v11  ;;  %v13208_v61 = vld [vmem:[%s16867_s2 + $0x1580] sm:$0xff]   ;;  %v13215_v11 = vld [vmem:[%s16867_s2 + $0x1510] sm:$0xff]  }
 0x2ac   : > { %12257 = vmatpush3.bf16.msra.mxu1 %v13176_v1  ;;  %8892 = vmatprep.mubr.bf16.mxu1 %v2362_v52  ;;  %v13211_v1 = vld [vmem:[%s16867_s2 + $0x1508] sm:$0xff]   ;;  %v665_v52 = vld [vmem:[%s13704_s23 + $0x5d0] sm:$0xff] }
 0x2ad   : > { %12258 = vmatprep.subr.bf16.mxu1 %v13178_v4  ;;  %v2365_v53 = vpack.c.bf16 %v665_v52, %v565_v51  ;;  %v13270_v51 = vld [vmem:[%s16867_s2 + $0x17c0] sm:$0xff]  }
 0x2ae   : > { %12239 = vmatpush3.bf16.msra.mxu0 %v13183_v17  ;;  %v13271_v52 = vld [vmem:[%s16867_s2 + $0x1700] sm:$0xff]  }
 0x2af   : > { %12240 = vmatprep.subr.bf16.mxu0 %v13185_v23 }
 0x2b0   : > { %12259 = vmatpush3.bf16.msra.mxu1 %v13180_v8  ;;  %v13214_v8 = vld [vmem:[%s16867_s2 + $0x15d0] sm:$0xff]  }
 0x2b1   : > { %12260 = vmatprep.subr.bf16.mxu1 %v13182_v14  ;;  %v13216_v14 = vld [vmem:[%s16867_s2 + $0x1590] sm:$0xff]  }
 0x2b2   : > { %v11942_v3 = vpop.f32.mrb[52].mxu0  ;;  %v11964_v5 = vpop.f32.mrb[52].mxu1  ;;  %12241 = vmatpush3.bf16.msra.mxu0 %v13187_v27  ;;  %v13222_v27 = vld [vmem:[%s16867_s2 + $0x15e0] sm:$0xff]  }
 0x2b3   : > { %v11943_v7 = vpop.f32.mrb[53].mxu0  ;;  %v11965_v10 = vpop.f32.mrb[53].mxu1  ;;  %12242 = vmatprep.subr.bf16.mxu0 %v13189_v30  ;;  %v13225_v30 = vld [vmem:[%s16867_s2 + $0x1568] sm:$0xff]  }
 0x2b4   : > { %v11944_v9 = vadd.f32 %v11943_v7, %v11942_v3  ;;  %v11966_v12 = vadd.f32 %v11965_v10, %v11964_v5  ;;  %v11945_v13 = vpop.f32.mrb[54].mxu0  ;;  %v11967_v16 = vpop.f32.mrb[54].mxu1  ;;  %12261 = vmatpush3.bf16.msra.mxu1 %v13184_v19  ;;  %v13212_v3 = vld [vmem:[%s16867_s2 + $0x1588] sm:$0xff]   ;;  %v13213_v5 = vld [vmem:[%s16867_s2 + $0x1550] sm:$0xff]  }
 0x2b5   : > { %v11946_v18 = vpop.f32.mrb[55].mxu0  ;;  %v11968_v22 = vpop.f32.mrb[55].mxu1  ;;  %12262 = vmatprep.subr.bf16.mxu1 %v13186_v25  ;;  %v13221_v25 = vld [vmem:[%s16867_s2 + $0x1560] sm:$0xff]  }
 0x2b6   : > { %v8280_v15 = vadd.f32 %v11944_v9, %v15699_v24  ;;  %v11947_v21 = vadd.f32 %v11946_v18, %v11945_v13  ;;  %v11969_v24 = vadd.f32 %v11968_v22, %v11967_v16  ;;  %12243 = vmatpush3.bf16.msra.mxu0 %v13191_v32  ;;  %v13217_v16 = vld [vmem:[%s16867_s2 + $0x1558] sm:$0xff]   ;;  %v13227_v32 = vld [vmem:[%s16867_s2 + $0x1528] sm:$0xff]  }
 0x2b7   : > { %12244 = vmatprep.subr.bf16.mxu0 %v13193_v34  ;;  %v13219_v22 = vld [vmem:[%s16867_s2 + $0x1518] sm:$0xff]   ;;  %v13229_v34 = vld [vmem:[%s16867_s2 + $0x1570] sm:$0xff]  }
 0x2b8   : > { %v15809_v20 = vadd.f32 %v11966_v12, %v8280_v15  ;;  %v8283_v26 = vadd.f32 %v11947_v21, %v15714_v33  ;;  %12263 = vmatpush3.bf16.msra.mxu1 %v13188_v28  ;;  %v13192_v33 = vld [vmem:[%s16867_s2 + $0x14a0] sm:$0xff]  }
 0x2b9   : > { %12264 = vmatprep.subr.bf16.mxu1 %v13190_v31  ;;  %v13223_v28 = vld [vmem:[%s16867_s2 + $0x1520] sm:$0xff]   ;;  %v13226_v31 = vld [vmem:[%s16867_s2 + $0x15e8] sm:$0xff]  }
 0x2ba   : > { %v15824_v29 = vadd.f32 %v11969_v24, %v8283_v26  ;;  %12245 = vmatpush3.bf16.msra.mxu0 %v13195_v36  ;;  %v13220_v24 = vld [vmem:[%s16867_s2 + $0x1598] sm:$0xff]   ;;  %v13231_v36 = vld [vmem:[%s16867_s2 + $0x1530] sm:$0xff]  }
 0x2bb   : > { %12246 = vmatprep.subr.bf16.mxu0 %v13197_v38  ;;  %v13233_v38 = vld [vmem:[%s16867_s2 + $0x1578] sm:$0xff]  }
 0x2bc   : > { %12265 = vmatpush3.bf16.msra.mxu1 %v13192_v33  ;;  %v13228_v33 = vld [vmem:[%s16867_s2 + $0x15a8] sm:$0xff]  }
 0x2bd   : > { %12266 = vmatprep.subr.bf16.mxu1 %v13194_v35  ;;  %v13230_v35 = vld [vmem:[%s16867_s2 + $0x15f0] sm:$0xff]  }
 0x2be   : > { %12247 = vmatpush3.bf16.msra.mxu0 %v13199_v40  ;;  %v13235_v40 = vld [vmem:[%s16867_s2 + $0x1538] sm:$0xff]  }
 0x2bf   : > { %12248 = vmatprep.subr.bf16.mxu0 %v13201_v42  ;;  %v564_v42 = vld [vmem:[%s13704_s23 + $0x2a8] sm:$0xff] }
 0x2c0   : > { %12267 = vmatpush3.bf16.msra.mxu1 %v13196_v37  ;;  %v13232_v37 = vld [vmem:[%s16867_s2 + $0x15b0] sm:$0xff]  }
 0x2c1   : > { %12268 = vmatprep.subr.bf16.mxu1 %v13198_v39  ;;  %v13234_v39 = vld [vmem:[%s16867_s2 + $0x15f8] sm:$0xff]  }
 0x2c2   : > { %12249 = vmatpush3.bf16.msra.mxu0 %v13203_v44  ;;  %v566_v44 = vld [vmem:[%s13704_s23 + $0x2b8] sm:$0xff] }
 0x2c3   : > { %12278 = vmatprep.subr.bf16.mxu0 %v13205_v58  ;;  %v2366_v49 = vpack.c.bf16 %v666_v46, %v566_v44  ;;  %v13241_v58 = vld [vmem:[%s16867_s2 + $0x1648] sm:$0xff]   ;;  %v567_v44 = vld [vmem:[%s13704_s23 + $0x2c0] sm:$0xff]  ;;  %v569_v46 = vld [vmem:[%s13704_s23 + $0x2d0] sm:$0xff] }
 0x2c4   : > { %12269 = vmatpush3.bf16.msra.mxu1 %v13200_v41  ;;  %v13236_v41 = vld [vmem:[%s16867_s2 + $0x15b8] sm:$0xff]  }
 0x2c5   : > { %12270 = vmatprep.subr.bf16.mxu1 %v13202_v43  ;;  %8852 = vmatmul.mubr.bf16.vlgmr.msra.gmra.mrb[80].mxu0 %v2359_v56  ;;  %v664_v43 = vld [vmem:[%s13704_s23 + $0x5c8] sm:$0xff]  ;;  %v13239_v56 = vld [vmem:[%s16867_s2 + $0x1600] sm:$0xff]  }
 0x2c6   : > { %12279 = vmatpush3.bf16.msra.mxu0 %v13207_v60  ;;  %v13242_v60 = vld [vmem:[%s16867_s2 + $0x16c8] sm:$0xff]  }
 0x2c7   : > { %12280 = vmatprep.subr.bf16.mxu0 %v13209_v62  ;;  %v13243_v62 = vld [vmem:[%s16867_s2 + $0x1608] sm:$0xff]  }
 0x2c8   : > { %12271 = vmatpush3.bf16.msra.mxu1 %v13204_v45  ;;  %v2364_v45 = vpack.c.bf16 %v664_v43, %v564_v42 }
 0x2c9   : > { %12300 = vmatprep.subr.bf16.mxu1 %v13206_v59 }
 0x2ca   : > { %12281 = vmatpush3.bf16.msra.mxu0 %v13211_v1  ;;  %8933 = vmatprep.mubr.bf16.mxu0 %v2364_v45  ;;  %v667_v45 = vld [vmem:[%s13704_s23 + $0x5e0] sm:$0xff] }
 0x2cb   : > { %8893 = vmatmul.mubr.bf16.vlgmr.msra.gmra.mrb[80].mxu1 %v2361_v57  ;;  %12282 = vmatprep.subr.bf16.mxu0 %v13213_v5  ;;  %v13240_v57 = vld [vmem:[%s16867_s2 + $0x1680] sm:$0xff]   ;;  %v2367_v47 = vpack.c.bf16 %v667_v45, %v567_v44 }
 0x2cc   : > { %12301 = vmatpush3.bf16.msra.mxu1 %v13208_v61  ;;  %8974 = vmatprep.mubr.bf16.mxu1 %v2366_v49  ;;  %v2369_v49 = vpack.c.bf16 %v669_v48, %v569_v46  ;;  %v13301_v46 = vld [vmem:[%s16867_s2 + $0x1840] sm:$0xff]  }
 0x2cd   : > { %12302 = vmatprep.subr.bf16.mxu1 %v13210_v63  ;;  %v13303_v48 = vld [vmem:[%s16867_s2 + $0x1800] sm:$0xff]  }
 0x2ce   : > { %12283 = vmatpush3.bf16.msra.mxu0 %v13215_v11  ;;  %v13248_v11 = vld [vmem:[%s16867_s2 + $0x1690] sm:$0xff]  }
 0x2cf   : > { %12284 = vmatprep.subr.bf16.mxu0 %v13217_v16 }
 0x2d0   : > { %12303 = vmatpush3.bf16.msra.mxu1 %v13212_v3  ;;  %v13245_v3 = vld [vmem:[%s16867_s2 + $0x1650] sm:$0xff]  }
 0x2d1   : > { %12304 = vmatprep.subr.bf16.mxu1 %v13214_v8 }
 0x2d2   : > { %v11986_v0 = vpop.f32.mrb[56].mxu0  ;;  %v12008_v2 = vpop.f32.mrb[56].mxu1  ;;  %12285 = vmatpush3.bf16.msra.mxu0 %v13219_v22  ;;  %v13253_v22 = vld [vmem:[%s16867_s2 + $0x1660] sm:$0xff]  }
 0x2d3   : > { %v11987_v4 = vpop.f32.mrb[57].mxu0  ;;  %v12009_v7 = vpop.f32.mrb[57].mxu1  ;;  %12286 = vmatprep.subr.bf16.mxu0 %v13221_v25  ;;  %v13256_v25 = vld [vmem:[%s16867_s2 + $0x16a0] sm:$0xff]  }
 0x2d4   : > { %v11988_v6 = vadd.f32 %v11987_v4, %v11986_v0  ;;  %v12010_v9 = vadd.f32 %v12009_v7, %v12008_v2  ;;  %v11989_v10 = vpop.f32.mrb[58].mxu0  ;;  %v12011_v13 = vpop.f32.mrb[58].mxu1  ;;  %12305 = vmatpush3.bf16.msra.mxu1 %v13216_v14  ;;  %v13244_v0 = vld [vmem:[%s16867_s2 + $0x1688] sm:$0xff]  }
 0x2d5   : > { %v11990_v15 = vpop.f32.mrb[59].mxu0  ;;  %v12012_v19 = vpop.f32.mrb[59].mxu1 }
 0x2d6   : > { %v8362_v12 = vadd.f32 %v11988_v6, %v15809_v20  ;;  %v11991_v18 = vadd.f32 %v11990_v15, %v11989_v10  ;;  %v13218_v20 = vld [vmem:[%s16867_s2 + $0x15d8] sm:$0xff]   ;;  %v12013_v21 = vadd.f32 %v12012_v19, %v12011_v13  ;;  %12287 = vmatpush3.bf16.msra.mxu0 %v13223_v28  ;;  %v13246_v6 = vld [vmem:[%s16867_s2 + $0x16d0] sm:$0xff]   ;;  %v13259_v28 = vld [vmem:[%s16867_s2 + $0x1628] sm:$0xff]  }
 0x2d7   : > { %12306 = vmatprep.subr.bf16.mxu1 %v13218_v20  ;;  %12288 = vmatprep.subr.bf16.mxu0 %v13225_v30  ;;  %v13249_v15 = vld [vmem:[%s16867_s2 + $0x1658] sm:$0xff]   ;;  %v13261_v30 = vld [vmem:[%s16867_s2 + $0x1670] sm:$0xff]  }
 0x2d8   : > { %v15922_v17 = vadd.f32 %v12010_v9, %v8362_v12  ;;  %v8365_v23 = vadd.f32 %v11991_v18, %v15824_v29  ;;  %12307 = vmatpush3.bf16.msra.mxu1 %v13220_v24  ;;  %v13224_v29 = vld [vmem:[%s16867_s2 + $0x15a0] sm:$0xff]   ;;  %v13247_v9 = vld [vmem:[%s16867_s2 + $0x1610] sm:$0xff]   ;;  %v13251_v19 = vld [vmem:[%s16867_s2 + $0x1618] sm:$0xff]  }
 0x2d9   : > { %12308 = vmatprep.subr.bf16.mxu1 %v13222_v27  ;;  %v13252_v20 = vld [vmem:[%s16867_s2 + $0x1698] sm:$0xff]   ;;  %v13255_v24 = vld [vmem:[%s16867_s2 + $0x1620] sm:$0xff]   ;;  %v13258_v27 = vld [vmem:[%s16867_s2 + $0x16e8] sm:$0xff]  }
 0x2da   : > { %v15937_v26 = vadd.f32 %v12013_v21, %v8365_v23  ;;  %12289 = vmatpush3.bf16.msra.mxu0 %v13227_v32  ;;  %v13254_v23 = vld [vmem:[%s16867_s2 + $0x16e0] sm:$0xff]   ;;  %v13263_v32 = vld [vmem:[%s16867_s2 + $0x1630] sm:$0xff]  }
 0x2db   : > { %12290 = vmatprep.subr.bf16.mxu0 %v13229_v34  ;;  %v13265_v34 = vld [vmem:[%s16867_s2 + $0x1678] sm:$0xff]  }
 0x2dc   : > { %12309 = vmatpush3.bf16.msra.mxu1 %v13224_v29  ;;  %v13260_v29 = vld [vmem:[%s16867_s2 + $0x16a8] sm:$0xff]  }
 0x2dd   : > { %12310 = vmatprep.subr.bf16.mxu1 %v13226_v31  ;;  %v13262_v31 = vld [vmem:[%s16867_s2 + $0x16f0] sm:$0xff]  }
 0x2de   : > { %12291 = vmatpush3.bf16.msra.mxu0 %v13231_v36  ;;  %v13267_v36 = vld [vmem:[%s16867_s2 + $0x1638] sm:$0xff]  }
 0x2df   : > { %12292 = vmatprep.subr.bf16.mxu0 %v13233_v38  ;;  %v568_v38 = vld [vmem:[%s13704_s23 + $0x2c8] sm:$0xff] }
 0x2e0   : > { %12311 = vmatpush3.bf16.msra.mxu1 %v13228_v33  ;;  %v13264_v33 = vld [vmem:[%s16867_s2 + $0x16b0] sm:$0xff]  }
 0x2e1   : > { %12312 = vmatprep.subr.bf16.mxu1 %v13230_v35  ;;  %v13266_v35 = vld [vmem:[%s16867_s2 + $0x16f8] sm:$0xff]  }
 0x2e2   : > { %12293 = vmatpush3.bf16.msra.mxu0 %v13235_v40  ;;  %v570_v40 = vld [vmem:[%s13704_s23 + $0x2d8] sm:$0xff] }
 0x2e3   : > { %12322 = vmatprep.subr.bf16.mxu0 %v13237_v54  ;;  %v13273_v54 = vld [vmem:[%s16867_s2 + $0x1748] sm:$0xff]  }
 0x2e4   : > { %12313 = vmatpush3.bf16.msra.mxu1 %v13232_v37  ;;  %v13268_v37 = vld [vmem:[%s16867_s2 + $0x16b8] sm:$0xff]  }
 0x2e5   : > { %12314 = vmatprep.subr.bf16.mxu1 %v13234_v39  ;;  %8934 = vmatmul.mubr.bf16.vlgmr.msra.gmra.mrb[84].mxu0 %v2363_v50  ;;  %v668_v39 = vld [vmem:[%s13704_s23 + $0x5e8] sm:$0xff]  ;;  %v13269_v50 = vld [vmem:[%s16867_s2 + $0x1740] sm:$0xff]  }
 0x2e6   : > { %12323 = vmatpush3.bf16.msra.mxu0 %v13239_v56  ;;  %v2368_v42 = vpack.c.bf16 %v668_v39, %v568_v38  ;;  %v13274_v56 = vld [vmem:[%s16867_s2 + $0x17c8] sm:$0xff]   ;;  %v674_v38 = vld [vmem:[%s13704_s23 + $0x618] sm:$0xff]  ;;  %v571_v39 = vld [vmem:[%s13704_s23 + $0x2e0] sm:$0xff] }
 0x2e7   : > { %12324 = vmatprep.subr.bf16.mxu0 %v13241_v58  ;;  %v13275_v58 = vld [vmem:[%s16867_s2 + $0x1708] sm:$0xff]  }
 0x2e8   : > { %12315 = vmatpush3.bf16.msra.mxu1 %v13236_v41  ;;  %v670_v41 = vld [vmem:[%s13704_s23 + $0x5f8] sm:$0xff]  ;;  %9015 = vmatprep.mubr.bf16.mxu0 %v2368_v42  ;;  %v573_v42 = vld [vmem:[%s13704_s23 + $0x2f0] sm:$0xff] }
 0x2e9   : > { %12344 = vmatprep.subr.bf16.mxu1 %v13238_v55  ;;  %v2370_v43 = vpack.c.bf16 %v670_v41, %v570_v40  ;;  %v671_v41 = vld [vmem:[%s13704_s23 + $0x600] sm:$0xff] }
 0x2ea   : > { %12325 = vmatpush3.bf16.msra.mxu0 %v13243_v62  ;;  %v2371_v44 = vpack.c.bf16 %v671_v41, %v571_v39  ;;  %v577_v39 = vld [vmem:[%s13704_s23 + $0x310] sm:$0xff] }
 0x2eb   : > { %8975 = vmatmul.mubr.bf16.vlgmr.msra.gmra.mrb[84].mxu1 %v2365_v53  ;;  %12326 = vmatprep.subr.bf16.mxu0 %v13245_v3  ;;  %v13272_v53 = vld [vmem:[%s16867_s2 + $0x1780] sm:$0xff]  }
 0x2ec   : > { %12345 = vmatpush3.bf16.msra.mxu1 %v13240_v57  ;;  %9056 = vmatprep.mubr.bf16.mxu1 %v2370_v43  ;;  %v673_v43 = vld [vmem:[%s13704_s23 + $0x610] sm:$0xff] }
 0x2ed   : > { %12346 = vmatprep.subr.bf16.mxu1 %v13242_v60  ;;  %v13276_v60 = vld [vmem:[%s16867_s2 + $0x1788] sm:$0xff]   ;;  %v2373_v45 = vpack.c.bf16 %v673_v43, %v573_v42 }
 0x2ee   : > { %12327 = vmatpush3.bf16.msra.mxu0 %v13247_v9 }
 0x2ef   : > { %12328 = vmatprep.subr.bf16.mxu0 %v13249_v15  ;;  %v13283_v15 = vld [vmem:[%s16867_s2 + $0x1718] sm:$0xff]  }
 0x2f0   : > { %12347 = vmatpush3.bf16.msra.mxu1 %v13244_v0 }
 0x2f1   : > { %12348 = vmatprep.subr.bf16.mxu1 %v13246_v6 }
 0x2f2   : > { %v12030_v59 = vpop.f32.mrb[60].mxu0  ;;  %12329 = vmatpush3.bf16.msra.mxu0 %v13251_v19  ;;  %v13286_v19 = vld [vmem:[%s16867_s2 + $0x17e0] sm:$0xff]  }
 0x2f3   : > { %v12031_v63 = vpop.f32.mrb[61].mxu0  ;;  %12330 = vmatprep.subr.bf16.mxu0 %v13253_v22  ;;  %v13289_v22 = vld [vmem:[%s16867_s2 + $0x1768] sm:$0xff]  }
 0x2f4   : > { %v12032_v1 = vadd.f32 %v12031_v63, %v12030_v59  ;;  %v12033_v5 = vpop.f32.mrb[62].mxu0  ;;  %12349 = vmatpush3.bf16.msra.mxu1 %v13248_v11  ;;  %v13277_v63 = vld [vmem:[%s16867_s2 + $0x1750] sm:$0xff]   ;;  %v13281_v11 = vld [vmem:[%s16867_s2 + $0x1758] sm:$0xff]  }
 0x2f5   : > { %v12034_v10 = vpop.f32.mrb[63].mxu0 }
 0x2f6   : > { %v8444_v7 = vadd.f32 %v12032_v1, %v15922_v17  ;;  %v12035_v13 = vadd.f32 %v12034_v10, %v12033_v5  ;;  %v13250_v17 = vld [vmem:[%s16867_s2 + $0x16d8] sm:$0xff]   ;;  %12331 = vmatpush3.bf16.msra.mxu0 %v13255_v24  ;;  %v13279_v5 = vld [vmem:[%s16867_s2 + $0x1710] sm:$0xff]   ;;  %v13291_v24 = vld [vmem:[%s16867_s2 + $0x1728] sm:$0xff]  }
 0x2f7   : > { %12350 = vmatprep.subr.bf16.mxu1 %v13250_v17 }
 0x2f8   : > { %v8447_v18 = vadd.f32 %v12035_v13, %v15937_v26  ;;  %12351 = vmatpush3.bf16.msra.mxu1 %v13252_v20  ;;  %v13257_v26 = vld [vmem:[%s16867_s2 + $0x1668] sm:$0xff]   ;;  %v13282_v13 = vld [vmem:[%s16867_s2 + $0x17d8] sm:$0xff]   ;;  %v13287_v20 = vld [vmem:[%s16867_s2 + $0x1720] sm:$0xff]  }
 0x2f9   : > { %12352 = vmatprep.subr.bf16.mxu1 %v13254_v23  ;;  %12332 = vmatprep.subr.bf16.mxu0 %v13257_v26  ;;  %v13290_v23 = vld [vmem:[%s16867_s2 + $0x17e8] sm:$0xff]   ;;  %v13293_v26 = vld [vmem:[%s16867_s2 + $0x1770] sm:$0xff]  }
 0x2fa   : > { %12333 = vmatpush3.bf16.msra.mxu0 %v13259_v28  ;;  %v13295_v28 = vld [vmem:[%s16867_s2 + $0x1730] sm:$0xff]  }
 0x2fb   : > { %12334 = vmatprep.subr.bf16.mxu0 %v13261_v30  ;;  %v13297_v30 = vld [vmem:[%s16867_s2 + $0x1778] sm:$0xff]  }
 0x2fc   : > { %12353 = vmatpush3.bf16.msra.mxu1 %v13256_v25  ;;  %v13292_v25 = vld [vmem:[%s16867_s2 + $0x17a8] sm:$0xff]  }
 0x2fd   : > { %12354 = vmatprep.subr.bf16.mxu1 %v13258_v27  ;;  %v13294_v27 = vld [vmem:[%s16867_s2 + $0x17f0] sm:$0xff]  }
 0x2fe   : > { %v12052_v61 = vpop.f32.mrb[60].mxu1  ;;  %12335 = vmatpush3.bf16.msra.mxu0 %v13263_v32  ;;  %v13299_v32 = vld [vmem:[%s16867_s2 + $0x1738] sm:$0xff]  }
 0x2ff   : > { %v12053_v2 = vpop.f32.mrb[61].mxu1  ;;  %12336 = vmatprep.subr.bf16.mxu0 %v13265_v34  ;;  %v572_v34 = vld [vmem:[%s13704_s23 + $0x2e8] sm:$0xff] }
 0x300   : > { %v12054_v4 = vadd.f32 %v12053_v2, %v12052_v61  ;;  %v12055_v8 = vpop.f32.mrb[62].mxu1  ;;  %12355 = vmatpush3.bf16.msra.mxu1 %v13260_v29  ;;  %v13278_v2 = vld [vmem:[%s16867_s2 + $0x17d0] sm:$0xff]  }
 0x301   : > { %v12056_v14 = vpop.f32.mrb[63].mxu1  ;;  %12356 = vmatprep.subr.bf16.mxu1 %v13262_v31  ;;  %v13296_v29 = vld [vmem:[%s16867_s2 + $0x17b0] sm:$0xff]   ;;  %v13298_v31 = vld [vmem:[%s16867_s2 + $0x17f8] sm:$0xff]  }
 0x302   : > { %v16029_v12 = vadd.f32 %v12054_v4, %v8444_v7  ;;  %v12057_v16 = vadd.f32 %v12056_v14, %v12055_v8  ;;  %12337 = vmatpush3.bf16.msra.mxu0 %v13267_v36  ;;  %v13280_v7 = vld [vmem:[%s16867_s2 + $0x1790] sm:$0xff]  }
 0x303   : > { %12366 = vmatprep.subr.bf16.mxu0 %v13269_v50  ;;  %v13305_v50 = vld [vmem:[%s16867_s2 + $0x1848] sm:$0xff]  }
 0x304   : > { %v16044_v21 = vadd.f32 %v12057_v16, %v8447_v18  ;;  %12357 = vmatpush3.bf16.msra.mxu1 %v13264_v33  ;;  %v13284_v16 = vld [vmem:[%s16867_s2 + $0x1798] sm:$0xff]   ;;  %v13285_v18 = vld [vmem:[%s16867_s2 + $0x1760] sm:$0xff]  }
 0x305   : > { %12358 = vmatprep.subr.bf16.mxu1 %v13266_v35  ;;  %9016 = vmatmul.mubr.bf16.vlgmr.msra.gmra.mrb[88].mxu0 %v2367_v47  ;;  %v13300_v33 = vld [vmem:[%s16867_s2 + $0x17b8] sm:$0xff]   ;;  %v672_v35 = vld [vmem:[%s13704_s23 + $0x608] sm:$0xff]  ;;  %v13302_v47 = vld [vmem:[%s16867_s2 + $0x18c0] sm:$0xff]  }
 0x306   : > { %12367 = vmatpush3.bf16.msra.mxu0 %v13271_v52  ;;  %v2372_v36 = vpack.c.bf16 %v672_v35, %v572_v34  ;;  %v678_v34 = vld [vmem:[%s13704_s23 + $0x638] sm:$0xff]  ;;  %v575_v35 = vld [vmem:[%s13704_s23 + $0x300] sm:$0xff] }
 0x307   : > { %12368 = vmatprep.subr.bf16.mxu0 %v13273_v54 }
 0x308   : > { %12359 = vmatpush3.bf16.msra.mxu1 %v13268_v37  ;;  %v574_v37 = vld [vmem:[%s13704_s23 + $0x2f8] sm:$0xff]  ;;  %9097 = vmatprep.mubr.bf16.mxu0 %v2372_v36  ;;  %v675_v36 = vld [vmem:[%s13704_s23 + $0x620] sm:$0xff] }
 0x309   : > { %12388 = vmatprep.subr.bf16.mxu1 %v13270_v51  ;;  %v2374_v40 = vpack.c.bf16 %v674_v38, %v574_v37  ;;  %v13306_v51 = vld [vmem:[%s16867_s2 + $0x18c8] sm:$0xff]   ;;  %v2375_v38 = vpack.c.bf16 %v675_v36, %v575_v35 }
 0x30a   : > { %12369 = vmatpush3.bf16.msra.mxu0 %v13275_v58 }
 0x30b   : > { %9057 = vmatmul.mubr.bf16.vlgmr.msra.gmra.mrb[88].mxu1 %v2369_v49  ;;  %12370 = vmatprep.subr.bf16.mxu0 %v13277_v63  ;;  %v13304_v49 = vld [vmem:[%s16867_s2 + $0x1880] sm:$0xff]   ;;  %v13311_v63 = vld [vmem:[%s16867_s2 + $0x1810] sm:$0xff]  }
 0x30c   : > { %12389 = vmatpush3.bf16.msra.mxu1 %v13272_v53  ;;  %9138 = vmatprep.mubr.bf16.mxu1 %v2374_v40  ;;  %v13307_v53 = vld [vmem:[%s16867_s2 + $0x1808] sm:$0xff]   ;;  %v677_v40 = vld [vmem:[%s13704_s23 + $0x630] sm:$0xff] }
 0x30d   : > { %12390 = vmatprep.subr.bf16.mxu1 %v13274_v56  ;;  %v2377_v41 = vpack.c.bf16 %v677_v40, %v577_v39 }
 0x30e   : > { %12371 = vmatpush3.bf16.msra.mxu0 %v13279_v5 }
 0x30f   : > { %12372 = vmatprep.subr.bf16.mxu0 %v13281_v11 }
 0x310   : > { %12391 = vmatpush3.bf16.msra.mxu1 %v13276_v60  ;;  %v13310_v60 = vld [vmem:[%s16867_s2 + $0x18d0] sm:$0xff]  }
 0x311   : > { %12392 = vmatprep.subr.bf16.mxu1 %v13278_v2  ;;  %v13312_v2 = vld [vmem:[%s16867_s2 + $0x1890] sm:$0xff]  }
 0x312   : > { %12373 = vmatpush3.bf16.msra.mxu0 %v13283_v15  ;;  %v13318_v15 = vld [vmem:[%s16867_s2 + $0x18e0] sm:$0xff]  }
 0x313   : > { %12374 = vmatprep.subr.bf16.mxu0 %v13285_v18  ;;  %v13321_v18 = vld [vmem:[%s16867_s2 + $0x1868] sm:$0xff]  }
 0x314   : > { %12393 = vmatpush3.bf16.msra.mxu1 %v13280_v7 }
 0x315   : > { %12394 = vmatprep.subr.bf16.mxu1 %v13282_v13  ;;  %v13317_v13 = vld [vmem:[%s16867_s2 + $0x1860] sm:$0xff]  }
 0x316   : > { %12375 = vmatpush3.bf16.msra.mxu0 %v13287_v20  ;;  %v13323_v20 = vld [vmem:[%s16867_s2 + $0x1828] sm:$0xff]  }
 0x317   : > { %12376 = vmatprep.subr.bf16.mxu0 %v13289_v22  ;;  %v13325_v22 = vld [vmem:[%s16867_s2 + $0x1870] sm:$0xff]  }
 0x318   : > { %v12074_v55 = vpop.f32.mrb[64].mxu0  ;;  %12395 = vmatpush3.bf16.msra.mxu1 %v13284_v16  ;;  %v13319_v16 = vld [vmem:[%s16867_s2 + $0x1820] sm:$0xff]  }
 0x319   : > { %v12075_v59 = vpop.f32.mrb[65].mxu0  ;;  %12396 = vmatprep.subr.bf16.mxu1 %v13286_v19  ;;  %v13322_v19 = vld [vmem:[%s16867_s2 + $0x18e8] sm:$0xff]  }
 0x31a   : > { %v12076_v61 = vadd.f32 %v12075_v59, %v12074_v55  ;;  %v12077_v1 = vpop.f32.mrb[66].mxu0  ;;  %12377 = vmatpush3.bf16.msra.mxu0 %v13291_v24  ;;  %v13308_v55 = vld [vmem:[%s16867_s2 + $0x1888] sm:$0xff]   ;;  %v13327_v24 = vld [vmem:[%s16867_s2 + $0x1830] sm:$0xff]  }
 0x31b   : > { %v12078_v6 = vpop.f32.mrb[67].mxu0  ;;  %12378 = vmatprep.subr.bf16.mxu0 %v13293_v26  ;;  %v13329_v26 = vld [vmem:[%s16867_s2 + $0x1878] sm:$0xff]  }
 0x31c   : > { %v8526_v3 = vadd.f32 %v12076_v61, %v16029_v12  ;;  %v12079_v9 = vadd.f32 %v12078_v6, %v12077_v1 }
 0x31e   : > { %v12096_v57 = vpop.f32.mrb[64].mxu1  ;;  %v8529_v14 = vadd.f32 %v12079_v9, %v16044_v21  ;;  %v13288_v21 = vld [vmem:[%s16867_s2 + $0x17a0] sm:$0xff]   ;;  %12379 = vmatpush3.bf16.msra.mxu0 %v13295_v28  ;;  %v13331_v28 = vld [vmem:[%s16867_s2 + $0x1838] sm:$0xff]  }
 0x31f   : > { %v12097_v62 = vpop.f32.mrb[65].mxu1  ;;  %12397 = vmatpush3.bf16.msra.mxu1 %v13288_v21  ;;  %12380 = vmatprep.subr.bf16.mxu0 %v13297_v30  ;;  %v13324_v21 = vld [vmem:[%s16867_s2 + $0x18a8] sm:$0xff]  }
 0x320   : > { %v12098_v0 = vadd.f32 %v12097_v62, %v12096_v57  ;;  %v12099_v4 = vpop.f32.mrb[66].mxu1  ;;  %12398 = vmatprep.subr.bf16.mxu1 %v13290_v23  ;;  %v13309_v57 = vld [vmem:[%s16867_s2 + $0x1850] sm:$0xff]   ;;  %v576_v30 = vld [vmem:[%s13704_s23 + $0x308] sm:$0xff] }
 0x321   : > { %v12100_v10 = vpop.f32.mrb[67].mxu1  ;;  %v13326_v23 = vld [vmem:[%s16867_s2 + $0x18f0] sm:$0xff]  }
 0x322   : > { %v16139_v8 = vadd.f32 %v12098_v0, %v8526_v3  ;;  %v12101_v12 = vadd.f32 %v12100_v10, %v12099_v4  ;;  %12381 = vmatpush3.bf16.msra.mxu0 %v13299_v32  ;;  %v13313_v4 = vld [vmem:[%s16867_s2 + $0x1858] sm:$0xff]  }
 0x323   : > { %12399 = vmatpush3.bf16.msra.mxu1 %v13292_v25  ;;  %12410 = vmatprep.subr.bf16.mxu0 %v13301_v46  ;;  %v13315_v10 = vld [vmem:[%s16867_s2 + $0x1818] sm:$0xff]   ;;  %v13328_v25 = vld [vmem:[%s16867_s2 + $0x18b0] sm:$0xff]  }
 0x324   : > { %v16154_v17 = vadd.f32 %v12101_v12, %v8529_v14  ;;  %12400 = vmatprep.subr.bf16.mxu1 %v13294_v27  ;;  %v13316_v12 = vld [vmem:[%s16867_s2 + $0x1898] sm:$0xff]  }
 0x325   : > { %9098 = vmatmul.mubr.bf16.vlgmr.msra.gmra.mrb[92].mxu0 %v2371_v44  ;;  %v13330_v27 = vld [vmem:[%s16867_s2 + $0x18f8] sm:$0xff]  }
 0x326   : > { %12411 = vmatpush3.bf16.msra.mxu0 %v13303_v48  ;;  %v578_v32 = vld [vmem:[%s13704_s23 + $0x318] sm:$0xff] }
 0x327   : > { %12401 = vmatpush3.bf16.msra.mxu1 %v13296_v29  ;;  %12412 = vmatprep.subr.bf16.mxu0 %v13305_v50  ;;  %v13332_v29 = vld [vmem:[%s16867_s2 + $0x18b8] sm:$0xff]   ;;  %v2378_v37 = vpack.c.bf16 %v678_v34, %v578_v32 }
 0x328   : > { %12402 = vmatprep.subr.bf16.mxu1 %v13298_v31  ;;  %v676_v31 = vld [vmem:[%s13704_s23 + $0x628] sm:$0xff]  ;;  %s16881_s23 = sshll.u32 %s13580_s25, 10 }
 0x32a   : > { %12413 = vmatpush3.bf16.msra.mxu0 %v13307_v53 }
 0x32b   : > { %12403 = vmatpush3.bf16.msra.mxu1 %v13300_v33  ;;  %12414 = vmatprep.subr.bf16.mxu0 %v13309_v57  ;;  %v2376_v33 = vpack.c.bf16 %v676_v31, %v576_v30  ;;  %v13487_v30 = vmov 0  }
 0x32c   : > { %12432 = vmatprep.subr.bf16.mxu1 %v13302_v47 }
 0x32d   : > { %9179 = vmatprep.mubr.bf16.mxu0 %v2376_v33 }
 0x32e   : > { %9139 = vmatmul.mubr.bf16.vlgmr.msra.gmra.mrb[92].mxu1 %v2373_v45  ;;  %12415 = vmatpush3.bf16.msra.mxu0 %v13311_v63 }
 0x32f   : > { %12433 = vmatpush3.bf16.msra.mxu1 %v13304_v49  ;;  %12416 = vmatprep.subr.bf16.mxu0 %v13313_v4 }
 0x330   : > { %12434 = vmatprep.subr.bf16.mxu1 %v13306_v51  ;;  %9220 = vmatprep.mubr.bf16.mxu1 %v2378_v37 }
 0x332   : > { %12417 = vmatpush3.bf16.msra.mxu0 %v13315_v10 }
 0x333   : > { %12435 = vmatpush3.bf16.msra.mxu1 %v13308_v55  ;;  %12418 = vmatprep.subr.bf16.mxu0 %v13317_v13 }
 0x334   : > { %12436 = vmatprep.subr.bf16.mxu1 %v13310_v60 }
 0x336   : > { %12419 = vmatpush3.bf16.msra.mxu0 %v13319_v16 }
 0x337   : > { %12437 = vmatpush3.bf16.msra.mxu1 %v13312_v2  ;;  %12420 = vmatprep.subr.bf16.mxu0 %v13321_v18 }
 0x338   : > { %v12118_v52 = vpop.f32.mrb[68].mxu0 }
 0x339   : > { %v12119_v56 = vpop.f32.mrb[69].mxu0 }
 0x33a   : > { %v12120_v58 = vadd.f32 %v12119_v56, %v12118_v52  ;;  %v12121_v62 = vpop.f32.mrb[70].mxu0  ;;  %12421 = vmatpush3.bf16.msra.mxu0 %v13323_v20 }
 0x33b   : > { %v12122_v3 = vpop.f32.mrb[71].mxu0  ;;  %12422 = vmatprep.subr.bf16.mxu0 %v13325_v22 }
 0x33c   : > { %v8608_v0 = vadd.f32 %v12120_v58, %v16139_v8  ;;  %v12123_v6 = vadd.f32 %v12122_v3, %v12121_v62  ;;  %v13314_v8 = vld [vmem:[%s16867_s2 + $0x18d8] sm:$0xff]  }
 0x33d   : > { %12438 = vmatprep.subr.bf16.mxu1 %v13314_v8 }
 0x33e   : > { %v12140_v54 = vpop.f32.mrb[68].mxu1  ;;  %v8611_v11 = vadd.f32 %v12123_v6, %v16154_v17  ;;  %12439 = vmatpush3.bf16.msra.mxu1 %v13316_v12  ;;  %v13320_v17 = vld [vmem:[%s16867_s2 + $0x18a0] sm:$0xff]   ;;  %12423 = vmatpush3.bf16.msra.mxu0 %v13327_v24 }
 0x33f   : > { %v12141_v59 = vpop.f32.mrb[69].mxu1  ;;  %12440 = vmatprep.subr.bf16.mxu1 %v13318_v15  ;;  %12424 = vmatprep.subr.bf16.mxu0 %v13329_v26  ;;  %v9231_v26 = vld [vmem:[%s16868_s3] sm:$0xff] }
 0x340   : > { %v12142_v61 = vadd.f32 %v12141_v59, %v12140_v54  ;;  %v12143_v1 = vpop.f32.mrb[70].mxu1 }
 0x341   : > { %v12144_v7 = vpop.f32.mrb[71].mxu1 }
 0x342   : > { %v16252_v5 = vadd.f32 %v12142_v61, %v8608_v0  ;;  %v12145_v9 = vadd.f32 %v12144_v7, %v12143_v1  ;;  %12441 = vmatpush3.bf16.msra.mxu1 %v13320_v17  ;;  %12425 = vmatpush3.bf16.msra.mxu0 %v13331_v28  ;;  %v11259_v28 = vcombine.low %v9231_v26, %v9231_v26 }
 0x343   : > { %12442 = vmatprep.subr.bf16.mxu1 %v13322_v19 }
 0x344   : > { %v16267_v14 = vadd.f32 %v12145_v9, %v8611_v11 }
 0x345   : > { %9180 = vmatmul.mubr.bf16.vlgmr.msra.gmra.mrb[96].mxu0 %v2375_v38 }
 0x346   : > { %12443 = vmatpush3.bf16.msra.mxu1 %v13324_v21  ;;  %9293 = vmatprep.mubr.bf16.mxu0 %v13487_v30 }
 0x347   : > { %12444 = vmatprep.subr.bf16.mxu1 %v13326_v23 }
 0x34a   : > { %12445 = vmatpush3.bf16.msra.mxu1 %v13328_v25 }
 0x34b   : > { %12446 = vmatprep.subr.bf16.mxu1 %v13330_v27  ;;  %v11260_v27 = vcombine.high %v9231_v26, %v9231_v26 }
 0x34d   : > { %11261 = vmatprep.subr.msk.bf16.mxu0 %vm9254_vm0, %v11260_v27 }
 0x34e   : > { %12447 = vmatpush3.bf16.msra.mxu1 %v13332_v29  ;;  %v9256_v29 = vsel %vm9254_vm0, %v11259_v28, 0 }
 0x34f   : > { %9262 = vmatpush1.bf16.msra.mxu0 %v9256_v29 }
 0x351   : > { %9221 = vmatmul.mubr.bf16.vlgmr.msra.gmra.mrb[96].mxu1 %v2377_v41 }
 0x358   : > { %v12162_v42 = vpop.f32.mrb[72].mxu0 }
 0x359   : > { %v12163_v44 = vpop.f32.mrb[73].mxu0 }
 0x35a   : > { %v12164_v45 = vadd.f32 %v12163_v44, %v12162_v42  ;;  %v12165_v47 = vpop.f32.mrb[74].mxu0 }
 0x35b   : > { %v12166_v50 = vpop.f32.mrb[75].mxu0 }
 0x35c   : > { %v8690_v51 = vadd.f32 %v12164_v45, %v16252_v5  ;;  %v12167_v52 = vadd.f32 %v12166_v50, %v12165_v47 }
 0x35e   : > { %v12184_v43 = vpop.f32.mrb[72].mxu1  ;;  %v8693_v56 = vadd.f32 %v12167_v52, %v16267_v14 }
 0x35f   : > { %v12185_v46 = vpop.f32.mrb[73].mxu1 }
 0x360   : > { %v12186_v48 = vadd.f32 %v12185_v46, %v12184_v43  ;;  %v12187_v49 = vpop.f32.mrb[74].mxu1 }
 0x361   : > { %v12188_v53 = vpop.f32.mrb[75].mxu1 }
 0x362   : > { %v12189_v54 = vadd.f32 %v12188_v53, %v12187_v49  ;;  %v8731_v55 = vadd.f32 %v12186_v48, %v8690_v51 }
 0x364   : > { %v8734_v57 = vadd.f32 %v12189_v54, %v8693_v56 }
 0x378   : > { %v12206_v58 = vpop.f32.mrb[76].mxu0 }
 0x379   : > { %v12207_v60 = vpop.f32.mrb[77].mxu0 }
 0x37a   : > { %v12208_v61 = vadd.f32 %v12207_v60, %v12206_v58  ;;  %v12209_v63 = vpop.f32.mrb[78].mxu0 }
 0x37b   : > { %v12210_v2 = vpop.f32.mrb[79].mxu0 }
 0x37c   : > { %v8772_v3 = vadd.f32 %v12208_v61, %v8731_v55  ;;  %v12211_v4 = vadd.f32 %v12210_v2, %v12209_v63 }
 0x37e   : > { %v12228_v59 = vpop.f32.mrb[76].mxu1  ;;  %v8775_v8 = vadd.f32 %v12211_v4, %v8734_v57 }
 0x37f   : > { %v12229_v62 = vpop.f32.mrb[77].mxu1 }
 0x380   : > { %v12230_v0 = vadd.f32 %v12229_v62, %v12228_v59  ;;  %v12231_v1 = vpop.f32.mrb[78].mxu1 }
 0x381   : > { %v12232_v6 = vpop.f32.mrb[79].mxu1 }
 0x382   : > { %v12233_v5 = vadd.f32 %v12232_v6, %v12231_v1  ;;  %v8813_v7 = vadd.f32 %v12230_v0, %v8772_v3 }
 0x384   : > { %v8816_v9 = vadd.f32 %v12233_v5, %v8775_v8 }
 0x398   : > { %v12250_v10 = vpop.f32.mrb[80].mxu0 }
 0x399   : > { %v12251_v12 = vpop.f32.mrb[81].mxu0 }
 0x39a   : > { %v12252_v14 = vadd.f32 %v12251_v12, %v12250_v10  ;;  %v12253_v16 = vpop.f32.mrb[82].mxu0 }
 0x39b   : > { %v12254_v18 = vpop.f32.mrb[83].mxu0 }
 0x39c   : > { %v8854_v20 = vadd.f32 %v12252_v14, %v8813_v7  ;;  %v12255_v21 = vadd.f32 %v12254_v18, %v12253_v16 }
 0x39e   : > { %v12272_v11 = vpop.f32.mrb[80].mxu1  ;;  %v8857_v24 = vadd.f32 %v12255_v21, %v8816_v9 }
 0x39f   : > { %v12273_v13 = vpop.f32.mrb[81].mxu1 }
 0x3a0   : > { %v12274_v15 = vadd.f32 %v12273_v13, %v12272_v11  ;;  %v12275_v17 = vpop.f32.mrb[82].mxu1 }
 0x3a1   : > { %v12276_v19 = vpop.f32.mrb[83].mxu1 }
 0x3a2   : > { %v12277_v22 = vadd.f32 %v12276_v19, %v12275_v17  ;;  %v8895_v23 = vadd.f32 %v12274_v15, %v8854_v20 }
 0x3a4   : > { %v8898_v25 = vadd.f32 %v12277_v22, %v8857_v24 }
 0x3b8   : > { %v12294_v31 = vpop.f32.mrb[84].mxu0 }
 0x3b9   : > { %v12295_v33 = vpop.f32.mrb[85].mxu0 }
 0x3ba   : > { %v12296_v34 = vadd.f32 %v12295_v33, %v12294_v31  ;;  %v12297_v36 = vpop.f32.mrb[86].mxu0 }
 0x3bb   : > { %v12298_v39 = vpop.f32.mrb[87].mxu0 }
 0x3bc   : > { %v8936_v40 = vadd.f32 %v12296_v34, %v8895_v23  ;;  %v12299_v41 = vadd.f32 %v12298_v39, %v12297_v36  ;;  %v13488_v36 = vmov 0.0   ;;  %v13338_v39 = vld [vmem:[%s16870_s5 + $0x18] sm:$0xff]  }
 0x3bd   : > { %12463 = vmatprep.subr.bf16.mxu1 %v13488_v36  ;;  %12479 = vmatprep.mubr.msk.bf16.mxu1 %vm13489_vm2, %v13488_v36 }
 0x3be   : > { %v12316_v32 = vpop.f32.mrb[84].mxu1  ;;  %v8939_v45 = vadd.f32 %v12299_v41, %v8898_v25  ;;  %v13340_v41 = vld [vmem:[%s16870_s5 + $0x28] sm:$0xff]  }
 0x3bf   : > { %v12317_v35 = vpop.f32.mrb[85].mxu1 }
 0x3c0   : > { %v12318_v37 = vadd.f32 %v12317_v35, %v12316_v32  ;;  %v12319_v38 = vpop.f32.mrb[86].mxu1  ;;  %v13335_v35 = vld [vmem:[%s16870_s5] sm:$0xff]  }
 0x3c1   : > { %v12320_v42 = vpop.f32.mrb[87].mxu1  ;;  %12464 = vmatpush3.bf16.msra.mxu1 %v13335_v35  ;;  %v9477_v35 = vld [vmem:[%s16872_s7 + $0x40] sm:$0xff] }
 0x3c2   : > { %v12321_v43 = vadd.f32 %v12320_v42, %v12319_v38  ;;  %v8977_v44 = vadd.f32 %v12318_v37, %v8936_v40  ;;  %12465 = vmatprep.subr.bf16.mxu1 %v13488_v36  ;;  %v13336_v37 = vld [vmem:[%s16870_s5 + $0x8] sm:$0xff]   ;;  %v13337_v38 = vld [vmem:[%s16870_s5 + $0x10] sm:$0xff]   ;;  %v13339_v40 = vld [vmem:[%s16870_s5 + $0x20] sm:$0xff]  }
 0x3c3   : > { %v13341_v42 = vld [vmem:[%s16870_s5 + $0x30] sm:$0xff]  }
 0x3c4   : > { %v8980_v46 = vadd.f32 %v12321_v43, %v8939_v45  ;;  %v13342_v43 = vld [vmem:[%s16870_s5 + $0x38] sm:$0xff]   ;;  %v9473_v45 = vld [vmem:[%s16872_s7 + $0x20] sm:$0xff] }
 0x3c5   : > { %12466 = vmatpush3.bf16.msra.mxu1 %v13336_v37  ;;  %v9478_v37 = vld [vmem:[%s16872_s7 + $0x48] sm:$0xff] }
 0x3c6   : > { %12467 = vmatprep.subr.bf16.mxu1 %v13488_v36 }
 0x3c9   : > { %12468 = vmatpush3.bf16.msra.mxu1 %v13337_v38 }
 0x3ca   : > { %12469 = vmatprep.subr.bf16.mxu1 %v13488_v36 }
 0x3cd   : > { %12470 = vmatpush3.bf16.msra.mxu1 %v13338_v39  ;;  %v9482_v39 = vld [vmem:[%s16872_s7 + $0x68] sm:$0xff] }
 0x3ce   : > { %12471 = vmatprep.subr.bf16.mxu1 %v13488_v36 }
 0x3d1   : > { %12472 = vmatpush3.bf16.msra.mxu1 %v13339_v40 }
 0x3d2   : > { %12473 = vmatprep.subr.bf16.mxu1 %v13488_v36 }
 0x3d5   : > { %12474 = vmatpush3.bf16.msra.mxu1 %v13340_v41  ;;  %v11286_v41 = vcombine.low %v9478_v37, %v9482_v39 }
 0x3d6   : > { %12475 = vmatprep.subr.bf16.mxu1 %v13488_v36 }
 0x3d8   : > { %v12338_v47 = vpop.f32.mrb[88].mxu0 }
 0x3d9   : > { %v12339_v49 = vpop.f32.mrb[89].mxu0  ;;  %12476 = vmatpush3.bf16.msra.mxu1 %v13341_v42  ;;  %v11287_v42 = vcombine.high %v9478_v37, %v9482_v39  ;;  %v11267_v39 = vld [vmem:[%s16871_s6] ss:$0 sm:$0xff] }
 0x3da   : > { %v12340_v50 = vadd.f32 %v12339_v49, %v12338_v47  ;;  %v12341_v52 = vpop.f32.mrb[90].mxu0  ;;  %12477 = vmatprep.subr.bf16.mxu1 %v13488_v36  ;;  %v16367_v49 = vld [vmem:[%s16872_s7 + $0x28] sm:$0xff]  ;;  %v9481_v36 = vld [vmem:[%s16872_s7 + $0x60] sm:$0xff] }
 0x3db   : > { %v12342_v55 = vpop.f32.mrb[91].mxu0  ;;  %v11285_v38 = vcombine.high %v9477_v35, %v9481_v36  ;;  %v11284_v40 = vcombine.low %v9477_v35, %v9481_v36 }
 0x3dc   : > { %v9018_v56 = vadd.f32 %v12340_v50, %v8977_v44  ;;  %v12343_v57 = vadd.f32 %v12342_v55, %v12341_v52  ;;  %v9469_v44 = vld [vmem:[%s16872_s7] sm:$0xff]  ;;  %v9235_v52 = vlaneseq }
 0x3dd   : > { %12478 = vmatpush3.bf16.msra.mxu1 %v13342_v43  ;;  %v11276_v47 = vcombine.low %v9469_v44, %v9473_v45  ;;  %v9233_v55 = vld [vmem:[%s16869_s4] sm:$0x3] }
 0x3de   : > { %v12360_v48 = vpop.f32.mrb[88].mxu1  ;;  %v9021_v61 = vadd.f32 %v12343_v57, %v8980_v46  ;;  %v16362_v46 = vld [vmem:[%s16872_s7 + $0x8] sm:$0xff]  ;;  %v9485_v43 = vld [vmem:[%s16872_s7 + $0x80] sm:$0xff] }
 0x3df   : > { %v12361_v51 = vpop.f32.mrb[89].mxu1  ;;  %v11278_v50 = vcombine.low %v16362_v46, %v16367_v49 }
 0x3e0   : > { %v12362_v53 = vadd.f32 %v12361_v51, %v12360_v48  ;;  %v12363_v54 = vpop.f32.mrb[90].mxu1  ;;  %v11277_v48 = vcombine.high %v9469_v44, %v9473_v45  ;;  %v11279_v51 = vcombine.high %v16362_v46, %v16367_v49  ;;  %v9489_v44 = vld [vmem:[%s16872_s7 + $0xa0] sm:$0xff]  ;;  %v9486_v45 = vld [vmem:[%s16872_s7 + $0x88] sm:$0xff] }
 0x3e1   : > { %v12364_v58 = vpop.f32.mrb[91].mxu1  ;;  %v11293_v46 = vcombine.high %v9485_v43, %v9489_v44 }
 0x3e2   : > { %v12365_v59 = vadd.f32 %v12364_v58, %v12363_v54  ;;  %v9059_v60 = vadd.f32 %v12362_v53, %v9018_v56  ;;  %9896 = vmatprep.subr.bf16.mxu0 %v11277_v48  ;;  %9939 = vmatprep.subr.bf16.mxu1 %v11279_v51  ;;  %v16373_v53 = vshrl.u32 %v9235_v52, 7  ;;  %v11292_v48 = vcombine.low %v9485_v43, %v9489_v44  ;;  %v9493_v51 = vld [vmem:[%s16872_s7 + $0xc0] sm:$0xff] }
 0x3e3   : > { %v9497_v52 = vld [vmem:[%s16872_s7 + $0xe0] sm:$0xff] }
 0x3e4   : > { %v9062_v62 = vadd.f32 %v12365_v59, %v9021_v61  ;;  %v9237_v54 = vsub.s32 0, %v16373_v53  ;;  %v9241_v56 = vsub.s32 1, %v16373_v53 }
 0x3e6   : > { %v9238_v57 = vrot.slane %v9233_v55, %v9237_v54  ;;  %v9242_v58 = vrot.slane %v9233_v55, %v9241_v56  ;;  %v9494_v55 = vld [vmem:[%s16872_s7 + $0xc8] sm:$0xff] }
 0x3f8   : > { %v12382_v63 = vpop.f32.mrb[92].mxu0 }
 0x3f9   : > { %v12383_v1 = vpop.f32.mrb[93].mxu0 }
 0x3fa   : > { %v12384_v3 = vadd.f32 %v12383_v1, %v12382_v63  ;;  %v12385_v6 = vpop.f32.mrb[94].mxu0 }
 0x3fb   : > { %v12386_v7 = vpop.f32.mrb[95].mxu0 }
 0x3fc   : > { %v9100_v9 = vadd.f32 %v12384_v3, %v9059_v60  ;;  %v12387_v10 = vadd.f32 %v12386_v7, %v12385_v6 }
 0x3fe   : > { %v9103_v13 = vadd.f32 %v12387_v10, %v9062_v62 }
 0x401   : > { %v12404_v0 = vpop.f32.mrb[92].mxu1 }
 0x402   : > { %v12405_v2 = vpop.f32.mrb[93].mxu1 }
 0x403   : > { %v12406_v4 = vadd.f32 %v12405_v2, %v12404_v0  ;;  %v12407_v5 = vpop.f32.mrb[94].mxu1 }
 0x404   : > { %v12408_v8 = vpop.f32.mrb[95].mxu1 }
 0x405   : > { %v12409_v11 = vadd.f32 %v12408_v8, %v12407_v5  ;;  %v9141_v12 = vadd.f32 %v12406_v4, %v9100_v9 }
 0x407   : > { %v9144_v14 = vadd.f32 %v12409_v11, %v9103_v13 }
 0x418   : > { %v12426_v15 = vpop.f32.mrb[96].mxu0 }
 0x419   : > { %v12427_v17 = vpop.f32.mrb[97].mxu0 }
 0x41a   : > { %v12428_v18 = vadd.f32 %v12427_v17, %v12426_v15  ;;  %v12429_v20 = vpop.f32.mrb[98].mxu0 }
 0x41b   : > { %v12430_v23 = vpop.f32.mrb[99].mxu0 }
 0x41c   : > { %v9182_v24 = vadd.f32 %v12428_v18, %v9141_v12  ;;  %v12431_v25 = vadd.f32 %v12430_v23, %v12429_v20 }
 0x41e   : > { %v9185_v29 = vadd.f32 %v12431_v25, %v9144_v14  ;;  %v9328_v25 = vld [vmem:[%s462_s28] sm:$0xff] }
 0x424   : > { %v12448_v16 = vpop.f32.mrb[96].mxu1 }
 0x425   : > { %v12449_v19 = vpop.f32.mrb[97].mxu1 }
 0x426   : > { %v12450_v21 = vadd.f32 %v12449_v19, %v12448_v16  ;;  %v12451_v22 = vpop.f32.mrb[98].mxu1 }
 0x427   : > { %v12452_v26 = vpop.f32.mrb[99].mxu1 }
 0x428   : > { %v12453_v27 = vadd.f32 %v12452_v26, %v12451_v22  ;;  %v9223_v28 = vadd.f32 %v12450_v21, %v9182_v24 }
 0x42a   : > { %v9226_v31 = vadd.f32 %v12453_v27, %v9185_v29  ;;  %v9229_v32 = vmul.f32 0.03125, %v9223_v28  ;;  %v9329_v27 = vld [vmem:[%s462_s28 + $0x8] sm:$0xff]  ;;  %s16718_s28 = scalar_lea.hbm %s16874_s9, %s16881_s23 }
 0x42c   : > { %v9230_v33 = vmul.f32 0.03125, %v9226_v31 }
 0x42e   : > { %v9232_v34 = vpack.c.bf16 %v9230_v33, %v9229_v32 }
 0x430   : > { %11262 = vmatmul.mubr.msk.bf16.vlgmr.msra.gmra.mrb[100].mxu0 %vm9250_vm1, %v9232_v34 }
 0x431   : > { %9928 = vmatprep.mubr.bf16.mxu0 %v13487_v30  ;;  %9897 = vmatpush1.bf16.msra.mxu0 %v11276_v47  ;;  %v9490_v47 = vld [vmem:[%s16872_s7 + $0xa8] sm:$0xff] }
 0x432   : > { %9898 = vmatprep.subr.bf16.mxu0 %v11285_v38  ;;  %v11294_v49 = vcombine.low %v9486_v45, %v9490_v47 }
 0x435   : > { %9899 = vmatpush1.bf16.msra.mxu0 %v11284_v40 }
 0x436   : > { %9900 = vmatprep.subr.bf16.mxu0 %v11293_v46 }
 0x439   : > { %9901 = vmatpush1.bf16.msra.mxu0 %v11292_v48 }
 0x503   : > { %v9295_v59 = vpop.f32.mrb[100].mxu0 }
 0x504   : > { %v9296_v60 = vadd.f32 %v9295_v59, %v9238_v57  ;;  %v9297_v61 = vpop.f32.mrb[101].mxu0  ;;  %v11300_v59 = vcombine.low %v9493_v51, %v9497_v52 }
 0x505   : > { %v9298_v62 = vadd.f32 %v9297_v61, %v9242_v58  ;;  %v9299_v63 = vpop.f32.mrb[102].mxu0 }
 0x506   : > { %v9308_v0 = vmin.f32 %v9296_v60, 0.0  ;;  %v9300_v1 = vadd.f32 %v9299_v63, %v9238_v57  ;;  %v9301_v2 = vpop.f32.mrb[103].mxu0  ;;  %vm9304_vm4 = vcmp.gt.f32.partialorder %v9296_v60, 0.0  ;;  %v11301_v57 = vcombine.high %v9493_v51, %v9497_v52  ;;  %v9505_v63 = vld [vmem:[%s16872_s7 + $0x120] sm:$0xff] }
 0x507   : > { %v9309_v3 = vmin.f32 %v9298_v62, 0.0  ;;  %v9302_v4 = vadd.f32 %v9301_v2, %v9242_v58  ;;  %vm9305_vm5 = vcmp.gt.f32.partialorder %v9298_v62, 0.0  ;;  %v9498_v58 = vld [vmem:[%s16872_s7 + $0xe8] sm:$0xff] }
 0x508   : > { %v9312_v6 = vmul.f32 1.442695, %v9308_v0  ;;  %v9310_v5 = vmin.f32 %v9300_v1, 0.0  ;;  %vm9306_vm6 = vcmp.gt.f32.partialorder %v9300_v1, 0.0  ;;  %v11303_v61 = vcombine.high %v9494_v55, %v9498_v58  ;;  %9902 = vmatprep.subr.bf16.mxu0 %v11301_v57  ;;  %v9502_v0 = vld [vmem:[%s16872_s7 + $0x108] sm:$0xff] }
 0x509   : > { %v9314_v7 = vmul.f32 1.442695, %v9309_v3  ;;  %v9311_v8 = vmin.f32 %v9302_v4, 0.0  ;;  %vm9307_vm7 = vcmp.gt.f32.partialorder %v9302_v4, 0.0  ;;  %9903 = vmatpush1.bf16.msra.mxu0 %v11300_v59  ;;  %v9506_v2 = vld [vmem:[%s16872_s7 + $0x128] sm:$0xff] }
 0x50a   : > { %13343 = vpow2.f32 %v9312_v6  ;;  %v9316_v9 = vmul.f32 1.442695, %v9310_v5  ;;  %v11311_v6 = vcombine.high %v9502_v0, %v9506_v2  ;;  %v9509_v5 = vld [vmem:[%s16872_s7 + $0x140] sm:$0xff] }
 0x50b   : > { %13345 = vpow2.f32 %v9314_v7  ;;  %v9318_v10 = vmul.f32 1.442695, %v9311_v8  ;;  %v9513_v7 = vld [vmem:[%s16872_s7 + $0x160] sm:$0xff]  ;;  %v9510_v8 = vld [vmem:[%s16872_s7 + $0x148] sm:$0xff] }
 0x50c   : > { %13347 = vpow2.f32 %v9316_v9  ;;  %v11317_v9 = vcombine.high %v9509_v5, %v9513_v7 }
 0x50d   : > { %13349 = vpow2.f32 %v9318_v10  ;;  %v9514_v10 = vld [vmem:[%s16872_s7 + $0x168] sm:$0xff] }
 0x514   : > { %v13344_v11 = vpop.eup %13343 }
 0x515   : > { %v13346_v12 = vpop.eup %13345  ;;  %v11263_v13 = vadd.f32 -1.0, %v13344_v11  ;;  %v9517_v11 = vld [vmem:[%s16872_s7 + $0x180] sm:$0xff] }
 0x516   : > { %v13348_v14 = vpop.eup %13347  ;;  %v11264_v15 = vadd.f32 -1.0, %v13346_v12  ;;  %v9521_v12 = vld [vmem:[%s16872_s7 + $0x1a0] sm:$0xff] }
 0x517   : > { %v13350_v16 = vpop.eup %13349  ;;  %v9324_v17 = vsel %vm9304_vm4, %v9296_v60, %v11263_v13  ;;  %v11265_v18 = vadd.f32 -1.0, %v13348_v14  ;;  %v11302_v60 = vcombine.low %v9494_v55, %v9498_v58  ;;  %v11316_v13 = vcombine.low %v9509_v5, %v9513_v7 }
 0x518   : > { %10230 = vst.msk [vmem:[%s470_s18] sm:$0xff] %vm10229_vm3, %v9324_v17  ;;  %v9325_v19 = vsel %vm9305_vm5, %v9298_v62, %v11264_v15  ;;  %v11266_v20 = vadd.f32 -1.0, %v13350_v16  ;;  %v9501_v62 = vld [vmem:[%s16872_s7 + $0x100] sm:$0xff]  ;;  %v11319_v14 = vcombine.high %v9510_v8, %v9514_v10  ;;  %v9518_v15 = vld [vmem:[%s16872_s7 + $0x188] sm:$0xff] }
 0x519   : > { %v9330_v21 = vmul.f32 1.442695, %v9325_v19  ;;  %10232 = vst.msk [vmem:[%s476_s26] sm:$0xff] %vm10229_vm3, %v9325_v19  ;;  %v9326_v22 = vsel %vm9306_vm6, %v9300_v1, %v11265_v18  ;;  %v11309_v1 = vcombine.high %v9501_v62, %v9505_v63  ;;  %v11308_v3 = vcombine.low %v9501_v62, %v9505_v63  ;;  %v9522_v16 = vld [vmem:[%s16872_s7 + $0x1a8] sm:$0xff]  ;;  %v9525_v19 = vld [vmem:[%s16872_s7 + $0x1c0] sm:$0xff] }
 0x51a   : > { %10231 = vst.msk [vmem:[%s470_s18 + $0x8] sm:$0xff] %vm10229_vm3, %v9326_v22  ;;  %v9327_v23 = vsel %vm9307_vm7, %v9302_v4, %v11266_v20  ;;  %v11310_v4 = vcombine.low %v9502_v0, %v9506_v2  ;;  %v11325_v18 = vcombine.high %v9517_v11, %v9521_v12  ;;  %v9529_v20 = vld [vmem:[%s16872_s7 + $0x1e0] sm:$0xff]  ;;  %v9483_v2 = vld [vmem:[%s16872_s7 + $0x70] sm:$0xff]  ;;  %s16882_s18 = sshll.u32 %s16673_s17, 6 }
 0x51b   : > { %13351 = vpow2.f32 %v9330_v21  ;;  %v9332_v24 = vmul.f32 1.442695, %v9327_v23  ;;  %10233 = vst.msk [vmem:[%s476_s26 + $0x8] sm:$0xff] %vm10229_vm3, %v9327_v23  ;;  %9904 = vmatprep.subr.bf16.mxu0 %v11309_v1  ;;  %v11327_v21 = vcombine.high %v9518_v15, %v9522_v16  ;;  %v16488_v23 = vld [vmem:[%s16872_s7 + $0x30] sm:$0xff]  ;;  %v11332_v35 = vcombine.low %v9525_v19, %v9529_v20  ;;  %s16686_s19 = scalar_lea.vmem [#allocation2], %s16882_s18 }
 0x51c   : > { %9905 = vmatpush1.bf16.msra.mxu0 %v11308_v3  ;;  %v9479_v1 = vld [vmem:[%s16872_s7 + $0x50] sm:$0xff]  ;;  %v9480_v3 = vld [vmem:[%s16872_s7 + $0x58] sm:$0xff]  ;;  %s10264_s26 = sshll.u32 %s16686_s19, 4  ;;  %s16720_s26 = int_to_ptr.vmem [resolvable:$true] %s10264_s26 }
 0x51d   : > { %13353 = vpow2.f32 %v9332_v24  ;;  %9906 = vmatprep.subr.bf16.mxu0 %v11317_v9  ;;  %v16493_v24 = vld [vmem:[%s16872_s7 + $0x18] sm:$0xff]  ;;  %s13391_s27 = scalar_lea.vmem %s16720_s26, 1024  ;;  %p13398_p0 = scmp.lt.s32.totalorder %s16720_s26, %s13396_s16 }
 0x51e   : > { %p13392_p11 = scmp.ne.s32.totalorder %s16720_s26, %s13391_s27 }
 0x520   : > { %9907 = vmatpush1.bf16.msra.mxu0 %v11316_v13  ;;  %v9492_v13 = vld [vmem:[%s16872_s7 + $0xb8] sm:$0xff]  ;;  %p13393_p12 = pnand %p13392_p11, %p13597_p5 }
 0x521   : > { %9908 = vmatprep.subr.bf16.mxu0 %v11325_v18  ;;  %v9495_v18 = vld [vmem:[%s16872_s7 + $0xd0] sm:$0xff] }
 0x522   : > { %p13394_p13 = pneg %p13393_p12 }
 0x525   : > { %v13352_v26 = vpop.eup %13351 }
 0x526   : > { %v9334_v28 = vmul.f32 %v13352_v26, %v9328_v25  ;;  %v9526_v25 = vld [vmem:[%s16872_s7 + $0x1c8] sm:$0xff] }
 0x527   : > { %v13354_v29 = vpop.eup %13353  ;;  %v9530_v26 = vld [vmem:[%s16872_s7 + $0x1e8] sm:$0xff] }
 0x528   : > { %v9335_v31 = vmul.f32 %v13354_v29, %v9329_v27  ;;  %v9336_v32 = vadd.f32 %v9334_v28, %v9324_v17  ;;  %v11318_v17 = vcombine.low %v9510_v8, %v9514_v10  ;;  %v16506_v28 = vld [vmem:[%s16872_s7 + $0x38] sm:$0xff]  ;;  %v11324_v29 = vcombine.low %v9517_v11, %v9521_v12  ;;  %v9487_v10 = vld [vmem:[%s16872_s7 + $0x90] sm:$0xff] }
 0x529   : > { %v11334_v36 = vcombine.low %v9526_v25, %v9530_v26  ;;  %v11283_v38 = vcombine.high %v16493_v24, %v16506_v28  ;;  %v11289_v8 = vcombine.high %v9479_v1, %v9483_v2  ;;  %v9491_v11 = vld [vmem:[%s16872_s7 + $0xb0] sm:$0xff]  ;;  %v9488_v12 = vld [vmem:[%s16872_s7 + $0x98] sm:$0xff] }
 0x52a   : > { %v9337_v33 = vadd.f32 %v9335_v31, %v9326_v22  ;;  %v16483_v22 = vld [vmem:[%s16872_s7 + $0x10] sm:$0xff]  ;;  %v11282_v31 = vcombine.low %v16493_v24, %v16506_v28  ;;  %9909 = vmatpush1.bf16.msra.mxu0 %v11324_v29  ;;  %v9508_v28 = vld [vmem:[%s16872_s7 + $0x138] sm:$0xff] }
 0x52b   : > { %v11280_v27 = vcombine.low %v16483_v22, %v16488_v23  ;;  %v11281_v37 = vcombine.high %v16483_v22, %v16488_v23  ;;  %v11296_v22 = vcombine.low %v9487_v10, %v9491_v11  ;;  %v11298_v23 = vcombine.low %v9488_v12, %v9492_v13 }
 0x52c   : > { %v9354_v34 = vpack.c.bf16 %v9337_v33, %v9336_v32  ;;  %v11326_v32 = vcombine.low %v9518_v15, %v9522_v16  ;;  %v11333_v33 = vcombine.high %v9525_v19, %v9529_v20  ;;  %v11297_v16 = vcombine.high %v9487_v10, %v9491_v11  ;;  %v9499_v19 = vld [vmem:[%s16872_s7 + $0xf0] sm:$0xff]  ;;  %v9496_v20 = vld [vmem:[%s16872_s7 + $0xd8] sm:$0xff] }
 0x52d   : > { %v11305_v24 = vcombine.high %v9495_v18, %v9499_v19  ;;  %v11304_v29 = vcombine.low %v9495_v18, %v9499_v19 }
 0x52e   : > { %12480 = vmatmul.mubr.bf16.vlgmr.msra.gmra.mrb[100].mxu1 %v9354_v34  ;;  %v11335_v34 = vcombine.high %v9526_v25, %v9530_v26  ;;  %9910 = vmatprep.subr.bf16.mxu0 %v11333_v33  ;;  %v9503_v26 = vld [vmem:[%s16872_s7 + $0x110] sm:$0xff] }
 0x52f   : > { %9940 = vmatpush1.bf16.msra.mxu1 %v11278_v50  ;;  %9971 = vmatprep.mubr.bf16.mxu1 %v13487_v30  ;;  %v11295_v50 = vcombine.high %v9486_v45, %v9490_v47 }
 0x530   : > { %9941 = vmatprep.subr.bf16.mxu1 %v11287_v42  ;;  %9911 = vmatpush1.bf16.msra.mxu0 %v11332_v35  ;;  %v9515_v35 = vld [vmem:[%s16872_s7 + $0x170] sm:$0xff] }
 0x531   : > { %9982 = vmatprep.subr.bf16.mxu0 %v11281_v37  ;;  %v9516_v37 = vld [vmem:[%s16872_s7 + $0x178] sm:$0xff] }
 0x533   : > { %9942 = vmatpush1.bf16.msra.mxu1 %v11286_v41 }
 0x534   : > { %9943 = vmatprep.subr.bf16.mxu1 %v11295_v50 }
 0x537   : > { %9944 = vmatpush1.bf16.msra.mxu1 %v11294_v49 }
 0x538   : > { %9945 = vmatprep.subr.bf16.mxu1 %v11303_v61 }
 0x53b   : > { %9946 = vmatpush1.bf16.msra.mxu1 %v11302_v60 }
 0x53c   : > { %9947 = vmatprep.subr.bf16.mxu1 %v11311_v6 }
 0x53f   : > { %9948 = vmatpush1.bf16.msra.mxu1 %v11310_v4  ;;  %v9484_v4 = vld [vmem:[%s16872_s7 + $0x78] sm:$0xff] }
 0x540   : > { %9949 = vmatprep.subr.bf16.mxu1 %v11319_v14  ;;  %v11291_v9 = vcombine.high %v9480_v3, %v9484_v4  ;;  %v11288_v14 = vcombine.low %v9479_v1, %v9483_v2  ;;  %v11290_v15 = vcombine.low %v9480_v3, %v9484_v4  ;;  %v9550_v1 = vsub.s32 3, %v16373_v53 }
 0x543   : > { %9950 = vmatpush1.bf16.msra.mxu1 %v11318_v17  ;;  %v11299_v17 = vcombine.high %v9488_v12, %v9492_v13 }
 0x544   : > { %9951 = vmatprep.subr.bf16.mxu1 %v11327_v21  ;;  %v9500_v21 = vld [vmem:[%s16872_s7 + $0xf8] sm:$0xff] }
 0x545   : > { %v11307_v25 = vcombine.high %v9496_v20, %v9500_v21 }
 0x547   : > { %9952 = vmatpush1.bf16.msra.mxu1 %v11326_v32 }
 0x548   : > { %9953 = vmatprep.subr.bf16.mxu1 %v11335_v34  ;;  %v9511_v34 = vld [vmem:[%s16872_s7 + $0x150] sm:$0xff] }
 0x54b   : > { %9954 = vmatpush1.bf16.msra.mxu1 %v11334_v36  ;;  %v9512_v36 = vld [vmem:[%s16872_s7 + $0x158] sm:$0xff] }
 0x54c   : > { %10025 = vmatprep.subr.bf16.mxu1 %v11283_v38 }
 0x601   : > { %v9444_v40 = vpop.f32.mrb[100].mxu1 }
 0x602   : > { %v9445_v41 = vadd.f32 %v11267_v39, %v9444_v40  ;;  %v12481_v42 = vpop.f32.mrb[101].mxu1  ;;  %v11321_v40 = vcombine.high %v9511_v34, %v9515_v35 }
 0x603   : > { %v9447_v43 = vpop.f32.mrb[102].mxu1  ;;  %v9519_v42 = vld [vmem:[%s16872_s7 + $0x190] sm:$0xff] }
 0x604   : > { %v9453_v44 = vmul.f32 %v9445_v41, %v9445_v41  ;;  %v9448_v45 = vadd.f32 %v11267_v39, %v9447_v43  ;;  %v12482_v46 = vpop.f32.mrb[103].mxu1  ;;  %v9451_v62 = vmul.f32 0.5, %v9445_v41  ;;  %v9523_v43 = vld [vmem:[%s16872_s7 + $0x1b0] sm:$0xff] }
 0x605   : > { %v11320_v46 = vcombine.low %v9511_v34, %v9515_v35 }
 0x606   : > { %v9455_v47 = vmul.f32 %v9453_v44, %v9445_v41  ;;  %v9454_v48 = vmul.f32 %v9448_v45, %v9448_v45  ;;  %v9452_v63 = vmul.f32 0.5, %v9448_v45  ;;  %v9520_v44 = vld [vmem:[%s16872_s7 + $0x198] sm:$0xff] }
 0x608   : > { %v9457_v49 = vmul.f32 0.044715, %v9455_v47  ;;  %v9456_v50 = vmul.f32 %v9454_v48, %v9448_v45  ;;  %v11322_v47 = vcombine.low %v9512_v36, %v9516_v37  ;;  %v11329_v48 = vcombine.high %v9519_v42, %v9523_v43 }
 0x60a   : > { %v9459_v51 = vadd.f32 %v9457_v49, %v9445_v41  ;;  %v9458_v52 = vmul.f32 0.044715, %v9456_v50  ;;  %v11323_v41 = vcombine.high %v9512_v36, %v9516_v37  ;;  %v9527_v50 = vld [vmem:[%s16872_s7 + $0x1d0] sm:$0xff] }
 0x60c   : > { %v9461_v55 = vmul.f32 0.7978846, %v9459_v51  ;;  %v9460_v57 = vadd.f32 %v9458_v52, %v9448_v45  ;;  %v9524_v45 = vld [vmem:[%s16872_s7 + $0x1b8] sm:$0xff]  ;;  %v9531_v51 = vld [vmem:[%s16872_s7 + $0x1f0] sm:$0xff] }
 0x60d   : > { %v11331_v49 = vcombine.high %v9520_v44, %v9524_v45  ;;  %v9528_v52 = vld [vmem:[%s16872_s7 + $0x1d8] sm:$0xff] }
 0x60e   : > { %13355 = vtanh.f32 %v9461_v55  ;;  %v9462_v58 = vmul.f32 0.7978846, %v9460_v57  ;;  %v9532_v55 = vld [vmem:[%s16872_s7 + $0x1f8] sm:$0xff]  ;;  %v11328_v57 = vcombine.low %v9519_v42, %v9523_v43 }
 0x610   : > { %13357 = vtanh.f32 %v9462_v58  ;;  %v11330_v58 = vcombine.low %v9520_v44, %v9524_v45 }
 0x618   : > { %v13356_v59 = vpop.eup %13355 }
 0x619   : > { %v9465_v60 = vadd.f32 1.0, %v13356_v59  ;;  %v11337_v59 = vcombine.high %v9527_v50, %v9531_v51 }
 0x61a   : > { %v13358_v61 = vpop.eup %13357 }
 0x61b   : > { %v9466_v0 = vadd.f32 1.0, %v13358_v61  ;;  %v9467_v6 = vmul.f32 %v9465_v60, %v9451_v62  ;;  %v11339_v60 = vcombine.high %v9528_v52, %v9532_v55  ;;  %v11336_v61 = vcombine.low %v9527_v50, %v9531_v51 }
 0x61c   : > { %v11338_v62 = vcombine.low %v9528_v52, %v9532_v55 }
 0x61d   : > { %v9468_v5 = vmul.f32 %v9466_v0, %v9452_v63  ;;  %v9546_v63 = vsub.s32 2, %v16373_v53  ;;  %v16613_v0 = vld [vmem:[%s16873_s8] sm:$0xff] }
 0x61e   : > { %v9539_v2 = vrot.slane %v16613_v0, %v9237_v54  ;;  %v9543_v4 = vrot.slane %v16613_v0, %v9241_v56 }
 0x61f   : > { %v16529_v7 = vpack.c.bf16 %v9468_v5, %v9467_v6  ;;  %v9547_v3 = vrot.slane %v16613_v0, %v9546_v63  ;;  %v9551_v6 = vrot.slane %v16613_v0, %v9550_v1 }
 0x621   : > { %9929 = vmatmul.mubr.bf16.vlgmr.msra.gmra.mrb[104].mxu0 %v16529_v7  ;;  %9972 = vmatmul.mubr.bf16.vlgmr.msra.gmra.mrb[104].mxu1 %v16529_v7 }
 0x622   : > { %9983 = vmatpush1.bf16.msra.mxu0 %v11280_v27  ;;  %10026 = vmatpush1.bf16.msra.mxu1 %v11282_v31  ;;  %v9507_v27 = vld [vmem:[%s16872_s7 + $0x130] sm:$0xff]  ;;  %v11306_v31 = vcombine.low %v9496_v20, %v9500_v21 }
 0x623   : > { %9984 = vmatprep.subr.bf16.mxu0 %v11289_v8  ;;  %10027 = vmatprep.subr.bf16.mxu1 %v11291_v9  ;;  %v11313_v32 = vcombine.high %v9503_v26, %v9507_v27  ;;  %v11312_v38 = vcombine.low %v9503_v26, %v9507_v27 }
 0x624   : > { %10014 = vmatprep.mubr.bf16.mxu0 %v13487_v30  ;;  %10057 = vmatprep.mubr.bf16.mxu1 %v13487_v30  ;;  %v9504_v30 = vld [vmem:[%s16872_s7 + $0x118] sm:$0xff] }
 0x625   : > { %v11315_v33 = vcombine.high %v9504_v30, %v9508_v28  ;;  %v11314_v39 = vcombine.low %v9504_v30, %v9508_v28 }
 0x626   : > { %9985 = vmatpush1.bf16.msra.mxu0 %v11288_v14  ;;  %10028 = vmatpush1.bf16.msra.mxu1 %v11290_v15 }
 0x627   : > { %9986 = vmatprep.subr.bf16.mxu0 %v11297_v16  ;;  %10029 = vmatprep.subr.bf16.mxu1 %v11299_v17 }
 0x62a   : > { %9987 = vmatpush1.bf16.msra.mxu0 %v11296_v22  ;;  %10030 = vmatpush1.bf16.msra.mxu1 %v11298_v23 }
 0x62b   : > { %9988 = vmatprep.subr.bf16.mxu0 %v11305_v24  ;;  %10031 = vmatprep.subr.bf16.mxu1 %v11307_v25 }
 0x62e   : > { %9989 = vmatpush1.bf16.msra.mxu0 %v11304_v29  ;;  %10032 = vmatpush1.bf16.msra.mxu1 %v11306_v31 }
 0x62f   : > { %9990 = vmatprep.subr.bf16.mxu0 %v11313_v32  ;;  %10033 = vmatprep.subr.bf16.mxu1 %v11315_v33 }
 0x632   : > { %9991 = vmatpush1.bf16.msra.mxu0 %v11312_v38  ;;  %10034 = vmatpush1.bf16.msra.mxu1 %v11314_v39 }
 0x633   : > { %9992 = vmatprep.subr.bf16.mxu0 %v11321_v40  ;;  %10035 = vmatprep.subr.bf16.mxu1 %v11323_v41 }
 0x636   : > { %9993 = vmatpush1.bf16.msra.mxu0 %v11320_v46  ;;  %10036 = vmatpush1.bf16.msra.mxu1 %v11322_v47 }
 0x637   : > { %9994 = vmatprep.subr.bf16.mxu0 %v11329_v48  ;;  %10037 = vmatprep.subr.bf16.mxu1 %v11331_v49 }
 0x63a   : > { %9995 = vmatpush1.bf16.msra.mxu0 %v11328_v57  ;;  %10038 = vmatpush1.bf16.msra.mxu1 %v11330_v58 }
 0x63b   : > { %9996 = vmatprep.subr.bf16.mxu0 %v11337_v59  ;;  %10039 = vmatprep.subr.bf16.mxu1 %v11339_v60 }
 0x63e   : > { %9997 = vmatpush1.bf16.msra.mxu0 %v11336_v61  ;;  %10040 = vmatpush1.bf16.msra.mxu1 %v11338_v62 }
 0x641   : > { %10015 = vmatmul.mubr.bf16.vlgmr.msra.gmra.mrb[108].mxu0 %v16529_v7  ;;  %10058 = vmatmul.mubr.bf16.vlgmr.msra.gmra.mrb[108].mxu1 %v16529_v7 }
 0x6f4   : > { %v9930_v5 = vpop.f32.mrb[104].mxu0  ;;  %v9973_v7 = vpop.f32.mrb[104].mxu1 }
 0x6f5   : > { %v16624_v8 = vadd.f32 %v9930_v5, %v9539_v2  ;;  %v16626_v9 = vadd.f32 %v9973_v7, %v9547_v3  ;;  %v9932_v10 = vpop.f32.mrb[105].mxu0  ;;  %v9975_v11 = vpop.f32.mrb[105].mxu1 }
 0x6f6   : > { %v16628_v12 = vadd.f32 %v9932_v10, %v9543_v4  ;;  %v16630_v13 = vadd.f32 %v9975_v11, %v9551_v6  ;;  %v9934_v54 = vpop.f32.mrb[106].mxu0  ;;  %v9977_v14 = vpop.f32.mrb[106].mxu1  ;;  %v9562_v10 = vsub.s32 6, %v16373_v53  ;;  %v9558_v11 = vsub.s32 5, %v16373_v53 }
 0x6f7   : > { %v10084_v15 = vmul.f32 %v16624_v8, %v16624_v8  ;;  %v10086_v56 = vmul.f32 %v16626_v9, %v16626_v9  ;;  %v9936_v16 = vpop.f32.mrb[107].mxu0  ;;  %v9979_v17 = vpop.f32.mrb[107].mxu1  ;;  %v16642_v22 = vadd.f32 %v9934_v54, %v9539_v2  ;;  %v16644_v23 = vadd.f32 %v9977_v14, %v9547_v3 }
 0x6f8   : > { %v10085_v18 = vmul.f32 %v16628_v12, %v16628_v12  ;;  %v10087_v19 = vmul.f32 %v16630_v13, %v16630_v13  ;;  %v16648_v26 = vadd.f32 %v9936_v16, %v9543_v4  ;;  %v16652_v29 = vadd.f32 %v9979_v17, %v9551_v6 }
 0x6f9   : > { %v10100_v20 = vmul.f32 %v10084_v15, %v16624_v8  ;;  %v10102_v21 = vmul.f32 %v10086_v56, %v16626_v9  ;;  %v10092_v28 = vmul.f32 %v16642_v22, %v16642_v22  ;;  %v10094_v33 = vmul.f32 %v16644_v23, %v16644_v23 }
 0x6fa   : > { %v10101_v24 = vmul.f32 %v10085_v18, %v16628_v12  ;;  %v10103_v25 = vmul.f32 %v10087_v19, %v16630_v13  ;;  %v10093_v40 = vmul.f32 %v16648_v26, %v16648_v26  ;;  %v10095_v44 = vmul.f32 %v16652_v29, %v16652_v29 }
 0x6fb   : > { %v10116_v27 = vmul.f32 0.044715, %v10100_v20  ;;  %v10118_v30 = vmul.f32 0.044715, %v10102_v21  ;;  %v10108_v36 = vmul.f32 %v10092_v28, %v16642_v22  ;;  %v10110_v39 = vmul.f32 %v10094_v33, %v16644_v23 }
 0x6fc   : > { %v10117_v31 = vmul.f32 0.044715, %v10101_v24  ;;  %v10119_v32 = vmul.f32 0.044715, %v10103_v25  ;;  %v10109_v48 = vmul.f32 %v10093_v40, %v16648_v26  ;;  %v10111_v50 = vmul.f32 %v10095_v44, %v16652_v29 }
 0x6fd   : > { %v10132_v34 = vadd.f32 %v10116_v27, %v16624_v8  ;;  %v10134_v35 = vadd.f32 %v10118_v30, %v16626_v9  ;;  %v10124_v43 = vmul.f32 0.044715, %v10108_v36  ;;  %v10126_v47 = vmul.f32 0.044715, %v10110_v39 }
 0x6fe   : > { %v10133_v37 = vadd.f32 %v10117_v31, %v16628_v12  ;;  %v10135_v38 = vadd.f32 %v10119_v32, %v16630_v13  ;;  %v10125_v52 = vmul.f32 0.044715, %v10109_v48  ;;  %v10127_v57 = vmul.f32 0.044715, %v10111_v50 }
 0x6ff   : > { %v10148_v41 = vmul.f32 0.7978846, %v10132_v34  ;;  %v10150_v42 = vmul.f32 0.7978846, %v10134_v35  ;;  %v10140_v49 = vadd.f32 %v10124_v43, %v16642_v22  ;;  %v10142_v51 = vadd.f32 %v10126_v47, %v16644_v23 }
 0x700   : > { %v10149_v45 = vmul.f32 0.7978846, %v10133_v37  ;;  %v10151_v46 = vmul.f32 0.7978846, %v10135_v38  ;;  %v10141_v59 = vadd.f32 %v10125_v52, %v16648_v26  ;;  %v10143_v60 = vadd.f32 %v10127_v57, %v16652_v29 }
 0x701   : > { %13359 = vtanh.f32 %v10148_v41  ;;  %v10156_v55 = vmul.f32 0.7978846, %v10140_v49  ;;  %v10158_v58 = vmul.f32 0.7978846, %v10142_v51  ;;  %v10068_v2 = vmul.f32 0.5, %v16624_v8 }
 0x702   : > { %13361 = vtanh.f32 %v10150_v42  ;;  %v10157_v61 = vmul.f32 0.7978846, %v10141_v59  ;;  %v10159_v62 = vmul.f32 0.7978846, %v10143_v60  ;;  %v9554_v4 = vsub.s32 4, %v16373_v53 }
 0x703   : > { %13363 = vtanh.f32 %v10149_v45  ;;  %v10070_v5 = vmul.f32 0.5, %v16626_v9  ;;  %v10069_v15 = vmul.f32 0.5, %v16628_v12  ;;  %v9566_v16 = vsub.s32 7, %v16373_v53 }
 0x704   : > { %13365 = vtanh.f32 %v10151_v46  ;;  %v10071_v18 = vmul.f32 0.5, %v16630_v13  ;;  %v10076_v12 = vmul.f32 0.5, %v16642_v22  ;;  %v9555_v21 = vrot.slane %v16613_v0, %v9554_v4 }
 0x705   : > { %13367 = vtanh.f32 %v10156_v55  ;;  %v10078_v24 = vmul.f32 0.5, %v16644_v23  ;;  %v9563_v27 = vrot.slane %v16613_v0, %v9562_v10  ;;  %v16696_v31 = vrot.slane %v16613_v0, %v9558_v11 }
 0x706   : > { %13369 = vtanh.f32 %v10158_v58  ;;  %v16699_v22 = vrot.slane %v16613_v0, %v9566_v16  ;;  %v10077_v33 = vmul.f32 0.5, %v16648_v26  ;;  %v10079_v35 = vmul.f32 0.5, %v16652_v29 }
 0x707   : > { %13371 = vtanh.f32 %v10157_v61 }
 0x708   : > { %13373 = vtanh.f32 %v10159_v62 }
 0x70b   : > { %v13360_v63 = vpop.eup %13359 }
 0x70c   : > { %v13362_v1 = vpop.eup %13361  ;;  %v10180_v3 = vadd.f32 1.0, %v13360_v63 }
 0x70d   : > { %v13364_v6 = vpop.eup %13363  ;;  %v10182_v7 = vadd.f32 1.0, %v13362_v1 }
 0x70e   : > { %v13366_v54 = vpop.eup %13365  ;;  %v10196_v14 = vmul.f32 %v10180_v3, %v10068_v2  ;;  %v10181_v56 = vadd.f32 1.0, %v13364_v6 }
 0x70f   : > { %v13368_v8 = vpop.eup %13367  ;;  %v10198_v17 = vmul.f32 %v10182_v7, %v10070_v5  ;;  %v10183_v19 = vadd.f32 1.0, %v13366_v54 }
 0x710   : > { %v13370_v20 = vpop.eup %13369  ;;  %10212 = vst [vmem:[%s16686_s19] sm:$0xff] %v10196_v14  ;;  %v10197_v9 = vmul.f32 %v10181_v56, %v10069_v15  ;;  %v10188_v53 = vadd.f32 1.0, %v13368_v8 }
 0x711   : > { %10214 = vst [vmem:[%s16686_s19 + $0x10] sm:$0xff] %v10198_v17  ;;  %v10199_v13 = vmul.f32 %v10183_v19, %v10071_v18  ;;  %v10190_v25 = vadd.f32 1.0, %v13370_v20  ;;  %v13372_v30 = vpop.eup %13371 }
 0x712   : > { %10213 = vst [vmem:[%s16686_s19 + $0x8] sm:$0xff] %v10197_v9  ;;  %v10204_v28 = vmul.f32 %v10188_v53, %v10076_v12  ;;  %v13374_v32 = vpop.eup %13373  ;;  %v10189_v34 = vadd.f32 1.0, %v13372_v30 }
 0x713   : > { %10216 = vst.msk [vmem:[%s16686_s19 + $0x18] sm:$0xff] %vm10215_vm8, %v10199_v13  ;;  %v10206_v23 = vmul.f32 %v10190_v25, %v10078_v24  ;;  %v10191_v36 = vadd.f32 1.0, %v13374_v32 }
 0x714   : > { %10217 = vst [vmem:[%s16686_s19 + $0x20] sm:$0xff] %v10204_v28  ;;  %v10016_v37 = vpop.f32.mrb[108].mxu0  ;;  %v10059_v38 = vpop.f32.mrb[108].mxu1  ;;  %v10205_v0 = vmul.f32 %v10189_v34, %v10077_v33 }
 0x715   : > { %10219 = vst [vmem:[%s16686_s19 + $0x30] sm:$0xff] %v10206_v23  ;;  %v16709_v39 = vadd.f32 %v10016_v37, %v9555_v21  ;;  %v16711_v40 = vadd.f32 %v10059_v38, %v9563_v27  ;;  %v10018_v41 = vpop.f32.mrb[109].mxu0  ;;  %v10061_v42 = vpop.f32.mrb[109].mxu1  ;;  %v10207_v26 = vmul.f32 %v10191_v36, %v10079_v35 }
 0x716   : > { %v16723_v29 = vadd.f32 %v10018_v41, %v16696_v31  ;;  %v16726_v43 = vadd.f32 %v10061_v42, %v16699_v22  ;;  %v10020_v44 = vpop.f32.mrb[110].mxu0  ;;  %v10063_v45 = vpop.f32.mrb[110].mxu1  ;;  %10218 = vst [vmem:[%s16686_s19 + $0x28] sm:$0xff] %v10205_v0 }
 0x717   : > { %v10088_v46 = vmul.f32 %v16709_v39, %v16709_v39  ;;  %v10090_v47 = vmul.f32 %v16711_v40, %v16711_v40  ;;  %v10022_v48 = vpop.f32.mrb[111].mxu0  ;;  %v10065_v49 = vpop.f32.mrb[111].mxu1  ;;  %10220 = vst.msk [vmem:[%s16686_s19 + $0x38] sm:$0xff] %vm10215_vm8, %v10207_v26  ;;  %v16741_v57 = vadd.f32 %v10020_v44, %v9555_v21  ;;  %v16743_v58 = vadd.f32 %v10063_v45, %v9563_v27  ;;  %s13397_s19 = scalar_lea.vmem %s13396_s16, 2048 }
 0x718   : > { %v10089_v50 = vmul.f32 %v16723_v29, %v16723_v29  ;;  %v10091_v51 = vmul.f32 %v16726_v43, %v16726_v43  ;;  %p13399_p1 = scmp.lt.s32.totalorder %s13397_s19, %s13391_s27 }
 0x719   : > { %v10104_v52 = vmul.f32 %v10088_v46, %v16709_v39  ;;  %v10106_v55 = vmul.f32 %v10090_v47, %v16711_v40 }
 0x71a   : > { %p13400_p2 = por %p13399_p1, %p13398_p0 }
 0x71c   : > { %p13401_p3 = pnand %p13400_p2, %p13394_p13 }
 0x71e   : > { %13404 = shalt.err (!%p13401_p3)
}
 0x71f   : > { %s13405_s15 = scalar_lea.hbm %s16718_s28, 1024  ;;  %s13409_s20 = scalar_lea.hbm %s16874_s9, 2048 }
 0x720   : > { %p13406_p4 = scmp.ne.s32.totalorder %s16718_s28, %s13405_s15  ;;  %p13410_p9 = scmp.lt.u32.totalorder %s16718_s28, %s16874_s9 }
 0x721   : > { %p13411_p10 = scmp.lt.u32.totalorder %s13409_s20, %s13405_s15  ;;  %p13413_p12 = scmp.lt.u32.totalorder %s13405_s15, %s16718_s28 }
 0x722   : > { %p13407_p7 = pnand %p13406_p4, %p13597_p5 }
 0x723   : > { %p13412_p11 = por %p13411_p10, %p13410_p9 }
 0x724   : > { %p13408_p8 = pneg %p13407_p7 }
 0x725   : > { %p13414_p13 = por %p13413_p12, %p13412_p11 }
 0x727   : > { %p13415_p0 = pnand %p13414_p13, %p13408_p8 }
 0x729   : > { %13418 = shalt.err (!%p13415_p0)
}
 0x72a   : > { %s13491_s27 = smov 512   ;;  %s13492_s19 = smov 32   ;;  %v10105_v59 = vmul.f32 %v10089_v50, %v16723_v29  ;;  %v10107_v60 = vmul.f32 %v10091_v51, %v16726_v43  ;;  %v16775_v61 = vadd.f32 %v10022_v48, %v16696_v31  ;;  %v10120_v62 = vmul.f32 0.044715, %v10104_v52 }
 0x72b   : > { %12484 = dma.vmem_to_hbm [thread:$0]  (%p13597_p5), %s16720_s26, 1024, %s16718_s28, %s10235_s29, %s13491_s27, %s13491_s27, %s13492_s19   ;;  %v10122_v63 = vmul.f32 0.044715, %v10106_v55  ;;  %v10096_v1 = vmul.f32 %v16741_v57, %v16741_v57  ;;  %v16780_v2 = vadd.f32 %v10065_v49, %v16699_v22  ;;  %v10098_v6 = vmul.f32 %v16743_v58, %v16743_v58 }
 0x72c   : > { %v10121_v3 = vmul.f32 0.044715, %v10105_v59  ;;  %v10123_v4 = vmul.f32 0.044715, %v10107_v60  ;;  %v10136_v5 = vadd.f32 %v10120_v62, %v16709_v39  ;;  %v10097_v15 = vmul.f32 %v16775_v61, %v16775_v61  ;;  %s16888_s18 = sshll.u32 %s16673_s17, 6  ;;  %s16889_s28 = sshll.u32 %s13580_s25, 10 }
 0x72d   : > { %v10138_v7 = vadd.f32 %v10122_v63, %v16711_v40  ;;  %v10112_v10 = vmul.f32 %v10096_v1, %v16741_v57  ;;  %v10114_v14 = vmul.f32 %v10098_v6, %v16743_v58  ;;  %v10099_v17 = vmul.f32 %v16780_v2, %v16780_v2  ;;  %s436_s23 = scalar_lea.vmem [#allocation4], %s16888_s18  ;;  %s16816_s30 = scalar_lea.hbm %s16875_s10, %s16889_s28 }
 0x72e   : > { %v10137_v11 = vadd.f32 %v10121_v3, %v16723_v29  ;;  %v10139_v54 = vadd.f32 %v10123_v4, %v16726_v43  ;;  %v10152_v56 = vmul.f32 0.7978846, %v10136_v5  ;;  %v10113_v9 = vmul.f32 %v10097_v15, %v16775_v61  ;;  %s10281_s26 = sshll.u32 %s436_s23, 4  ;;  %s13493_s25 = smov [#allocation4]   ;;  %s16818_s26 = int_to_ptr.vmem [resolvable:$true] %s10281_s26 }
 0x72f   : > { %v10154_v16 = vmul.f32 0.7978846, %v10138_v7  ;;  %v10128_v8 = vmul.f32 0.044715, %v10112_v10  ;;  %v10130_v20 = vmul.f32 0.044715, %v10114_v14  ;;  %v10115_v53 = vmul.f32 %v10099_v17, %v16780_v2 }
 0x730   : > { %v10153_v18 = vmul.f32 0.7978846, %v10137_v11  ;;  %v10155_v19 = vmul.f32 0.7978846, %v10139_v54  ;;  %13375 = vtanh.f32 %v10152_v56  ;;  %v10129_v13 = vmul.f32 0.044715, %v10113_v9 }
 0x731   : > { %v10144_v12 = vadd.f32 %v10128_v8, %v16741_v57  ;;  %13377 = vtanh.f32 %v10154_v16  ;;  %v10146_v21 = vadd.f32 %v10130_v20, %v16743_v58  ;;  %v10131_v25 = vmul.f32 0.044715, %v10115_v53  ;;  %s13419_s16 = scalar_lea.vmem %s16818_s26, 1024  ;;  %s13423_s18 = sshll.u32 %s13493_s25, 4  ;;  %s13424_s18 = int_to_ptr.vmem [resolvable:$false] %s13423_s18 }
 0x732   : > { %13379 = vtanh.f32 %v10153_v18  ;;  %v10145_v30 = vadd.f32 %v10129_v13, %v16775_v61  ;;  %v10072_v33 = vmul.f32 0.5, %v16709_v39  ;;  %v10074_v36 = vmul.f32 0.5, %v16711_v40  ;;  %p13420_p1 = scmp.ne.s32.totalorder %s16818_s26, %s13419_s16  ;;  %s13425_s29 = scalar_lea.vmem %s13424_s18, 2048 }
 0x733   : > { %v10160_v24 = vmul.f32 0.7978846, %v10144_v12  ;;  %13381 = vtanh.f32 %v10155_v19  ;;  %v10162_v27 = vmul.f32 0.7978846, %v10146_v21  ;;  %v10147_v28 = vadd.f32 %v10131_v25, %v16780_v2  ;;  %p13426_p4 = scmp.lt.s32.totalorder %s16818_s26, %s13424_s18  ;;  %p13427_p7 = scmp.lt.s32.totalorder %s13425_s29, %s13419_s16 }
 0x734   : > { %v10161_v31 = vmul.f32 0.7978846, %v10145_v30  ;;  %v10073_v41 = vmul.f32 0.5, %v16723_v29  ;;  %v10075_v45 = vmul.f32 0.5, %v16726_v43  ;;  %v10080_v48 = vmul.f32 0.5, %v16741_v57  ;;  %p13421_p2 = pnand %p13420_p1, %p13597_p5 }
 0x735   : > { %13383 = vtanh.f32 %v10160_v24  ;;  %v10163_v22 = vmul.f32 0.7978846, %v10147_v28  ;;  %v10082_v50 = vmul.f32 0.5, %v16743_v58  ;;  %v10081_v59 = vmul.f32 0.5, %v16775_v61  ;;  %p13428_p8 = por %p13427_p7, %p13426_p4 }
 0x736   : > { %13385 = vtanh.f32 %v10162_v27  ;;  %v10083_v57 = vmul.f32 0.5, %v16780_v2  ;;  %p13422_p3 = pneg %p13421_p2 }
 0x737   : > { %13387 = vtanh.f32 %v10161_v31 }
 0x738   : > { %13389 = vtanh.f32 %v10163_v22  ;;  %p13429_p9 = pnand %p13428_p8, %p13422_p3 }
 0x73a   : > { %v13376_v32 = vpop.eup %13375 }
 0x73b   : > { %v13378_v23 = vpop.eup %13377  ;;  %v10184_v34 = vadd.f32 1.0, %v13376_v32 }
 0x73c   : > { %v13380_v35 = vpop.eup %13379  ;;  %v10186_v37 = vadd.f32 1.0, %v13378_v23 }
 0x73d   : > { %v13382_v38 = vpop.eup %13381  ;;  %v10200_v0 = vmul.f32 %v10184_v34, %v10072_v33  ;;  %v10185_v42 = vadd.f32 1.0, %v13380_v35 }
 0x73e   : > { %v10202_v44 = vmul.f32 %v10186_v37, %v10074_v36  ;;  %v10187_v46 = vadd.f32 1.0, %v13382_v38 }
 0x73f   : > { %v13384_v26 = vpop.eup %13383  ;;  %10221 = vst [vmem:[%s436_s23] sm:$0xff] %v10200_v0  ;;  %v10201_v39 = vmul.f32 %v10185_v42, %v10073_v41 }
 0x740   : > { %v13386_v47 = vpop.eup %13385  ;;  %v10192_v49 = vadd.f32 1.0, %v13384_v26  ;;  %10223 = vst [vmem:[%s436_s23 + $0x10] sm:$0xff] %v10202_v44  ;;  %v10203_v40 = vmul.f32 %v10187_v46, %v10075_v45 }
 0x741   : > { %v10194_v51 = vadd.f32 1.0, %v13386_v47  ;;  %v13388_v29 = vpop.eup %13387  ;;  %10222 = vst [vmem:[%s436_s23 + $0x8] sm:$0xff] %v10201_v39 }
 0x742   : > { %v10208_v52 = vmul.f32 %v10192_v49, %v10080_v48  ;;  %v13390_v55 = vpop.eup %13389  ;;  %10224 = vst.msk [vmem:[%s436_s23 + $0x18] sm:$0xff] %vm10215_vm8, %v10203_v40  ;;  %v10193_v60 = vadd.f32 1.0, %v13388_v29 }
 0x743   : > { %v10210_v43 = vmul.f32 %v10194_v51, %v10082_v50  ;;  %v10195_v62 = vadd.f32 1.0, %v13390_v55 }
 0x744   : > { %10225 = vst [vmem:[%s436_s23 + $0x20] sm:$0xff] %v10208_v52  ;;  %v10209_v58 = vmul.f32 %v10193_v60, %v10081_v59 }
 0x745   : > { %10227 = vst [vmem:[%s436_s23 + $0x30] sm:$0xff] %v10210_v43  ;;  %v10211_v63 = vmul.f32 %v10195_v62, %v10083_v57 }
 0x746   : > { %10226 = vst [vmem:[%s436_s23 + $0x28] sm:$0xff] %v10209_v58 }
 0x747   : > { %10228 = vst.msk [vmem:[%s436_s23 + $0x38] sm:$0xff] %vm10215_vm8, %v10211_v63 }
 0x748   : > { %13432 = shalt.err (!%p13429_p9)
}
 0x749   : > { %s13433_s23 = scalar_lea.hbm %s16816_s30, 1024  ;;  %s13437_s25 = scalar_lea.hbm %s16875_s10, 2048 }
 0x74a   : > { %p13434_p10 = scmp.ne.s32.totalorder %s16816_s30, %s13433_s23  ;;  %p13438_p13 = scmp.lt.u32.totalorder %s16816_s30, %s16875_s10 }
 0x74b   : > { %p13439_p0 = scmp.lt.u32.totalorder %s13437_s25, %s13433_s23  ;;  %p13441_p2 = scmp.lt.u32.totalorder %s13433_s23, %s16816_s30 }
 0x74c   : > { %p13435_p11 = pnand %p13434_p10, %p13597_p5 }
 0x74d   : > { %p13440_p1 = por %p13439_p0, %p13438_p13 }
 0x74e   : > { %p13436_p12 = pneg %p13435_p11 }
 0x74f   : > { %p13442_p3 = por %p13441_p2, %p13440_p1 }
 0x751   : > { %p13443_p4 = pnand %p13442_p3, %p13436_p12 }
 0x753   : > { %13446 = shalt.err (!%p13443_p4)
}
 0x754   : > { %s16890_s16 = scalar_lea.sflag [#allocation5], %s16673_s17 }
 0x755   : > { %12485 = dma.vmem_to_hbm [thread:$0]  (%p13597_p5), %s16818_s26, 1024, %s16816_s30, %s16890_s16, %s13491_s27, %s13491_s27, %s13492_s19  }
 0x756 PF: > { %p12495_p7 = scmp.ge.s32.totalorder %s13485_s24, 2  ;;  %s10304_s20 = sand.u32 1, %s13473_s21  }
 0x757   : > { %s10305_s29 = scalar_lea.sflag [#allocation3], %s10304_s20 }
 0x758   : > { %p12489_p8 = pnand %p12495_p7, %p13601_p6 }
 0x75a   : > { %13464 = dma.done.wait (!%p12489_p8), %s10305_s29, 1024  }
 0x75b   : > { %13466 = vsyncadd (!%p12489_p8), %s10305_s29, 4294966272  ;;  %s10314_s13 = scalar_lea.sflag [#allocation5], %s10304_s20 }
 0x75c   : > { %13468 = dma.done.wait (!%p12489_p8), %s10314_s13, 1024  }
 0x75d   : > { %13470 = vsyncadd (!%p12489_p8), %s10314_s13, 4294966272  ;;  %s16891_s24 = sld [smem:[#allocation9_spill]]  ;;  %s16892_s17 = sld [smem:[#allocation8_spill]] }
 0x75e   : > { %s16893_s23 = sld [smem:[#allocation10_spill]]  ;;  %s16894_s21 = smov %s13477_s22 }
 0x763   : > { %p26_p5 = scmp.ge.s32.totalorder %s16891_s24, 4   ;;  %s16895_s22 = smov %s16892_s17 }
 0x765   :  { %28 = sbr.rel (!%p26_p5) target bundleno = 5 (0x5), region = 135 }
 0x76c   :  { %10335 = vsyncpa [#allocation3], 1 }
 0x76d   :  { %10337 = vsyncpa [#allocation3 + $0x1], 1 }
 0x76e   :  { %10338 = vsyncpa [#allocation5], 1 }
 0x76f   :  { %10340 = vsyncpa [#allocation5 + $0x1], 1 }

</bundles_post_ra>
